<compile_context>
chip_gen: v6e
topology: v6e:2x2x1
jax: 0.10.0
libtpu: 0.0.40
codegen_flags: <defaults>
</compile_context>

<pallas_src>
import functools

import jax
import jax.numpy as jnp
from jax import lax
from jax.experimental import pallas as pl
from jax.experimental.pallas import tpu as pltpu


_VMEM = pl.BlockSpec(memory_space=pltpu.MemorySpace.VMEM)
_LN_EPS = 1e-5
_SCATTER_CHUNK = 512      # edge-axis chunk for the one-hot scatter matmul
_TE = 128                 # graph-edge tile for the parallel n2e stage


def _pad128(n):
    return -(-int(n) // 128) * 128


def _pad_rows(x, target):
    r = x.shape[0]
    if target == r:
        return x
    return jnp.pad(x, ((0, target - r), (0, 0)))


# --------------------------------------------------------------------------
# In-kernel building blocks (values in, values out; weights already sliced)
# --------------------------------------------------------------------------
def _layernorm(x, gamma, beta, eps=_LN_EPS):
    mu = jnp.mean(x, axis=-1, keepdims=True)
    var = jnp.maximum(jnp.mean(x * x, axis=-1, keepdims=True) - mu * mu, 0.0)
    return (x - mu) * lax.rsqrt(var + eps) * gamma + beta


def _cat_bf16(x1, x2):
    # cast each branch first -> half the cast/vreg traffic of the (R,2H) concat
    return jnp.concatenate([x1.astype(jnp.bfloat16), x2.astype(jnp.bfloat16)],
                           axis=-1)


def _slp(x1, x2, w, vec):
    # y = ReLU(LN([x1 | x2] @ [Wa; Wb] + b))   -- merged K=2H bf16 matmul
    y = jnp.dot(_cat_bf16(x1, x2), w, preferred_element_type=jnp.float32)
    y = y + vec[0:1, :]
    y = _layernorm(y, vec[1:2, :], vec[2:3, :])
    return jnp.maximum(y, 0.0)


def _mlp(x1, x2, w1, w2, vec, outer):
    # h = ReLU(LN([x1|x2]@W1+b1)); y = h@W2+b2; out = ReLU(outer_norm(y))
    h = jnp.dot(_cat_bf16(x1, x2), w1, preferred_element_type=jnp.float32)
    h = jnp.maximum(_layernorm(h + vec[0:1, :], vec[1:2, :], vec[2:3, :]), 0.0)
    y = jnp.dot(h.astype(jnp.bfloat16), w2,
                preferred_element_type=jnp.float32) + vec[3:4, :]
    if outer == "layernorm":
        y = _layernorm(y, vec[4:5, :], vec[5:6, :])
    else:  # eval-mode BatchNorm1d folded to per-channel scale/shift
        y = y * vec[4:5, :] + vec[5:6, :]
    return jnp.maximum(y, 0.0)


def _scatter_sum(e_repr, dst_ref, num_dst_pad):
    # out[n,:] = sum_{e: dst[e]==n} e_repr[e,:], tiled over the edge axis:
    # per chunk build a (N_pad, cw) bf16 one-hot (exact 0/1) and MXU-matmul it
    # against the bf16 edge block, accumulating in f32.  Padded edges carry
    # dst = -1 -> all-zero one-hot column -> no contribution.
    E, H = e_repr.shape
    e_bf = e_repr.astype(jnp.bfloat16)
    acc = jnp.zeros((num_dst_pad, H), jnp.float32)
    c0 = 0
    while c0 < E:                                   # static (E is a Python int)
        cw = min(_SCATTER_CHUNK, E - c0)
        ids = lax.broadcasted_iota(jnp.int32, (num_dst_pad, cw), 0)
        onehot = (ids == dst_ref[0:1, c0:c0 + cw]).astype(jnp.bfloat16)
        acc = acc + jnp.dot(onehot, e_bf[c0:c0 + cw, :],
                            preferred_element_type=jnp.float32)
        c0 += cw
    return acc


# --------------------------------------------------------------------------
# Kernel 1: whole bottom-up tree loop fused in one call (sequential by nature)
# --------------------------------------------------------------------------
def _tree_kernel(*refs, height, has_edge_feat, node_pads, H):
    refs = list(refs)
    out_ref = refs[-1]
    w_ref, vec_ref = refs[-3], refs[-2]
    it = iter(refs[:-3])

    w_off = 0
    v_off = 0
    n_repr = next(it)[...]                       # level-`height` node feats (bf16)
    for k in range(height, 0, -1):               # statically unrolled
        if has_edge_feat:
            e_feat = next(it)[...]
            w_e = w_ref[w_off:w_off + 2 * H, :]; w_off += 2 * H
            vec_e = vec_ref[v_off:v_off + 8, :]; v_off += 8
            e_repr = _slp(e_feat, n_repr, w_e, vec_e)
        else:
            e_repr = n_repr
        dst_ref = next(it)
        n_prev = next(it)[...]
        w1 = w_ref[w_off:w_off + 2 * H, :]; w_off += 2 * H
        w2 = w_ref[w_off:w_off + H, :];     w_off += H
        vec_n = vec_ref[v_off:v_off + 8, :]; v_off += 8

        agg = _scatter_sum(e_repr, dst_ref, node_pads[k - 1])
        n_repr = _mlp(n_prev, agg, w1, w2, vec_n, "layernorm")

    out_ref[...] = n_repr.astype(jnp.float32)


# --------------------------------------------------------------------------
# Kernel 2: n2e stage, gridded over graph-edge tiles (parallel across cores)
# --------------------------------------------------------------------------
def _n2e_kernel(adj_ref, e0_ref, top_ref, w_ref, vec_ref, out_ref, *, H):
    n2e_feat = jnp.dot(adj_ref[...], top_ref[...],
                       preferred_element_type=jnp.float32)
    w1 = w_ref[0:2 * H, :]
    w2 = w_ref[2 * H:3 * H, :]
    out_ref[...] = _mlp(e0_ref[...], n2e_feat, w1, w2, vec_ref[...], "affine")


# --------------------------------------------------------------------------
# Wrapper: padding, packing, two pallas_calls
# --------------------------------------------------------------------------
def tree_bottomup_forward(params, n_feat_list, e_feat_list, dst_list,
                          num_nodes_list, n2e_adj_t, height, has_edge_feat=True):
    # TODO(synk): only agg='sum' + inference mode implemented; for graphs whose
    # per-level features exceed VMEM, level inputs should move to pl.ANY with
    # manual double-buffered DMA instead of whole-array VMEM residency.
    H = n_feat_list[0].shape[1]
    N0 = int(num_nodes_list[0])
    E0 = int(n2e_adj_t.shape[0])
    node_pads = [_pad128(n) for n in num_nodes_list]   # per-level row pads
    E0_pad = _pad128(E0)

    # ------------------- call 1: bottom-up tree -------------------
    inputs = [_pad_rows(n_feat_list[height], node_pads[height]).astype(jnp.bfloat16)]
    for k in range(height, 0, -1):
        ek_pad = node_pads[k]                 # #edges at level k == #nodes at level k
        if has_edge_feat:
            inputs.append(_pad_rows(e_feat_list[k], ek_pad).astype(jnp.bfloat16))
        dk = dst_list[k].astype(jnp.int32)
        dk = jnp.pad(dk, (0, ek_pad - dk.shape[0]),
                     constant_values=-1).reshape(1, ek_pad)
        inputs.append(dk)
        inputs.append(_pad_rows(n_feat_list[k - 1],
                                node_pads[k - 1]).astype(jnp.bfloat16))
    inputs.append(params["tree_w"])
    inputs.append(params["tree_vec"])

    io1 = sum(int(a.size) * a.dtype.itemsize for a in inputs)
    io1 += node_pads[0] * H * 4
    max_e = max(node_pads[1:]) if height >= 1 else node_pads[0]
    max_n = max(node_pads)
    inter1 = (max_e * 2 * H * 2 + max_e * H * 4                    # concat + e_repr
              + max_n * (min(_SCATTER_CHUNK, max_e) * 6 + 2 * H * 4))  # onehot + accs
    vmem1 = int(min(40 * 1024 * 1024, 2 * io1 + inter1 + 4 * 1024 * 1024))

    flops1 = 0
    for k in range(height, 0, -1):
        ek, nk1 = node_pads[k], node_pads[k - 1]
        if has_edge_feat:
            flops1 += 2 * ek * (2 * H) * H
        flops1 += 2 * nk1 * ek * H                                  # scatter matmul
        flops1 += 2 * nk1 * (2 * H) * H + 2 * nk1 * H * H           # MLP
    ce1 = pl.CostEstimate(flops=flops1, transcendentals=4 * sum(node_pads),
                          bytes_accessed=io1)

    top_pad = pl.pallas_call(
        functools.partial(_tree_kernel, height=height,
                          has_edge_feat=has_edge_feat,
                          node_pads=node_pads, H=H),
        out_shape=jax.ShapeDtypeStruct((node_pads[0], H), jnp.float32),
        in_specs=[_VMEM] * len(inputs),
        out_specs=_VMEM,
        compiler_params=pltpu.CompilerParams(vmem_limit_bytes=vmem1),
        cost_estimate=ce1,
    )(*inputs)

    # ------------------- call 2: n2e stage (parallel over edge tiles) -------------------
    N0P = node_pads[0]
    adj = jnp.pad(n2e_adj_t.astype(jnp.float32),
                  ((0, E0_pad - E0), (0, N0P - N0))).astype(jnp.bfloat16)
    e0 = _pad_rows(e_feat_list[0], E0_pad).astype(jnp.bfloat16)
    top_bf = top_pad.astype(jnp.bfloat16)
    wn, vn = params["n2e_w"], params["n2e_vec"]

    io2 = (adj.size * 2 + e0.size * 2 + top_bf.size * 2
           + wn.size * 2 + vn.size * 4 + E0_pad * H * 4)
    inter2 = _TE * (N0P * 4 + 2 * H * 2 + 3 * H * 4)
    vmem2 = int(min(40 * 1024 * 1024, 2 * io2 + inter2 + 4 * 1024 * 1024))
    ce2 = pl.CostEstimate(
        flops=2 * E0_pad * N0P * H + 2 * E0_pad * (2 * H) * H + 2 * E0_pad * H * H,
        transcendentals=2 * E0_pad, bytes_accessed=int(io2))

    edge_pad = pl.pallas_call(
        functools.partial(_n2e_kernel, H=H),
        out_shape=jax.ShapeDtypeStruct((E0_pad, H), jnp.float32),
        grid=(E0_pad // _TE,),
        in_specs=[pl.BlockSpec((_TE, N0P), lambda i: (i, 0)),
                  pl.BlockSpec((_TE, H), lambda i: (i, 0)),
                  pl.BlockSpec((N0P, H), lambda i: (0, 0)),
                  pl.BlockSpec(wn.shape, lambda i: (0, 0)),
                  pl.BlockSpec(vn.shape, lambda i: (0, 0))],
        out_specs=pl.BlockSpec((_TE, H), lambda i: (i, 0)),
        compiler_params=pltpu.CompilerParams(
            dimension_semantics=("parallel",), vmem_limit_bytes=vmem2),
        cost_estimate=ce2,
    )(adj, e0, top_bf, wn, vn)

    return top_pad[:N0], edge_pad[:E0]


# --------------------------------------------------------------------------
# Parameter init (deterministic, synthetic) — packed contiguous slabs
#   tree_w  : bf16 [height*(5H if edge else 3H), H]   (per level: [Wa;Wb], [W1a;W1b], W2)
#   tree_vec: f32  [height*(16 if edge else 8), H]    (8-row-aligned blocks)
#   n2e_w   : bf16 [3H, H];   n2e_vec: f32 [8, H]
# --------------------------------------------------------------------------
def _vec_block(rows):
    # pad a list of (1,H) rows to an 8-row block for aligned slab slicing
    h = rows[0].shape[1]
    pad = [jnp.zeros((1, h), jnp.float32)] * (8 - len(rows))
    return rows + pad


def init_tree_bottomup_params(key, height, hidden_dim, has_edge_feat=True):
    H = hidden_dim
    keys = iter(jax.random.split(key, 8 * height + 8))

    def lin():
        return jax.random.normal(next(keys), (H, H), jnp.float32) * 0.05

    zeros, ones = jnp.zeros((1, H), jnp.float32), jnp.ones((1, H), jnp.float32)
    tw, tv = [], []
    for _ in range(height, 0, -1):
        if has_edge_feat:
            tw += [lin(), lin()]                               # [Wa; Wb]
            tv += _vec_block([zeros, ones, zeros])             # b, gamma, beta
        tw += [lin(), lin(), lin()]                            # [W1a; W1b], W2
        tv += _vec_block([zeros, ones, zeros, zeros, ones, zeros])
    nw = [lin(), lin(), lin()]
    # NOTE: BN eval folding assumes fresh running stats (mean=0, var=1,
    # weight=1, bias=0); real checkpoints must fold stats into rows 4/5.
    bn_scale = jnp.full((1, H), 1.0 / (1.0 + _LN_EPS) ** 0.5, jnp.float32)
    nv = _vec_block([zeros, ones, zeros, zeros, bn_scale, zeros])
    return {
        "tree_w": jnp.concatenate(tw, 0).astype(jnp.bfloat16),
        "tree_vec": jnp.concatenate(tv, 0).astype(jnp.float32),
        "n2e_w": jnp.concatenate(nw, 0).astype(jnp.bfloat16),
        "n2e_vec": jnp.concatenate(nv, 0).astype(jnp.float32),
    }


# --------------------------------------------------------------------------
# Demo
# --------------------------------------------------------------------------
if __name__ == "__main__":
    key = jax.random.PRNGKey(0)
    height = 2
    hidden_dim = 128
    num_nodes_list = [4, 8, 16]          # nodes per tree level (0 = top)
    num_graph_edges = 12                 # original-graph edges for n2e

    keys = jax.random.split(key, 16)

    # Node features per level
    n_feat_list = [
        jax.random.normal(keys[i], (num_nodes_list[i], hidden_dim), jnp.float32)
        for i in range(height + 1)
    ]
    # Edge features: level k has one parent-edge per level-k node; level 0 = graph edges
    e_feat_list = [
        jax.random.normal(keys[3], (num_graph_edges, hidden_dim), jnp.float32),
        jax.random.normal(keys[4], (num_nodes_list[1], hidden_dim), jnp.float32),
        jax.random.normal(keys[5], (num_nodes_list[2], hidden_dim), jnp.float32),
    ]
    # Destination indices (tree edge dst = parent node at level k-1)
    dst_list = [
        None,
        jax.random.randint(keys[6], (num_nodes_list[1],), 0, num_nodes_list[0], jnp.int32),
        jax.random.randint(keys[7], (num_nodes_list[2],), 0, num_nodes_list[1], jnp.int32),
    ]
    # Dense n2e adjacency (graph-edge x top-node), 0/1
    n2e_adj_t = jax.random.bernoulli(
        keys[8], 0.4, (num_graph_edges, num_nodes_list[0])).astype(jnp.float32)

    params = init_tree_bottomup_params(keys[9], height, hidden_dim, has_edge_feat=True)

    top_repr, edge_repr = tree_bottomup_forward(
        params, n_feat_list, e_feat_list, dst_list,
        num_nodes_list, n2e_adj_t, height, has_edge_feat=True)

    jax.block_until_ready(top_repr)
    jax.block_until_ready(edge_repr)

    assert top_repr.shape == (num_nodes_list[0], hidden_dim)
    assert edge_repr.shape == (num_graph_edges, hidden_dim)
    assert bool(jnp.all(jnp.isfinite(top_repr)))
    assert bool(jnp.all(jnp.isfinite(edge_repr)))
    print("KERNEL_OK")
</pallas_src>

<mosaic_0001>
module attributes {stable_mosaic.version = 11 : i64} {
  func.func @_tree_kernel(%arg0: memref<128x128xbf16, #tpu.memory_space<vmem>>, %arg1: memref<128x128xbf16, #tpu.memory_space<vmem>>, %arg2: memref<1x128xi32, #tpu.memory_space<vmem>>, %arg3: memref<128x128xbf16, #tpu.memory_space<vmem>>, %arg4: memref<128x128xbf16, #tpu.memory_space<vmem>>, %arg5: memref<1x128xi32, #tpu.memory_space<vmem>>, %arg6: memref<128x128xbf16, #tpu.memory_space<vmem>>, %arg7: memref<1280x128xbf16, #tpu.memory_space<vmem>>, %arg8: memref<32x128xf32, #tpu.memory_space<vmem>>, %arg9: memref<128x128xf32, #tpu.memory_space<vmem>>) attributes {dimension_semantics = [], scalar_prefetch = 0 : i64, scratch_operands = 0 : i64, tpu.core_type = #tpu.core_type<tc>} {
    %c0 = arith.constant 0 : index
    %c0_0 = arith.constant 0 : index
    %0 = vector.load %arg0[%c0, %c0_0] : memref<128x128xbf16, #tpu.memory_space<vmem>>, vector<128x128xbf16>
    %c0_1 = arith.constant 0 : index
    %c0_2 = arith.constant 0 : index
    %1 = vector.load %arg1[%c0_1, %c0_2] : memref<128x128xbf16, #tpu.memory_space<vmem>>, vector<128x128xbf16>
    %c0_3 = arith.constant 0 : index
    %c0_4 = arith.constant 0 : index
    %2 = vector.load %arg7[%c0_3, %c0_4] : memref<1280x128xbf16, #tpu.memory_space<vmem>>, vector<256x128xbf16>
    %c0_5 = arith.constant 0 : index
    %c0_6 = arith.constant 0 : index
    %3 = vector.load %arg8[%c0_5, %c0_6] : memref<32x128xf32, #tpu.memory_space<vmem>>, vector<8x128xf32>
    %4 = tpu.concatenate %1, %0 in 1 : vector<128x128xbf16>, vector<128x128xbf16> -> vector<128x256xbf16>
    %cst = arith.constant dense<0.000000e+00> : vector<128x128xf32>
    %5 = tpu.matmul %4, %2, %cst {dimension_numbers = #tpu.dot_dimension_numbers<[1], [0], [0], [1], [0, 0, 1, 1], [], []>} : vector<128x256xbf16>, vector<256x128xbf16>, vector<128x128xf32> -> vector<128x128xf32>
    %6 = vector.extract_strided_slice %3 {offsets = [0, 0], sizes = [1, 128], strides = [1, 1]} : vector<8x128xf32> to vector<1x128xf32>
    %7 = vector.broadcast %6 : vector<1x128xf32> to vector<128x128xf32>
    %8 = arith.addf %5, %7 : vector<128x128xf32>
    %9 = vector.extract_strided_slice %3 {offsets = [1, 0], sizes = [1, 128], strides = [1, 1]} : vector<8x128xf32> to vector<1x128xf32>
    %10 = vector.extract_strided_slice %3 {offsets = [2, 0], sizes = [1, 128], strides = [1, 1]} : vector<8x128xf32> to vector<1x128xf32>
    %cst_7 = arith.constant dense<0.000000e+00> : vector<128xf32>
    %11 = vector.multi_reduction <add>, %8, %cst_7 [1] : vector<128x128xf32> to vector<128xf32>
    %12 = vector.shape_cast %11 : vector<128xf32> to vector<128x1xf32>
    %cst_8 = arith.constant 1.280000e+02 : f32
    %13 = vector.broadcast %cst_8 : f32 to vector<128x1xf32>
    %14 = arith.divf %12, %13 : vector<128x1xf32>
    %15 = arith.mulf %8, %8 : vector<128x128xf32>
    %cst_9 = arith.constant dense<0.000000e+00> : vector<128xf32>
    %16 = vector.multi_reduction <add>, %15, %cst_9 [1] : vector<128x128xf32> to vector<128xf32>
    %17 = vector.shape_cast %16 : vector<128xf32> to vector<128x1xf32>
    %cst_10 = arith.constant 1.280000e+02 : f32
    %18 = vector.broadcast %cst_10 : f32 to vector<128x1xf32>
    %19 = arith.divf %17, %18 : vector<128x1xf32>
    %20 = arith.mulf %14, %14 : vector<128x1xf32>
    %21 = arith.subf %19, %20 : vector<128x1xf32>
    %cst_11 = arith.constant 0.000000e+00 : f32
    %22 = vector.broadcast %cst_11 : f32 to vector<128x1xf32>
    %23 = arith.maximumf %21, %22 : vector<128x1xf32>
    %24 = vector.broadcast %14 : vector<128x1xf32> to vector<128x128xf32>
    %25 = arith.subf %8, %24 : vector<128x128xf32>
    %cst_12 = arith.constant 9.99999974E-6 : f32
    %26 = vector.broadcast %cst_12 : f32 to vector<128x1xf32>
    %27 = arith.addf %23, %26 : vector<128x1xf32>
    %28 = math.rsqrt %27 : vector<128x1xf32>
    %29 = vector.broadcast %28 : vector<128x1xf32> to vector<128x128xf32>
    %30 = arith.mulf %25, %29 : vector<128x128xf32>
    %31 = vector.broadcast %9 : vector<1x128xf32> to vector<128x128xf32>
    %32 = arith.mulf %30, %31 : vector<128x128xf32>
    %33 = vector.broadcast %10 : vector<1x128xf32> to vector<128x128xf32>
    %34 = arith.addf %32, %33 : vector<128x128xf32>
    %cst_13 = arith.constant 0.000000e+00 : f32
    %35 = vector.broadcast %cst_13 : f32 to vector<128x128xf32>
    %36 = arith.maximumf %34, %35 : vector<128x128xf32>
    %c0_14 = arith.constant 0 : index
    %c0_15 = arith.constant 0 : index
    %37 = vector.load %arg3[%c0_14, %c0_15] : memref<128x128xbf16, #tpu.memory_space<vmem>>, vector<128x128xbf16>
    %c256 = arith.constant 256 : index
    %c0_16 = arith.constant 0 : index
    %38 = vector.load %arg7[%c256, %c0_16] : memref<1280x128xbf16, #tpu.memory_space<vmem>>, vector<256x128xbf16>
    %c512 = arith.constant 512 : index
    %c0_17 = arith.constant 0 : index
    %39 = vector.load %arg7[%c512, %c0_17] : memref<1280x128xbf16, #tpu.memory_space<vmem>>, vector<128x128xbf16>
    %c8 = arith.constant 8 : index
    %c0_18 = arith.constant 0 : index
    %40 = vector.load %arg8[%c8, %c0_18] : memref<32x128xf32, #tpu.memory_space<vmem>>, vector<8x128xf32>
    %41 = arith.truncf %36 : vector<128x128xf32> to vector<128x128xbf16>
    %cst_19 = arith.constant 0.000000e+00 : f32
    %42 = vector.broadcast %cst_19 : f32 to vector<128x128xf32>
    %43 = tpu.iota {dimensions = array<i32: 0>} : vector<128x128xi32>
    %c0_20 = arith.constant 0 : index
    %c0_21 = arith.constant 0 : index
    %44 = vector.load %arg2[%c0_20, %c0_21] : memref<1x128xi32, #tpu.memory_space<vmem>>, vector<1x128xi32>
    %45 = vector.broadcast %44 : vector<1x128xi32> to vector<128x128xi32>
    %46 = arith.cmpi eq, %43, %45 : vector<128x128xi32>
    %47 = arith.extui %46 : vector<128x128xi1> to vector<128x128xi32>
    %48 = arith.sitofp %47 : vector<128x128xi32> to vector<128x128xf32>
    %49 = arith.truncf %48 : vector<128x128xf32> to vector<128x128xbf16>
    %cst_22 = arith.constant dense<0.000000e+00> : vector<128x128xf32>
    %50 = tpu.matmul %49, %41, %cst_22 {dimension_numbers = #tpu.dot_dimension_numbers<[1], [0], [0], [1], [0, 0, 1, 1], [], []>} : vector<128x128xbf16>, vector<128x128xbf16>, vector<128x128xf32> -> vector<128x128xf32>
    %51 = arith.addf %42, %50 : vector<128x128xf32>
    %52 = arith.truncf %51 : vector<128x128xf32> to vector<128x128xbf16>
    %53 = tpu.concatenate %37, %52 in 1 : vector<128x128xbf16>, vector<128x128xbf16> -> vector<128x256xbf16>
    %cst_23 = arith.constant dense<0.000000e+00> : vector<128x128xf32>
    %54 = tpu.matmul %53, %38, %cst_23 {dimension_numbers = #tpu.dot_dimension_numbers<[1], [0], [0], [1], [0, 0, 1, 1], [], []>} : vector<128x256xbf16>, vector<256x128xbf16>, vector<128x128xf32> -> vector<128x128xf32>
    %55 = vector.extract_strided_slice %40 {offsets = [0, 0], sizes = [1, 128], strides = [1, 1]} : vector<8x128xf32> to vector<1x128xf32>
    %56 = vector.broadcast %55 : vector<1x128xf32> to vector<128x128xf32>
    %57 = arith.addf %54, %56 : vector<128x128xf32>
    %58 = vector.extract_strided_slice %40 {offsets = [1, 0], sizes = [1, 128], strides = [1, 1]} : vector<8x128xf32> to vector<1x128xf32>
    %59 = vector.extract_strided_slice %40 {offsets = [2, 0], sizes = [1, 128], strides = [1, 1]} : vector<8x128xf32> to vector<1x128xf32>
    %cst_24 = arith.constant dense<0.000000e+00> : vector<128xf32>
    %60 = vector.multi_reduction <add>, %57, %cst_24 [1] : vector<128x128xf32> to vector<128xf32>
    %61 = vector.shape_cast %60 : vector<128xf32> to vector<128x1xf32>
    %cst_25 = arith.constant 1.280000e+02 : f32
    %62 = vector.broadcast %cst_25 : f32 to vector<128x1xf32>
    %63 = arith.divf %61, %62 : vector<128x1xf32>
    %64 = arith.mulf %57, %57 : vector<128x128xf32>
    %cst_26 = arith.constant dense<0.000000e+00> : vector<128xf32>
    %65 = vector.multi_reduction <add>, %64, %cst_26 [1] : vector<128x128xf32> to vector<128xf32>
    %66 = vector.shape_cast %65 : vector<128xf32> to vector<128x1xf32>
    %cst_27 = arith.constant 1.280000e+02 : f32
    %67 = vector.broadcast %cst_27 : f32 to vector<128x1xf32>
    %68 = arith.divf %66, %67 : vector<128x1xf32>
    %69 = arith.mulf %63, %63 : vector<128x1xf32>
    %70 = arith.subf %68, %69 : vector<128x1xf32>
    %cst_28 = arith.constant 0.000000e+00 : f32
    %71 = vector.broadcast %cst_28 : f32 to vector<128x1xf32>
    %72 = arith.maximumf %70, %71 : vector<128x1xf32>
    %73 = vector.broadcast %63 : vector<128x1xf32> to vector<128x128xf32>
    %74 = arith.subf %57, %73 : vector<128x128xf32>
    %cst_29 = arith.constant 9.99999974E-6 : f32
    %75 = vector.broadcast %cst_29 : f32 to vector<128x1xf32>
    %76 = arith.addf %72, %75 : vector<128x1xf32>
    %77 = math.rsqrt %76 : vector<128x1xf32>
    %78 = vector.broadcast %77 : vector<128x1xf32> to vector<128x128xf32>
    %79 = arith.mulf %74, %78 : vector<128x128xf32>
    %80 = vector.broadcast %58 : vector<1x128xf32> to vector<128x128xf32>
    %81 = arith.mulf %79, %80 : vector<128x128xf32>
    %82 = vector.broadcast %59 : vector<1x128xf32> to vector<128x128xf32>
    %83 = arith.addf %81, %82 : vector<128x128xf32>
    %cst_30 = arith.constant 0.000000e+00 : f32
    %84 = vector.broadcast %cst_30 : f32 to vector<128x128xf32>
    %85 = arith.maximumf %83, %84 : vector<128x128xf32>
    %86 = arith.truncf %85 : vector<128x128xf32> to vector<128x128xbf16>
    %cst_31 = arith.constant dense<0.000000e+00> : vector<128x128xf32>
    %87 = tpu.matmul %86, %39, %cst_31 {dimension_numbers = #tpu.dot_dimension_numbers<[1], [0], [0], [1], [0, 0, 1, 1], [], []>} : vector<128x128xbf16>, vector<128x128xbf16>, vector<128x128xf32> -> vector<128x128xf32>
    %88 = vector.extract_strided_slice %40 {offsets = [3, 0], sizes = [1, 128], strides = [1, 1]} : vector<8x128xf32> to vector<1x128xf32>
    %89 = vector.broadcast %88 : vector<1x128xf32> to vector<128x128xf32>
    %90 = arith.addf %87, %89 : vector<128x128xf32>
    %91 = vector.extract_strided_slice %40 {offsets = [4, 0], sizes = [1, 128], strides = [1, 1]} : vector<8x128xf32> to vector<1x128xf32>
    %92 = vector.extract_strided_slice %40 {offsets = [5, 0], sizes = [1, 128], strides = [1, 1]} : vector<8x128xf32> to vector<1x128xf32>
    %cst_32 = arith.constant dense<0.000000e+00> : vector<128xf32>
    %93 = vector.multi_reduction <add>, %90, %cst_32 [1] : vector<128x128xf32> to vector<128xf32>
    %94 = vector.shape_cast %93 : vector<128xf32> to vector<128x1xf32>
    %cst_33 = arith.constant 1.280000e+02 : f32
    %95 = vector.broadcast %cst_33 : f32 to vector<128x1xf32>
    %96 = arith.divf %94, %95 : vector<128x1xf32>
    %97 = arith.mulf %90, %90 : vector<128x128xf32>
    %cst_34 = arith.constant dense<0.000000e+00> : vector<128xf32>
    %98 = vector.multi_reduction <add>, %97, %cst_34 [1] : vector<128x128xf32> to vector<128xf32>
    %99 = vector.shape_cast %98 : vector<128xf32> to vector<128x1xf32>
    %cst_35 = arith.constant 1.280000e+02 : f32
    %100 = vector.broadcast %cst_35 : f32 to vector<128x1xf32>
    %101 = arith.divf %99, %100 : vector<128x1xf32>
    %102 = arith.mulf %96, %96 : vector<128x1xf32>
    %103 = arith.subf %101, %102 : vector<128x1xf32>
    %cst_36 = arith.constant 0.000000e+00 : f32
    %104 = vector.broadcast %cst_36 : f32 to vector<128x1xf32>
    %105 = arith.maximumf %103, %104 : vector<128x1xf32>
    %106 = vector.broadcast %96 : vector<128x1xf32> to vector<128x128xf32>
    %107 = arith.subf %90, %106 : vector<128x128xf32>
    %cst_37 = arith.constant 9.99999974E-6 : f32
    %108 = vector.broadcast %cst_37 : f32 to vector<128x1xf32>
    %109 = arith.addf %105, %108 : vector<128x1xf32>
    %110 = math.rsqrt %109 : vector<128x1xf32>
    %111 = vector.broadcast %110 : vector<128x1xf32> to vector<128x128xf32>
    %112 = arith.mulf %107, %111 : vector<128x128xf32>
    %113 = vector.broadcast %91 : vector<1x128xf32> to vector<128x128xf32>
    %114 = arith.mulf %112, %113 : vector<128x128xf32>
    %115 = vector.broadcast %92 : vector<1x128xf32> to vector<128x128xf32>
    %116 = arith.addf %114, %115 : vector<128x128xf32>
    %cst_38 = arith.constant 0.000000e+00 : f32
    %117 = vector.broadcast %cst_38 : f32 to vector<128x128xf32>
    %118 = arith.maximumf %116, %117 : vector<128x128xf32>
    %c0_39 = arith.constant 0 : index
    %c0_40 = arith.constant 0 : index
    %119 = vector.load %arg4[%c0_39, %c0_40] : memref<128x128xbf16, #tpu.memory_space<vmem>>, vector<128x128xbf16>
    %c640 = arith.constant 640 : index
    %c0_41 = arith.constant 0 : index
    %120 = vector.load %arg7[%c640, %c0_41] : memref<1280x128xbf16, #tpu.memory_space<vmem>>, vector<256x128xbf16>
    %c16 = arith.constant 16 : index
    %c0_42 = arith.constant 0 : index
    %121 = vector.load %arg8[%c16, %c0_42] : memref<32x128xf32, #tpu.memory_space<vmem>>, vector<8x128xf32>
    %122 = arith.truncf %118 : vector<128x128xf32> to vector<128x128xbf16>
    %123 = tpu.concatenate %119, %122 in 1 : vector<128x128xbf16>, vector<128x128xbf16> -> vector<128x256xbf16>
    %cst_43 = arith.constant dense<0.000000e+00> : vector<128x128xf32>
    %124 = tpu.matmul %123, %120, %cst_43 {dimension_numbers = #tpu.dot_dimension_numbers<[1], [0], [0], [1], [0, 0, 1, 1], [], []>} : vector<128x256xbf16>, vector<256x128xbf16>, vector<128x128xf32> -> vector<128x128xf32>
    %125 = vector.extract_strided_slice %121 {offsets = [0, 0], sizes = [1, 128], strides = [1, 1]} : vector<8x128xf32> to vector<1x128xf32>
    %126 = vector.broadcast %125 : vector<1x128xf32> to vector<128x128xf32>
    %127 = arith.addf %124, %126 : vector<128x128xf32>
    %128 = vector.extract_strided_slice %121 {offsets = [1, 0], sizes = [1, 128], strides = [1, 1]} : vector<8x128xf32> to vector<1x128xf32>
    %129 = vector.extract_strided_slice %121 {offsets = [2, 0], sizes = [1, 128], strides = [1, 1]} : vector<8x128xf32> to vector<1x128xf32>
    %cst_44 = arith.constant dense<0.000000e+00> : vector<128xf32>
    %130 = vector.multi_reduction <add>, %127, %cst_44 [1] : vector<128x128xf32> to vector<128xf32>
    %131 = vector.shape_cast %130 : vector<128xf32> to vector<128x1xf32>
    %cst_45 = arith.constant 1.280000e+02 : f32
    %132 = vector.broadcast %cst_45 : f32 to vector<128x1xf32>
    %133 = arith.divf %131, %132 : vector<128x1xf32>
    %134 = arith.mulf %127, %127 : vector<128x128xf32>
    %cst_46 = arith.constant dense<0.000000e+00> : vector<128xf32>
    %135 = vector.multi_reduction <add>, %134, %cst_46 [1] : vector<128x128xf32> to vector<128xf32>
    %136 = vector.shape_cast %135 : vector<128xf32> to vector<128x1xf32>
    %cst_47 = arith.constant 1.280000e+02 : f32
    %137 = vector.broadcast %cst_47 : f32 to vector<128x1xf32>
    %138 = arith.divf %136, %137 : vector<128x1xf32>
    %139 = arith.mulf %133, %133 : vector<128x1xf32>
    %140 = arith.subf %138, %139 : vector<128x1xf32>
    %cst_48 = arith.constant 0.000000e+00 : f32
    %141 = vector.broadcast %cst_48 : f32 to vector<128x1xf32>
    %142 = arith.maximumf %140, %141 : vector<128x1xf32>
    %143 = vector.broadcast %133 : vector<128x1xf32> to vector<128x128xf32>
    %144 = arith.subf %127, %143 : vector<128x128xf32>
    %cst_49 = arith.constant 9.99999974E-6 : f32
    %145 = vector.broadcast %cst_49 : f32 to vector<128x1xf32>
    %146 = arith.addf %142, %145 : vector<128x1xf32>
    %147 = math.rsqrt %146 : vector<128x1xf32>
    %148 = vector.broadcast %147 : vector<128x1xf32> to vector<128x128xf32>
    %149 = arith.mulf %144, %148 : vector<128x128xf32>
    %150 = vector.broadcast %128 : vector<1x128xf32> to vector<128x128xf32>
    %151 = arith.mulf %149, %150 : vector<128x128xf32>
    %152 = vector.broadcast %129 : vector<1x128xf32> to vector<128x128xf32>
    %153 = arith.addf %151, %152 : vector<128x128xf32>
    %cst_50 = arith.constant 0.000000e+00 : f32
    %154 = vector.broadcast %cst_50 : f32 to vector<128x128xf32>
    %155 = arith.maximumf %153, %154 : vector<128x128xf32>
    %c0_51 = arith.constant 0 : index
    %c0_52 = arith.constant 0 : index
    %156 = vector.load %arg6[%c0_51, %c0_52] : memref<128x128xbf16, #tpu.memory_space<vmem>>, vector<128x128xbf16>
    %c896 = arith.constant 896 : index
    %c0_53 = arith.constant 0 : index
    %157 = vector.load %arg7[%c896, %c0_53] : memref<1280x128xbf16, #tpu.memory_space<vmem>>, vector<256x128xbf16>
    %c1152 = arith.constant 1152 : index
    %c0_54 = arith.constant 0 : index
    %158 = vector.load %arg7[%c1152, %c0_54] : memref<1280x128xbf16, #tpu.memory_space<vmem>>, vector<128x128xbf16>
    %c24 = arith.constant 24 : index
    %c0_55 = arith.constant 0 : index
    %159 = vector.load %arg8[%c24, %c0_55] : memref<32x128xf32, #tpu.memory_space<vmem>>, vector<8x128xf32>
    %160 = arith.truncf %155 : vector<128x128xf32> to vector<128x128xbf16>
    %cst_56 = arith.constant 0.000000e+00 : f32
    %161 = vector.broadcast %cst_56 : f32 to vector<128x128xf32>
    %162 = tpu.iota {dimensions = array<i32: 0>} : vector<128x128xi32>
    %c0_57 = arith.constant 0 : index
    %c0_58 = arith.constant 0 : index
    %163 = vector.load %arg5[%c0_57, %c0_58] : memref<1x128xi32, #tpu.memory_space<vmem>>, vector<1x128xi32>
    %164 = vector.broadcast %163 : vector<1x128xi32> to vector<128x128xi32>
    %165 = arith.cmpi eq, %162, %164 : vector<128x128xi32>
    %166 = arith.extui %165 : vector<128x128xi1> to vector<128x128xi32>
    %167 = arith.sitofp %166 : vector<128x128xi32> to vector<128x128xf32>
    %168 = arith.truncf %167 : vector<128x128xf32> to vector<128x128xbf16>
    %cst_59 = arith.constant dense<0.000000e+00> : vector<128x128xf32>
    %169 = tpu.matmul %168, %160, %cst_59 {dimension_numbers = #tpu.dot_dimension_numbers<[1], [0], [0], [1], [0, 0, 1, 1], [], []>} : vector<128x128xbf16>, vector<128x128xbf16>, vector<128x128xf32> -> vector<128x128xf32>
    %170 = arith.addf %161, %169 : vector<128x128xf32>
    %171 = arith.truncf %170 : vector<128x128xf32> to vector<128x128xbf16>
    %172 = tpu.concatenate %156, %171 in 1 : vector<128x128xbf16>, vector<128x128xbf16> -> vector<128x256xbf16>
    %cst_60 = arith.constant dense<0.000000e+00> : vector<128x128xf32>
    %173 = tpu.matmul %172, %157, %cst_60 {dimension_numbers = #tpu.dot_dimension_numbers<[1], [0], [0], [1], [0, 0, 1, 1], [], []>} : vector<128x256xbf16>, vector<256x128xbf16>, vector<128x128xf32> -> vector<128x128xf32>
    %174 = vector.extract_strided_slice %159 {offsets = [0, 0], sizes = [1, 128], strides = [1, 1]} : vector<8x128xf32> to vector<1x128xf32>
    %175 = vector.broadcast %174 : vector<1x128xf32> to vector<128x128xf32>
    %176 = arith.addf %173, %175 : vector<128x128xf32>
    %177 = vector.extract_strided_slice %159 {offsets = [1, 0], sizes = [1, 128], strides = [1, 1]} : vector<8x128xf32> to vector<1x128xf32>
    %178 = vector.extract_strided_slice %159 {offsets = [2, 0], sizes = [1, 128], strides = [1, 1]} : vector<8x128xf32> to vector<1x128xf32>
    %cst_61 = arith.constant dense<0.000000e+00> : vector<128xf32>
    %179 = vector.multi_reduction <add>, %176, %cst_61 [1] : vector<128x128xf32> to vector<128xf32>
    %180 = vector.shape_cast %179 : vector<128xf32> to vector<128x1xf32>
    %cst_62 = arith.constant 1.280000e+02 : f32
    %181 = vector.broadcast %cst_62 : f32 to vector<128x1xf32>
    %182 = arith.divf %180, %181 : vector<128x1xf32>
    %183 = arith.mulf %176, %176 : vector<128x128xf32>
    %cst_63 = arith.constant dense<0.000000e+00> : vector<128xf32>
    %184 = vector.multi_reduction <add>, %183, %cst_63 [1] : vector<128x128xf32> to vector<128xf32>
    %185 = vector.shape_cast %184 : vector<128xf32> to vector<128x1xf32>
    %cst_64 = arith.constant 1.280000e+02 : f32
    %186 = vector.broadcast %cst_64 : f32 to vector<128x1xf32>
    %187 = arith.divf %185, %186 : vector<128x1xf32>
    %188 = arith.mulf %182, %182 : vector<128x1xf32>
    %189 = arith.subf %187, %188 : vector<128x1xf32>
    %cst_65 = arith.constant 0.000000e+00 : f32
    %190 = vector.broadcast %cst_65 : f32 to vector<128x1xf32>
    %191 = arith.maximumf %189, %190 : vector<128x1xf32>
    %192 = vector.broadcast %182 : vector<128x1xf32> to vector<128x128xf32>
    %193 = arith.subf %176, %192 : vector<128x128xf32>
    %cst_66 = arith.constant 9.99999974E-6 : f32
    %194 = vector.broadcast %cst_66 : f32 to vector<128x1xf32>
    %195 = arith.addf %191, %194 : vector<128x1xf32>
    %196 = math.rsqrt %195 : vector<128x1xf32>
    %197 = vector.broadcast %196 : vector<128x1xf32> to vector<128x128xf32>
    %198 = arith.mulf %193, %197 : vector<128x128xf32>
    %199 = vector.broadcast %177 : vector<1x128xf32> to vector<128x128xf32>
    %200 = arith.mulf %198, %199 : vector<128x128xf32>
    %201 = vector.broadcast %178 : vector<1x128xf32> to vector<128x128xf32>
    %202 = arith.addf %200, %201 : vector<128x128xf32>
    %cst_67 = arith.constant 0.000000e+00 : f32
    %203 = vector.broadcast %cst_67 : f32 to vector<128x128xf32>
    %204 = arith.maximumf %202, %203 : vector<128x128xf32>
    %205 = arith.truncf %204 : vector<128x128xf32> to vector<128x128xbf16>
    %cst_68 = arith.constant dense<0.000000e+00> : vector<128x128xf32>
    %206 = tpu.matmul %205, %158, %cst_68 {dimension_numbers = #tpu.dot_dimension_numbers<[1], [0], [0], [1], [0, 0, 1, 1], [], []>} : vector<128x128xbf16>, vector<128x128xbf16>, vector<128x128xf32> -> vector<128x128xf32>
    %207 = vector.extract_strided_slice %159 {offsets = [3, 0], sizes = [1, 128], strides = [1, 1]} : vector<8x128xf32> to vector<1x128xf32>
    %208 = vector.broadcast %207 : vector<1x128xf32> to vector<128x128xf32>
    %209 = arith.addf %206, %208 : vector<128x128xf32>
    %210 = vector.extract_strided_slice %159 {offsets = [4, 0], sizes = [1, 128], strides = [1, 1]} : vector<8x128xf32> to vector<1x128xf32>
    %211 = vector.extract_strided_slice %159 {offsets = [5, 0], sizes = [1, 128], strides = [1, 1]} : vector<8x128xf32> to vector<1x128xf32>
    %cst_69 = arith.constant dense<0.000000e+00> : vector<128xf32>
    %212 = vector.multi_reduction <add>, %209, %cst_69 [1] : vector<128x128xf32> to vector<128xf32>
    %213 = vector.shape_cast %212 : vector<128xf32> to vector<128x1xf32>
    %cst_70 = arith.constant 1.280000e+02 : f32
    %214 = vector.broadcast %cst_70 : f32 to vector<128x1xf32>
    %215 = arith.divf %213, %214 : vector<128x1xf32>
    %216 = arith.mulf %209, %209 : vector<128x128xf32>
    %cst_71 = arith.constant dense<0.000000e+00> : vector<128xf32>
    %217 = vector.multi_reduction <add>, %216, %cst_71 [1] : vector<128x128xf32> to vector<128xf32>
    %218 = vector.shape_cast %217 : vector<128xf32> to vector<128x1xf32>
    %cst_72 = arith.constant 1.280000e+02 : f32
    %219 = vector.broadcast %cst_72 : f32 to vector<128x1xf32>
    %220 = arith.divf %218, %219 : vector<128x1xf32>
    %221 = arith.mulf %215, %215 : vector<128x1xf32>
    %222 = arith.subf %220, %221 : vector<128x1xf32>
    %cst_73 = arith.constant 0.000000e+00 : f32
    %223 = vector.broadcast %cst_73 : f32 to vector<128x1xf32>
    %224 = arith.maximumf %222, %223 : vector<128x1xf32>
    %225 = vector.broadcast %215 : vector<128x1xf32> to vector<128x128xf32>
    %226 = arith.subf %209, %225 : vector<128x128xf32>
    %cst_74 = arith.constant 9.99999974E-6 : f32
    %227 = vector.broadcast %cst_74 : f32 to vector<128x1xf32>
    %228 = arith.addf %224, %227 : vector<128x1xf32>
    %229 = math.rsqrt %228 : vector<128x1xf32>
    %230 = vector.broadcast %229 : vector<128x1xf32> to vector<128x128xf32>
    %231 = arith.mulf %226, %230 : vector<128x128xf32>
    %232 = vector.broadcast %210 : vector<1x128xf32> to vector<128x128xf32>
    %233 = arith.mulf %231, %232 : vector<128x128xf32>
    %234 = vector.broadcast %211 : vector<1x128xf32> to vector<128x128xf32>
    %235 = arith.addf %233, %234 : vector<128x128xf32>
    %cst_75 = arith.constant 0.000000e+00 : f32
    %236 = vector.broadcast %cst_75 : f32 to vector<128x128xf32>
    %237 = arith.maximumf %235, %236 : vector<128x128xf32>
    %c0_76 = arith.constant 0 : index
    %c0_77 = arith.constant 0 : index
    %238 = vector.load %arg9[%c0_76, %c0_77] : memref<128x128xf32, #tpu.memory_space<vmem>>, vector<128x128xf32>
    tpu.vector_store %arg9[%c0_76, %c0_77], %237 {strides = array<i32>} : memref<128x128xf32, #tpu.memory_space<vmem>>, vector<128x128xf32>,
    return
  }
}

</mosaic_0001>

<bundles_post_ra>
// kernel: tpu_custom_call.1
= control target key start
LH: loop header
LB: loop body
LE: loop exit
PB: predicated region body
PF: predicated region fallthrough
CT: control target
= control target key end

     0   :  { %14 = vsyncpa [#allocation3], 0  ;;  %s6656_s0 = inlined_call_operand.hbm [shape: bf16[128,128], index: 0, kind: input, shape index: {}]   ;;  %s6657_s1 = inlined_call_operand.hbm [shape: bf16[128,128], index: 1, kind: input, shape index: {}]   ;;  %s6658_s2 = inlined_call_operand.vmem [shape: s32[1,128], index: 2, kind: input, shape index: {}]   ;;  %s6659_s3 = inlined_call_operand.hbm [shape: bf16[128,128], index: 3, kind: input, shape index: {}]   ;;  %s6660_s4 = inlined_call_operand.hbm [shape: bf16[128,128], index: 4, kind: input, shape index: {}]   ;;  %s6661_s5 = inlined_call_operand.vmem [shape: s32[1,128], index: 5, kind: input, shape index: {}]   ;;  %s6662_s6 = inlined_call_operand.hbm [shape: bf16[128,128], index: 6, kind: input, shape index: {}]   ;;  %s6663_s7 = inlined_call_operand.hbm [shape: bf16[1280,128], index: 7, kind: input, shape index: {}]   ;;  %s6664_s8 = inlined_call_operand.hbm [shape: f32[32,128], index: 8, kind: input, shape index: {}]   ;;  %s6665_s9 = inlined_call_operand.hbm [shape: f32[128,128], index: 9, kind: output, shape index: {}]  }
   0x1   :  { %15 = vsyncpa [#allocation6], 0 }
   0x2   :  { %16 = vsyncpa [#allocation9], 0 }
   0x3   :  { %17 = vsyncpa [#allocation12], 0 }
   0x4   :  { %18 = vsyncpa [#allocation4], 0  ;;  %s4936_s30 = smov [#allocation5]   ;;  %s4937_s11 = smov [#allocation8]  }
   0x5   :  { %s36_s10 = sshll.u32 %s4936_s30, 4  ;;  %s62_s12 = sshll.u32 %s4937_s11, 4  ;;  %s37_s10 = int_to_ptr.vmem [resolvable:$true] %s36_s10  ;;  %s63_s12 = int_to_ptr.vmem [resolvable:$true] %s62_s12 }
   0x6   :  { %s4774_s13 = scalar_lea.vmem %s37_s10, 1024  ;;  %p4779_p1 = scmp.lt.s32.totalorder %s37_s10, %s37_s10 }
   0x7   :  { %p4775_p0 = scmp.ne.s32.totalorder %s37_s10, %s4774_s13  ;;  %p4780_p2 = scmp.lt.s32.totalorder %s4774_s13, %s4774_s13 }
   0x9   :  { %p4781_p3 = por %p4780_p2, %p4779_p1 }
   0xb   :  { %p4782_p4 = pnand %p4781_p3, %p4775_p0 }
   0xd   :  { %4785 = shalt.err (!%p4782_p4)
}
   0xe   :  { %s4938_s14 = smov 64   ;;  %s4939_s15 = smov 4  }
   0xf   :  { %42 = dma.hbm_to_vmem [thread:$0]  %s6657_s1, 1024, %s37_s10, [#allocation6], %s4938_s14, %s4938_s14, %s4939_s15  }
  0x10   :  { %s4794_s18 = scalar_lea.vmem %s63_s12, 1024  ;;  %p4799_p6 = scmp.lt.s32.totalorder %s63_s12, %s63_s12 }
  0x11   :  { %p4795_p5 = scmp.ne.s32.totalorder %s63_s12, %s4794_s18  ;;  %p4800_p7 = scmp.lt.s32.totalorder %s4794_s18, %s4794_s18 }
  0x13   :  { %p4801_p8 = por %p4800_p7, %p4799_p6 }
  0x15   :  { %p4802_p9 = pnand %p4801_p8, %p4795_p5 }
  0x17   :  { %4805 = shalt.err (!%p4802_p9)
}
  0x18   :  { %68 = dma.hbm_to_vmem [thread:$0]  %s6660_s4, 1024, %s63_s12, [#allocation9], %s4938_s14, %s4938_s14, %s4939_s15  }
  0x19   :  { %s4940_s21 = smov [#allocation11]   ;;  %s4941_s23 = smov [#allocation2]  }
  0x1a   :  { %s88_s22 = sshll.u32 %s4940_s21, 4  ;;  %s24_s24 = sshll.u32 %s4941_s23, 4  ;;  %s89_s22 = int_to_ptr.vmem [resolvable:$true] %s88_s22  ;;  %s25_s24 = int_to_ptr.vmem [resolvable:$true] %s24_s24 }
  0x1b   :  { %s4814_s1 = scalar_lea.vmem %s89_s22, 10240  ;;  %p4819_p11 = scmp.lt.s32.totalorder %s89_s22, %s89_s22 }
  0x1c   :  { %p4815_p10 = scmp.ne.s32.totalorder %s89_s22, %s4814_s1  ;;  %p4820_p12 = scmp.lt.s32.totalorder %s4814_s1, %s4814_s1 }
  0x1e   :  { %p4821_p13 = por %p4820_p12, %p4819_p11 }
  0x20   :  { %p4822_p0 = pnand %p4821_p13, %p4815_p10 }
  0x22   :  { %4825 = shalt.err (!%p4822_p0)
}
  0x23   :  { %94 = dma.hbm_to_vmem [thread:$0]  %s6663_s7, 10240, %s89_s22, [#allocation12], %s4938_s14, %s4938_s14, %s4939_s15  }
  0x24   :  { %s4834_s4 = scalar_lea.vmem %s25_s24, 1024  ;;  %p4839_p2 = scmp.lt.s32.totalorder %s25_s24, %s25_s24 }
  0x25   :  { %p4835_p1 = scmp.ne.s32.totalorder %s25_s24, %s4834_s4  ;;  %p4840_p3 = scmp.lt.s32.totalorder %s4834_s4, %s4834_s4 }
  0x27   :  { %p4841_p4 = por %p4840_p3, %p4839_p2 }
  0x29   :  { %p4842_p5 = pnand %p4841_p4, %p4835_p1 }
  0x2b   :  { %4845 = shalt.err (!%p4842_p5)
}
  0x2c   :  { %30 = dma.hbm_to_vmem [thread:$0]  %s6656_s0, 1024, %s25_s24, [#allocation3], %s4938_s14, %s4938_s14, %s4939_s15  }
  0x2d   :  { %s4942_s29 = smov [#allocation7]   ;;  %s4943_s10 = smov [#allocation10]  }
  0x2e   :  { %s50_s30 = sshll.u32 %s4942_s29, 4  ;;  %s76_s11 = sshll.u32 %s4943_s10, 4  ;;  %s51_s30 = int_to_ptr.vmem [resolvable:$true] %s50_s30  ;;  %s77_s11 = int_to_ptr.vmem [resolvable:$true] %s76_s11 }
  0x2f   :  { %s4854_s7 = scalar_lea.vmem %s51_s30, 1024  ;;  %p4859_p7 = scmp.lt.s32.totalorder %s51_s30, %s51_s30 }
  0x30   :  { %p4855_p6 = scmp.ne.s32.totalorder %s51_s30, %s4854_s7  ;;  %p4860_p8 = scmp.lt.s32.totalorder %s4854_s7, %s4854_s7 }
  0x32   :  { %p4861_p9 = por %p4860_p8, %p4859_p7 }
  0x34   :  { %p4862_p10 = pnand %p4861_p9, %p4855_p6 }
  0x36   :  { %4865 = shalt.err (!%p4862_p10)
}
  0x37   :  { %56 = dma.hbm_to_vmem [thread:$0]  %s6659_s3, 1024, %s51_s30, [#allocation6], %s4938_s14, %s4938_s14, %s4939_s15  }
  0x38   :  { %s4874_s0 = scalar_lea.vmem %s77_s11, 1024  ;;  %p4879_p12 = scmp.lt.s32.totalorder %s77_s11, %s77_s11 }
  0x39   :  { %p4875_p11 = scmp.ne.s32.totalorder %s77_s11, %s4874_s0  ;;  %p4880_p13 = scmp.lt.s32.totalorder %s4874_s0, %s4874_s0 }
  0x3b   :  { %p4881_p0 = por %p4880_p13, %p4879_p12 }
  0x3d   :  { %p4882_p1 = pnand %p4881_p0, %p4875_p11 }
  0x3f   :  { %4885 = shalt.err (!%p4882_p1)
}
  0x40   :  { %82 = dma.hbm_to_vmem [thread:$0]  %s6662_s6, 1024, %s77_s11, [#allocation9], %s4938_s14, %s4938_s14, %s4939_s15  }
  0x41   :  { %s4944_s18 = smov [#allocation13]  }
  0x42   :  { %s100_s19 = sshll.u32 %s4944_s18, 4  ;;  %s101_s19 = int_to_ptr.vmem [resolvable:$true] %s100_s19 }
  0x43   :  { %s4894_s20 = scalar_lea.vmem %s101_s19, 512  ;;  %p4899_p3 = scmp.lt.s32.totalorder %s101_s19, %s101_s19 }
  0x44   :  { %p4895_p2 = scmp.ne.s32.totalorder %s101_s19, %s4894_s20  ;;  %p4900_p4 = scmp.lt.s32.totalorder %s4894_s20, %s4894_s20 }
  0x46   :  { %p4901_p5 = por %p4900_p4, %p4899_p3 }
  0x48   :  { %p4902_p6 = pnand %p4901_p5, %p4895_p2 }
  0x4a   :  { %4905 = shalt.err (!%p4902_p6)
}
  0x4b   :  { %s4945_s3 = smov 128   ;;  %s4946_s21 = smov 8  }
  0x4c   :  { %106 = dma.hbm_to_vmem [thread:$0]  %s6664_s8, 512, %s101_s19, [#allocation12], %s4945_s3, %s4945_s3, %s4946_s21  }
  0x4d   :  { %4926 = dma.done.wait [#allocation3], 1024  }
  0x4e   :  { %4927 = vsyncadd [#allocation3], 4294966272 }
  0x4f   :  { %4928 = dma.done.wait [#allocation6], 2048  }
  0x50   :  { %4929 = vsyncadd [#allocation6], 4294965248 }
  0x51   :  { %4930 = dma.done.wait [#allocation9], 2048  }
  0x52   :  { %4931 = vsyncadd [#allocation9], 4294965248 }
  0x53   :  { %4932 = dma.done.wait [#allocation12], 10752  }
  0x54   :  { %4933 = vsyncadd [#allocation12], 4294956544  ;;  %v4452_v0 = vld [vmem:[#allocation11 + $0x78] sm:$0xff]   ;;  %v4454_v2 = vld [vmem:[#allocation11 + $0x70] sm:$0xff]   ;;  %v290_v48 = vlaneseq }
  0x55   :  { %v4453_v1 = vld [vmem:[#allocation11 + $0x38] sm:$0xff]   ;;  %3991 = vmatprep.subr.bf16.mxu0 %v4452_v0  ;;  %v4455_v3 = vld [vmem:[#allocation11 + $0x30] sm:$0xff]   ;;  %v4456_v4 = vld [vmem:[#allocation11 + $0x68] sm:$0xff]  }
  0x56   :  { %3992 = vmatpush3.bf16.msra.mxu0 %v4453_v1  ;;  %v4457_v5 = vld [vmem:[#allocation11 + $0x28] sm:$0xff]   ;;  %v4458_v6 = vld [vmem:[#allocation11 + $0x60] sm:$0xff]   ;;  %v4460_v8 = vld [vmem:[#allocation11 + $0x58] sm:$0xff]   ;;  %v5057_v51 = vshrl.u32 %v290_v48, 7 }
  0x57   :  { %3993 = vmatprep.subr.bf16.mxu0 %v4454_v2  ;;  %v4459_v7 = vld [vmem:[#allocation11 + $0x20] sm:$0xff]   ;;  %v4461_v9 = vld [vmem:[#allocation11 + $0x18] sm:$0xff]   ;;  %v4462_v10 = vld [vmem:[#allocation11 + $0x50] sm:$0xff]  }
  0x58   :  { %v4468_v11 = vld [vmem:[#allocation2] sm:$0xff]   ;;  %v4463_v12 = vld [vmem:[#allocation11 + $0x10] sm:$0xff]   ;;  %v4464_v13 = vld [vmem:[#allocation11 + $0x48] sm:$0xff]   ;;  %6679 = vst [vmem:[#allocation20_spill] sm:$0xff] %v5057_v51  ;;  %v5060_v54 = vsub.s32 0, %v5057_v51 }
  0x59   :  { %422 = vmatprep.mubr.bf16.mxu0 %v4468_v11  ;;  %v4465_v14 = vld [vmem:[#allocation11 + $0x8] sm:$0xff]   ;;  %v4466_v15 = vld [vmem:[#allocation11 + $0x40] sm:$0xff]   ;;  %v4472_v20 = vld [vmem:[#allocation2 + $0x10] sm:$0xff]  }
  0x5a   :  { %3994 = vmatpush3.bf16.msra.mxu0 %v4455_v3  ;;  %v4467_v16 = vld [vmem:[#allocation11] sm:$0xff]   ;;  %v4470_v18 = vld [vmem:[#allocation2 + $0x8] sm:$0xff]   ;;  %v4473_v21 = vld [vmem:[#allocation5 + $0x10] sm:$0xff]   ;;  %6680 = vst [vmem:[#allocation21_spill] sm:$0xff] %v5060_v54 }
  0x5b   :  { %3995 = vmatprep.subr.bf16.mxu0 %v4456_v4  ;;  %v4469_v17 = vld [vmem:[#allocation5] sm:$0xff]   ;;  %v4471_v19 = vld [vmem:[#allocation5 + $0x8] sm:$0xff]   ;;  %v4474_v22 = vld [vmem:[#allocation2 + $0x18] sm:$0xff]  }
  0x5c   :  { %v4475_v23 = vld [vmem:[#allocation5 + $0x18] sm:$0xff]   ;;  %v4476_v24 = vld [vmem:[#allocation2 + $0x20] sm:$0xff]   ;;  %v4478_v26 = vld [vmem:[#allocation2 + $0x28] sm:$0xff]  }
  0x5d   :  { %v4477_v25 = vld [vmem:[#allocation5 + $0x20] sm:$0xff]   ;;  %v4479_v27 = vld [vmem:[#allocation5 + $0x28] sm:$0xff]   ;;  %v4480_v28 = vld [vmem:[#allocation2 + $0x30] sm:$0xff]  }
  0x5e   :  { %3996 = vmatpush3.bf16.msra.mxu0 %v4457_v5  ;;  %v4481_v29 = vld [vmem:[#allocation5 + $0x30] sm:$0xff]   ;;  %v4482_v30 = vld [vmem:[#allocation2 + $0x38] sm:$0xff]   ;;  %v5062_v55 = vld [vmem:[#allocation13] sm:$0xff] }
  0x5f   :  { %3997 = vmatprep.subr.bf16.mxu0 %v4458_v6  ;;  %v4483_v31 = vld [vmem:[#allocation5 + $0x38] sm:$0xff]   ;;  %v5066_v58 = vrot.slane %v5062_v55, %v5060_v54 }
  0x62   :  { %3998 = vmatpush3.bf16.msra.mxu0 %v4459_v7 }
  0x63   :  { %3999 = vmatprep.subr.bf16.mxu0 %v4460_v8 }
  0x66   :  { %4000 = vmatpush3.bf16.msra.mxu0 %v4461_v9 }
  0x67   :  { %4001 = vmatprep.subr.bf16.mxu0 %v4462_v10 }
  0x6a   :  { %4002 = vmatpush3.bf16.msra.mxu0 %v4463_v12 }
  0x6b   :  { %4003 = vmatprep.subr.bf16.mxu0 %v4464_v13 }
  0x6e   :  { %4004 = vmatpush3.bf16.msra.mxu0 %v4465_v14 }
  0x6f   :  { %4005 = vmatprep.subr.bf16.mxu0 %v4466_v15 }
  0x72   :  { %4006 = vmatpush3.bf16.msra.mxu0 %v4467_v16 }
  0x75   :  { %423 = vmatmul.mubr.bf16.vlgmr.msra.gmra.mxu0 %v4469_v17 }
  0x76   :  { %430 = vmatprep.mubr.bf16.mxu0 %v4470_v18 }
  0x7d   :  { %431 = vmatmul.mubr.bf16.gmra.mxu0 %v4471_v19 }
  0x7e   :  { %438 = vmatprep.mubr.bf16.mxu0 %v4472_v20 }
  0x85   :  { %439 = vmatmul.mubr.bf16.gmra.mxu0 %v4473_v21 }
  0x86   :  { %446 = vmatprep.mubr.bf16.mxu0 %v4474_v22 }
  0x8d   :  { %447 = vmatmul.mubr.bf16.gmra.mxu0 %v4475_v23 }
  0x8e   :  { %454 = vmatprep.mubr.bf16.mxu0 %v4476_v24 }
  0x95   :  { %455 = vmatmul.mubr.bf16.gmra.mxu0 %v4477_v25 }
  0x96   :  { %462 = vmatprep.mubr.bf16.mxu0 %v4478_v26 }
  0x9d   :  { %463 = vmatmul.mubr.bf16.gmra.mxu0 %v4479_v27 }
  0x9e   :  { %470 = vmatprep.mubr.bf16.mxu0 %v4480_v28 }
  0xa5   :  { %471 = vmatmul.mubr.bf16.gmra.mxu0 %v4481_v29 }
  0xa6   :  { %478 = vmatprep.mubr.bf16.mxu0 %v4482_v30 }
  0xad   :  { %479 = vmatmul.mubr.bf16.gmra.mxu0 %v4483_v31 }
 0x135   :  { %v4007_v32 = vpop.f32.mrf.mxu0 }
 0x137   :  { %v4008_v33 = vpop.f32.mrf.mxu0 }
 0x138   :  { %v5041_v34 = vadd.f32 %v4008_v33, %v4007_v32 }
 0x139   :  { %v4010_v35 = vpop.f32.mrf.mxu0 }
 0x13b   :  { %v4011_v36 = vpop.f32.mrf.mxu0 }
 0x13c   :  { %v5043_v37 = vadd.f32 %v4011_v36, %v4010_v35 }
 0x13d   :  { %v4013_v38 = vpop.f32.mrf.mxu0 }
 0x13f   :  { %v4014_v39 = vpop.f32.mrf.mxu0 }
 0x140   :  { %v5045_v40 = vadd.f32 %v4014_v39, %v4013_v38 }
 0x141   :  { %v4016_v41 = vpop.f32.mrf.mxu0 }
 0x143   :  { %v4017_v42 = vpop.f32.mrf.mxu0 }
 0x144   :  { %v5047_v43 = vadd.f32 %v4017_v42, %v4016_v41 }
 0x145   :  { %v5049_v44 = vpop.f32.mrf.mxu0 }
 0x147   :  { %v5051_v45 = vpop.f32.mrf.mxu0 }
 0x148   :  { %v4021_v38 = vadd.f32 %v5051_v45, %v5049_v44 }
 0x149   :  { %v5053_v46 = vpop.f32.mrf.mxu0 }
 0x14a   :  { %v5129_v42 = vadd.f32 %v4021_v38, %v5066_v58 }
 0x14b   :  { %v5055_v47 = vpop.f32.mrf.mxu0 }
 0x14c   :  { %v4024_v48 = vadd.f32 %v5055_v47, %v5053_v46  ;;  %v540_v45 = vmul.f32 %v5129_v42, %v5129_v42  ;;  %v5151_v47 = vadd.f32 %v5047_v43, %v5066_v58  ;;  %v5165_v43 = vadd.f32 %v5043_v37, %v5066_v58 }
 0x14d   :  { %v4025_v49 = vpop.f32.mrf.mxu0  ;;  %v6666_v37 = vmov 1.0|1.0  }
 0x14e   :  { %v5137_v44 = vadd.f32 %v4024_v48, %v5066_v58 }
 0x14f   :  { %v4026_v50 = vpop.f32.mrf.mxu0 }
 0x150   :  { %v4027_v30 = vadd.f32 %v4026_v50, %v4025_v49  ;;  %v5144_v50 = vadd.f32 %v5045_v40, %v5066_v58  ;;  %v541_v46 = vmul.f32 %v5137_v44, %v5137_v44  ;;  %v5158_v40 = vadd.f32 %v5041_v34, %v5066_v58 }
 0x151   :  { %v4028_v52 = vpop.f32.mrf.mxu0  ;;  %v537_v34 = vmul.f32 %v5165_v43, %v5165_v43 }
 0x152   :  { %v5115_v35 = vadd.f32 %v4027_v30, %v5066_v58 }
 0x153   :  { %v4029_v53 = vpop.f32.mrf.mxu0 }
 0x154   :  { %v4030_v31 = vadd.f32 %v4029_v53, %v4028_v52  ;;  %v542_v41 = vmul.f32 %v5115_v35, %v5115_v35  ;;  %v538_v52 = vmul.f32 %v5144_v50, %v5144_v50  ;;  %v539_v53 = vmul.f32 %v5151_v47, %v5151_v47 }
 0x155   :  { %v4031_v56 = vpop.f32.mrf.mxu0 }
 0x156   :  { %v5118_v36 = vadd.f32 %v4030_v31, %v5066_v58 }
 0x157   :  { %v4032_v57 = vpop.f32.mrf.mxu0 }
 0x158   :  { %v4033_v59 = vadd.f32 %v4032_v57, %v4031_v56  ;;  %v543_v49 = vmul.f32 %v5118_v36, %v5118_v36  ;;  %v536_v56 = vmul.f32 %v5158_v40, %v5158_v40  ;;  %v5173_v57 = vadd.s32 8, %v5057_v51 }
 0x159   :  { %v4034_v60 = vpop.f32.mrf.mxu0 }
 0x15a   :  { %v5069_v61 = vadd.f32 %v4033_v59, %v5066_v58  ;;  %v5178_v59 = vld [vmem:[%s6658_s2] ss:$0 sm:$0xff] }
 0x15b   :  { %v4035_v62 = vpop.f32.mrf.mxu0  ;;  %vm863_vm0 = vcmp.eq.s32.totalorder %v5057_v51, %v5178_v59  ;;  %vm864_vm1 = vcmp.eq.s32.totalorder %v5173_v57, %v5178_v59 }
 0x15c   :  { %v4036_v63 = vadd.f32 %v4035_v62, %v4034_v60  ;;  %503 = vadd.xlane.f32.xlu0 %v5069_v61  ;;  %v544_v2 = vmul.f32 %v5069_v61, %v5069_v61  ;;  %vm3854_vm2 = vmpackc.low %vm864_vm1, %vm863_vm0 }
 0x15d   :  { %v4037_v0 = vpop.f32.mrf.mxu0  ;;  %4327 = vmatprep.mubr.msk.bf16.mxu1 %vm3854_vm2, %v6666_v37 }
 0x15e   :  { %v5073_v1 = vadd.f32 %v4036_v63, %v5066_v58 }
 0x15f   :  { %v4038_v3 = vpop.f32.mrf.mxu0 }
 0x160   :  { %v4039_v4 = vadd.f32 %v4038_v3, %v4037_v0  ;;  %505 = vadd.xlane.f32.xlu1 %v5073_v1  ;;  %568 = vadd.xlane.f32.xlu0 %v544_v2  ;;  %v545_v7 = vmul.f32 %v5073_v1, %v5073_v1 }
 0x161   :  { %v4040_v5 = vpop.f32.mrf.mxu0 }
 0x162   :  { %v5079_v6 = vadd.f32 %v4039_v4, %v5066_v58 }
 0x163   :  { %v4041_v8 = vpop.f32.mrf.mxu0 }
 0x164   :  { %v4042_v9 = vadd.f32 %v4041_v8, %v4040_v5  ;;  %570 = vadd.xlane.f32.xlu1 %v545_v7  ;;  %507 = vadd.xlane.f32.xlu0 %v5079_v6  ;;  %v546_v12 = vmul.f32 %v5079_v6, %v5079_v6 }
 0x165   :  { %v4043_v10 = vpop.f32.mrf.mxu0 }
 0x166   :  { %v5085_v11 = vadd.f32 %v4042_v9, %v5066_v58 }
 0x167   :  { %v4044_v13 = vpop.f32.mrf.mxu0 }
 0x168   :  { %v4045_v14 = vadd.f32 %v4044_v13, %v4043_v10  ;;  %509 = vadd.xlane.f32.xlu1 %v5085_v11  ;;  %572 = vadd.xlane.f32.xlu0 %v546_v12  ;;  %v547_v17 = vmul.f32 %v5085_v11, %v5085_v11 }
 0x169   :  { %v4046_v15 = vpop.f32.mrf.mxu0 }
 0x16a   :  { %v5091_v16 = vadd.f32 %v4045_v14, %v5066_v58 }
 0x16b   :  { %v4047_v18 = vpop.f32.mrf.mxu0 }
 0x16c   :  { %v4048_v19 = vadd.f32 %v4047_v18, %v4046_v15  ;;  %574 = vadd.xlane.f32.xlu1 %v547_v17  ;;  %511 = vadd.xlane.f32.xlu0 %v5091_v16  ;;  %v548_v22 = vmul.f32 %v5091_v16, %v5091_v16 }
 0x16d   :  { %v4049_v20 = vpop.f32.mrf.mxu0 }
 0x16e   :  { %v5097_v21 = vadd.f32 %v4048_v19, %v5066_v58 }
 0x16f   :  { %v4050_v23 = vpop.f32.mrf.mxu0 }
 0x170   :  { %v4051_v24 = vadd.f32 %v4050_v23, %v4049_v20  ;;  %513 = vadd.xlane.f32.xlu1 %v5097_v21  ;;  %576 = vadd.xlane.f32.xlu0 %v548_v22  ;;  %v549_v27 = vmul.f32 %v5097_v21, %v5097_v21 }
 0x171   :  { %v4052_v25 = vpop.f32.mrf.mxu0 }
 0x172   :  { %v5103_v26 = vadd.f32 %v4051_v24, %v5066_v58 }
 0x173   :  { %v4053_v28 = vpop.f32.mrf.mxu0 }
 0x174   :  { %v4054_v29 = vadd.f32 %v4053_v28, %v4052_v25  ;;  %578 = vadd.xlane.f32.xlu1 %v549_v27  ;;  %515 = vadd.xlane.f32.xlu0 %v5103_v26  ;;  %v550_v33 = vmul.f32 %v5103_v26, %v5103_v26 }
 0x176   :  { %v5109_v32 = vadd.f32 %v4054_v29, %v5066_v58 }
 0x178   :  { %580 = vadd.xlane.f32.xlu1 %v550_v33  ;;  %517 = vadd.xlane.f32.xlu0 %v5109_v32  ;;  %v551_v39 = vmul.f32 %v5109_v32, %v5109_v32 }
 0x17c   :  { %501 = vadd.xlane.f32.xlu1 %v5118_v36  ;;  %499 = vadd.xlane.f32.xlu0 %v5115_v35 }
 0x180   :  { %582 = vadd.xlane.f32.xlu1 %v551_v39  ;;  %564 = vadd.xlane.f32.xlu0 %v542_v41 }
 0x184   :  { %566 = vadd.xlane.f32.xlu1 %v543_v49  ;;  %495 = vadd.xlane.f32.xlu0 %v5129_v42 }
 0x188   :  { %497 = vadd.xlane.f32.xlu1 %v5137_v44  ;;  %560 = vadd.xlane.f32.xlu0 %v540_v45 }
 0x18c   :  { %562 = vadd.xlane.f32.xlu1 %v541_v46  ;;  %491 = vadd.xlane.f32.xlu0 %v5144_v50 }
 0x190   :  { %493 = vadd.xlane.f32.xlu1 %v5151_v47  ;;  %556 = vadd.xlane.f32.xlu0 %v538_v52 }
 0x194   :  { %558 = vadd.xlane.f32.xlu1 %v539_v53  ;;  %487 = vadd.xlane.f32.xlu0 %v5158_v40 }
 0x198   :  { %489 = vadd.xlane.f32.xlu1 %v5165_v43  ;;  %552 = vadd.xlane.f32.xlu0 %v536_v56 }
 0x19c   :  { %554 = vadd.xlane.f32.xlu1 %v537_v34 }
 0x1e5   :  { %v504_v58 = vpop.xlane.xlu0 %503 }
 0x1e6   :  { %v5185_v7 = vmul.f32 0.0078125, %v504_v58 }
 0x1e8   :  { %v608_v14 = vmul.f32 %v5185_v7, %v5185_v7 }
 0x1e9   :  { %v506_v60 = vpop.xlane.xlu1 %505  ;;  %v569_v62 = vpop.xlane.xlu0 %568 }
 0x1ea   :  { %v592_v8 = vmul.f32 0.0078125, %v569_v62  ;;  %v5195_v18 = vmul.f32 0.0078125, %v506_v60 }
 0x1ec   :  { %v624_v19 = vsub.f32 %v592_v8, %v608_v14  ;;  %v609_v41 = vmul.f32 %v5195_v18, %v5195_v18 }
 0x1ed   :  { %v571_v63 = vpop.xlane.xlu1 %570  ;;  %v508_v0 = vpop.xlane.xlu0 %507 }
 0x1ee   :  { %v5197_v20 = vmul.f32 0.0078125, %v508_v0  ;;  %v593_v30 = vmul.f32 0.0078125, %v571_v63  ;;  %v640_v48 = vmax.f32 %v624_v19, 0.0 }
 0x1f0   :  { %v610_v52 = vmul.f32 %v5197_v20, %v5197_v20  ;;  %v625_v58 = vsub.f32 %v593_v30, %v609_v41  ;;  %v672_v0 = vadd.f32 1e-05, %v640_v48 }
 0x1f1   :  { %v510_v2 = vpop.xlane.xlu1 %509  ;;  %v573_v3 = vpop.xlane.xlu0 %572 }
 0x1f2   :  { %v5187_v12 = vmul.f32 0.0078125, %v510_v2  ;;  %v594_v33 = vmul.f32 0.0078125, %v573_v3  ;;  %4572 = vrsqrt.f32 %v672_v0 }
 0x1f4   :  { %v611_v25 = vmul.f32 %v5187_v12, %v5187_v12  ;;  %v626_v60 = vsub.f32 %v594_v33, %v610_v52 }
 0x1f5   :  { %v575_v4 = vpop.xlane.xlu1 %574  ;;  %v512_v5 = vpop.xlane.xlu0 %511 }
 0x1f6   :  { %v5193_v15 = vmul.f32 0.0078125, %v512_v5  ;;  %v595_v17 = vmul.f32 0.0078125, %v575_v4 }
 0x1f8   :  { %v612_v31 = vmul.f32 %v5193_v15, %v5193_v15  ;;  %v627_v38 = vsub.f32 %v595_v17, %v611_v25  ;;  %v642_v17 = vmax.f32 %v626_v60, 0.0 }
 0x1f9   :  { %v514_v9 = vpop.xlane.xlu1 %513  ;;  %v577_v10 = vpop.xlane.xlu0 %576 }
 0x1fa   :  { %v5189_v13 = vmul.f32 0.0078125, %v514_v9  ;;  %v596_v22 = vmul.f32 0.0078125, %v577_v10  ;;  %v643_v62 = vmax.f32 %v627_v38, 0.0  ;;  %v641_v10 = vmax.f32 %v625_v58, 0.0 }
 0x1fc   :  { %v613_v27 = vmul.f32 %v5189_v13, %v5189_v13  ;;  %v628_v49 = vsub.f32 %v596_v22, %v612_v31  ;;  %v675_v19 = vadd.f32 1e-05, %v643_v62  ;;  %v673_v33 = vadd.f32 1e-05, %v641_v10 }
 0x1fd   :  { %v579_v23 = vpop.xlane.xlu1 %578  ;;  %v516_v24 = vpop.xlane.xlu0 %515  ;;  %v5232_v10 = vsub.s32 1, %v5057_v51 }
 0x1fe   :  { %v597_v28 = vmul.f32 0.0078125, %v579_v23  ;;  %v5203_v29 = vmul.f32 0.0078125, %v516_v24  ;;  %v644_v2 = vmax.f32 %v628_v49, 0.0 }
 0x200   :  { %v629_v39 = vsub.f32 %v597_v28, %v613_v27  ;;  %v614_v56 = vmul.f32 %v5203_v29, %v5203_v29  ;;  %v676_v23 = vadd.f32 1e-05, %v644_v2 }
 0x201   :  { %v581_v45 = vpop.xlane.xlu1 %580  ;;  %v518_v46 = vpop.xlane.xlu0 %517 }
 0x202   :  { %v645_v53 = vmax.f32 %v629_v39, 0.0  ;;  %v598_v34 = vmul.f32 0.0078125, %v581_v45  ;;  %v5213_v3 = vmul.f32 0.0078125, %v518_v46  ;;  %v674_v39 = vadd.f32 1e-05, %v642_v17 }
 0x203   :  { %v5235_v17 = vsub.s32 2, %v5057_v51 }
 0x204   :  { %v630_v63 = vsub.f32 %v598_v34, %v614_v56  ;;  %v677_v8 = vadd.f32 1e-05, %v645_v53  ;;  %v615_v24 = vmul.f32 %v5213_v3, %v5213_v3 }
 0x205   :  { %v502_v4 = vpop.xlane.xlu1 %501  ;;  %v500_v5 = vpop.xlane.xlu0 %499 }
 0x206   :  { %v646_v9 = vmax.f32 %v630_v63, 0.0  ;;  %v5215_v14 = vmul.f32 0.0078125, %v500_v5  ;;  %4574 = vrsqrt.f32 %v677_v8  ;;  %v5219_v28 = vmul.f32 0.0078125, %v502_v4 }
 0x208   :  { %v678_v22 = vadd.f32 1e-05, %v646_v9  ;;  %v606_v38 = vmul.f32 %v5215_v14, %v5215_v14  ;;  %v607_v46 = vmul.f32 %v5219_v28, %v5219_v28 }
 0x209   :  { %v583_v25 = vpop.xlane.xlu1 %582  ;;  %v565_v27 = vpop.xlane.xlu0 %564 }
 0x20a   :  { %v599_v30 = vmul.f32 0.0078125, %v583_v25  ;;  %v590_v31 = vmul.f32 0.0078125, %v565_v27  ;;  %4576 = vrsqrt.f32 %v678_v22 }
 0x20b   :  { %4578 = vrsqrt.f32 %v675_v19 }
 0x20c   :  { %v631_v41 = vsub.f32 %v599_v30, %v615_v24  ;;  %4580 = vrsqrt.f32 %v676_v23  ;;  %v622_v48 = vsub.f32 %v590_v31, %v606_v38  ;;  %v4573_v24 = vpop.eup %4572 }
 0x20d   :  { %v567_v49 = vpop.xlane.xlu1 %566  ;;  %v496_v45 = vpop.xlane.xlu0 %495  ;;  %4582 = vrsqrt.f32 %v673_v33 }
 0x20e   :  { %v647_v52 = vmax.f32 %v631_v41, 0.0  ;;  %v591_v53 = vmul.f32 0.0078125, %v567_v49  ;;  %v5225_v56 = vmul.f32 0.0078125, %v496_v45  ;;  %4584 = vrsqrt.f32 %v674_v39 }
 0x20f   :  { %v638_v60 = vmax.f32 %v622_v48, 0.0  ;;  %v656_v39 = vsub.f32 %v5069_v61, %v5185_v7  ;;  %v5245_v48 = vrot.slane %v5062_v55, %v5232_v10  ;;  %v5249_v49 = vrot.slane %v5062_v55, %v5235_v17 }
 0x210   :  { %v679_v34 = vadd.f32 1e-05, %v647_v52  ;;  %v623_v58 = vsub.f32 %v591_v53, %v607_v46  ;;  %v604_v62 = vmul.f32 %v5225_v56, %v5225_v56  ;;  %v661_v46 = vsub.f32 %v5097_v21, %v5189_v13 }
 0x211   :  { %v498_v63 = vpop.xlane.xlu1 %497  ;;  %v561_v0 = vpop.xlane.xlu0 %560  ;;  %v670_v19 = vadd.f32 1e-05, %v638_v60  ;;  %v662_v52 = vsub.f32 %v5103_v26, %v5203_v29  ;;  %v660_v21 = vsub.f32 %v5091_v16, %v5193_v15 }
 0x212   :  { %4586 = vrsqrt.f32 %v679_v34  ;;  %v639_v2 = vmax.f32 %v623_v58, 0.0  ;;  %v5229_v4 = vmul.f32 0.0078125, %v498_v63  ;;  %v588_v5 = vmul.f32 0.0078125, %v561_v0 }
 0x213   :  { %v4575_v33 = vpop.eup %4574  ;;  %v659_v63 = vsub.f32 %v5085_v11, %v5187_v12  ;;  %v657_v0 = vsub.f32 %v5073_v1, %v5195_v18 }
 0x214   :  { %v671_v8 = vadd.f32 1e-05, %v639_v2  ;;  %v620_v9 = vsub.f32 %v588_v5, %v604_v62  ;;  %v605_v25 = vmul.f32 %v5229_v4, %v5229_v4  ;;  %v709_v26 = vmul.f32 %v4575_v33, %v661_v46 }
 0x215   :  { %v563_v22 = vpop.xlane.xlu1 %562  ;;  %v492_v23 = vpop.xlane.xlu0 %491  ;;  %v658_v2 = vsub.f32 %v5079_v6, %v5197_v20  ;;  %v663_v6 = vsub.f32 %v5109_v32, %v5213_v3 }
 0x216   :  { %v636_v27 = vmax.f32 %v620_v9, 0.0  ;;  %v589_v30 = vmul.f32 0.0078125, %v563_v22  ;;  %v5239_v31 = vmul.f32 0.0078125, %v492_v23  ;;  %4588 = vrsqrt.f32 %v671_v8 }
 0x217   :  { %v4577_v38 = vpop.eup %4576  ;;  %4590 = vrsqrt.f32 %v670_v19  ;;  %v729_v20 = vmul.f32 %v5245_v48, %v709_v26 }
 0x218   :  { %v621_v41 = vsub.f32 %v589_v30, %v605_v25  ;;  %v4579_v45 = vpop.eup %4578  ;;  %v668_v53 = vadd.f32 1e-05, %v636_v27  ;;  %v602_v60 = vmul.f32 %v5239_v31, %v5239_v31  ;;  %v710_v13 = vmul.f32 %v4577_v38, %v662_v52 }
 0x219   :  { %v494_v34 = vpop.xlane.xlu1 %493  ;;  %v557_v61 = vpop.xlane.xlu0 %556  ;;  %v707_v16 = vmul.f32 %v4579_v45, %v659_v63  ;;  %v655_v63 = vsub.f32 %v5118_v36, %v5219_v28 }
 0x21a   :  { %v4581_v7 = vpop.eup %4580  ;;  %v637_v58 = vmax.f32 %v621_v41, 0.0  ;;  %v5257_v62 = vmul.f32 0.0078125, %v494_v34  ;;  %v586_v55 = vmul.f32 0.0078125, %v557_v61  ;;  %4592 = vrsqrt.f32 %v668_v53 }
 0x21b   :  { %v4583_v29 = vpop.eup %4582  ;;  %v708_v22 = vmul.f32 %v4581_v7, %v660_v21  ;;  %v730_v18 = vmul.f32 %v5245_v48, %v710_v13  ;;  %v704_v41 = vmul.f32 %v4573_v24, %v656_v39  ;;  %v727_v61 = vmul.f32 %v5245_v48, %v707_v16 }
 0x21c   :  { %v669_v5 = vadd.f32 1e-05, %v637_v58  ;;  %v618_v8 = vsub.f32 %v586_v55, %v602_v60  ;;  %v4585_v9 = vpop.eup %4584  ;;  %v603_v19 = vmul.f32 %v5257_v62, %v5257_v62  ;;  %v705_v27 = vmul.f32 %v4583_v29, %v657_v0 }
 0x21d   :  { %v559_v11 = vpop.xlane.xlu1 %558  ;;  %v488_v12 = vpop.xlane.xlu0 %487  ;;  %v706_v38 = vmul.f32 %v4585_v9, %v658_v2  ;;  %v728_v34 = vmul.f32 %v5245_v48, %v708_v22  ;;  %v750_v60 = vadd.f32 %v5249_v49, %v730_v18  ;;  %v749_v24 = vadd.f32 %v5249_v49, %v729_v20 }
 0x21e   :  { %4594 = vrsqrt.f32 %v669_v5  ;;  %v634_v15 = vmax.f32 %v618_v8, 0.0  ;;  %v587_v23 = vmul.f32 0.0078125, %v559_v11  ;;  %v5269_v25 = vmul.f32 0.0078125, %v488_v12 }
 0x21f   :  { %v4587_v1 = vpop.eup %4586  ;;  %v725_v39 = vmul.f32 %v5245_v48, %v705_v27  ;;  %v654_v21 = vsub.f32 %v5115_v35, %v5215_v14  ;;  %v748_v2 = vadd.f32 %v5249_v49, %v728_v34  ;;  %v726_v5 = vmul.f32 %v5245_v48, %v706_v38 }
 0x220   :  { %v666_v30 = vadd.f32 1e-05, %v634_v15  ;;  %v619_v33 = vsub.f32 %v587_v23, %v603_v19  ;;  %v600_v45 = vmul.f32 %v5269_v25, %v5269_v25  ;;  %v711_v53 = vmul.f32 %v4587_v1, %v663_v6 }
 0x221   :  { %v490_v46 = vpop.xlane.xlu1 %489  ;;  %v553_v52 = vpop.xlane.xlu0 %552  ;;  %v747_v8 = vadd.f32 %v5249_v49, %v727_v61  ;;  %v766_v11 = vmax.f32 %v750_v60, 0.0  ;;  %v765_v14 = vmax.f32 %v749_v24, 0.0  ;;  %v724_v15 = vmul.f32 %v5245_v48, %v704_v41 }
 0x222   :  { %4596 = vrsqrt.f32 %v666_v30  ;;  %v635_v32 = vmax.f32 %v619_v33, 0.0  ;;  %v5279_v3 = vmul.f32 0.0078125, %v490_v46  ;;  %v584_v7 = vmul.f32 0.0078125, %v553_v52 }
 0x223   :  { %v731_v58 = vmul.f32 %v5245_v48, %v711_v53  ;;  %v4589_v55 = vpop.eup %4588  ;;  %v764_v1 = vmax.f32 %v748_v2, 0.0  ;;  %v746_v6 = vadd.f32 %v5249_v49, %v726_v5  ;;  %v653_v27 = vsub.f32 %v5137_v44, %v5229_v4 }
 0x224   :  { %v667_v13 = vadd.f32 1e-05, %v635_v32  ;;  %v616_v26 = vsub.f32 %v584_v7, %v600_v45  ;;  %v4591_v9 = vpop.eup %4590  ;;  %v601_v19 = vmul.f32 %v5279_v3, %v5279_v3  ;;  %v703_v12 = vmul.f32 %v4589_v55, %v655_v63 }
 0x225   :  { %v555_v29 = vpop.xlane.xlu1 %554  ;;  %v751_v0 = vadd.f32 %v5249_v49, %v731_v58  ;;  %v702_v18 = vmul.f32 %v4591_v9, %v654_v21  ;;  %v745_v33 = vadd.f32 %v5249_v49, %v725_v39  ;;  %v652_v45 = vsub.f32 %v5129_v42, %v5225_v56 }
 0x226   :  { %4598 = vrsqrt.f32 %v667_v13  ;;  %v632_v36 = vmax.f32 %v616_v26, 0.0  ;;  %v585_v28 = vmul.f32 0.0078125, %v555_v29  ;;  %v839_v46 = vpack.c.bf16 %v765_v14, %v764_v1 }
 0x227   :  { %v767_v35 = vmax.f32 %v751_v0, 0.0  ;;  %v4593_v20 = vpop.eup %4592  ;;  %v763_v41 = vmax.f32 %v747_v8, 0.0  ;;  %v723_v52 = vmul.f32 %v5245_v48, %v703_v12  ;;  %v762_v61 = vmax.f32 %v746_v6, 0.0 }
 0x228   :  { %v664_v22 = vadd.f32 1e-05, %v632_v36  ;;  %v617_v16 = vsub.f32 %v585_v28, %v601_v19  ;;  %v744_v44 = vadd.f32 %v5249_v49, %v724_v15  ;;  %v722_v4 = vmul.f32 %v5245_v48, %v702_v18 }
 0x229   :  { %v840_v23 = vpack.c.bf16 %v767_v35, %v766_v11  ;;  %v700_v32 = vmul.f32 %v4593_v20, %v652_v45  ;;  %v761_v7 = vmax.f32 %v745_v33, 0.0  ;;  %v650_v42 = vsub.f32 %v5144_v50, %v5239_v31  ;;  %v4485_v45 = vld [vmem:[#allocation11 + $0xb8] sm:$0xff]  }
 0x22a   :  { %4600 = vrsqrt.f32 %v664_v22  ;;  %v633_v30 = vmax.f32 %v617_v16, 0.0  ;;  %v838_v56 = vpack.c.bf16 %v763_v41, %v762_v61  ;;  %v743_v60 = vadd.f32 %v5249_v49, %v723_v52  ;;  %v4486_v52 = vld [vmem:[#allocation11 + $0xf0] sm:$0xff]  }
 0x22b   :  { %v4595_v38 = vpop.eup %4594  ;;  %4311 = vmatprep.subr.bf16.mxu1 %v840_v23  ;;  %v760_v39 = vmax.f32 %v744_v44, 0.0  ;;  %v742_v55 = vadd.f32 %v5249_v49, %v722_v4  ;;  %v720_v63 = vmul.f32 %v5245_v48, %v700_v32  ;;  %v651_v13 = vsub.f32 %v5151_v47, %v5257_v62  ;;  %v4487_v61 = vld [vmem:[#allocation11 + $0xb0] sm:$0xff]   ;;  %v4488_v44 = vld [vmem:[#allocation11 + $0xe8] sm:$0xff]  }
 0x22c   :  { %v665_v53 = vadd.f32 1e-05, %v633_v30  ;;  %4312 = vmatpush3.bf16.msra.mxu1 %v840_v23  ;;  %v701_v34 = vmul.f32 %v4595_v38, %v653_v27  ;;  %v759_v0 = vmax.f32 %v743_v60, 0.0  ;;  %v648_v9 = vsub.f32 %v5158_v40, %v5269_v25  ;;  %v4489_v4 = vld [vmem:[#allocation11 + $0xa8] sm:$0xff]   ;;  %v4491_v60 = vld [vmem:[#allocation11 + $0xa0] sm:$0xff]  }
 0x22d   :  { %4313 = vmatprep.subr.bf16.mxu1 %v839_v46  ;;  %v837_v29 = vpack.c.bf16 %v761_v7, %v760_v39  ;;  %v758_v2 = vmax.f32 %v742_v55, 0.0  ;;  %v740_v5 = vadd.f32 %v5249_v49, %v720_v63  ;;  %v649_v12 = vsub.f32 %v5165_v43, %v5279_v3  ;;  %v4493_v39 = vld [vmem:[#allocation11 + $0x98] sm:$0xff]  }
 0x22e   :  { %4602 = vrsqrt.f32 %v665_v53  ;;  %v721_v24 = vmul.f32 %v5245_v48, %v701_v34  ;;  %v5328_v43 = vadd.s32 16, %v5057_v51  ;;  %v5331_v3 = vadd.s32 24, %v5057_v51 }
 0x22f   :  { %v4597_v58 = vpop.eup %4596  ;;  %v836_v47 = vpack.c.bf16 %v759_v0, %v758_v2  ;;  %v756_v35 = vmax.f32 %v740_v5, 0.0  ;;  %v5334_v33 = vadd.s32 32, %v5057_v51  ;;  %v5351_v41 = vadd.s32 56, %v5057_v51  ;;  %v4498_v0 = vld [vmem:[#allocation11 + $0xc0] sm:$0xff]  }
 0x230   :  { %4314 = vmatpush3.bf16.msra.mxu1 %v839_v46  ;;  %v698_v21 = vmul.f32 %v4597_v58, %v650_v42  ;;  %v741_v50 = vadd.f32 %v5249_v49, %v721_v24  ;;  %vm865_vm3 = vcmp.eq.s32.totalorder %v5328_v43, %v5178_v59  ;;  %vm866_vm4 = vcmp.eq.s32.totalorder %v5331_v3, %v5178_v59  ;;  %v4490_v58 = vld [vmem:[#allocation11 + $0xe0] sm:$0xff]   ;;  %v4492_v24 = vld [vmem:[#allocation11 + $0xd8] sm:$0xff]  }
 0x231   :  { %4315 = vmatprep.subr.bf16.mxu1 %v838_v56  ;;  %vm867_vm5 = vcmp.eq.s32.totalorder %v5334_v33, %v5178_v59  ;;  %vm3856_vm7 = vmpackc.low %vm866_vm4, %vm865_vm3  ;;  %v5348_v46 = vadd.s32 48, %v5057_v51  ;;  %v5354_v53 = vadd.s32 64, %v5057_v51  ;;  %v5357_v34 = vadd.s32 72, %v5057_v51 }
 0x232   :  { %v718_v8 = vmul.f32 %v5245_v48, %v698_v21  ;;  %v757_v62 = vmax.f32 %v741_v50, 0.0  ;;  %vm870_vm10 = vcmp.eq.s32.totalorder %v5351_v41, %v5178_v59  ;;  %v5370_v32 = vadd.s32 80, %v5057_v51  ;;  %v4494_v21 = vld [vmem:[#allocation11 + $0xd0] sm:$0xff]   ;;  %v4499_v50 = vld [vmem:[#allocation11 + $0x80] sm:$0xff]  }
 0x233   :  { %v4599_v26 = vpop.eup %4598  ;;  %vm869_vm9 = vcmp.eq.s32.totalorder %v5348_v46, %v5178_v59  ;;  %vm871_vm11 = vcmp.eq.s32.totalorder %v5354_v53, %v5178_v59  ;;  %vm872_vm12 = vcmp.eq.s32.totalorder %v5357_v34, %v5178_v59  ;;  %v5373_v7 = vadd.s32 88, %v5057_v51 }
 0x234   :  { %4316 = vmatpush3.bf16.msra.mxu1 %v838_v56  ;;  %v699_v31 = vmul.f32 %v4599_v26, %v651_v13  ;;  %v738_v14 = vadd.f32 %v5249_v49, %v718_v8  ;;  %v835_v40 = vpack.c.bf16 %v757_v62, %v756_v35  ;;  %vm3860_vm13 = vmpackc.low %vm870_vm10, %vm869_vm9  ;;  %v5376_v42 = vadd.s32 96, %v5057_v51  ;;  %v4495_v13 = vld [vmem:[#allocation11 + $0x90] sm:$0xff]   ;;  %v4496_v26 = vld [vmem:[#allocation11 + $0xc8] sm:$0xff]  }
 0x235   :  { %4317 = vmatprep.subr.bf16.mxu1 %v837_v29  ;;  %vm3862_vm14 = vmpackc.low %vm872_vm12, %vm871_vm11  ;;  %6681 = vst [vmem:[#allocation22_spill] sm:$0xff] %v5373_v7  ;;  %v5379_v56 = vadd.s32 104, %v5057_v51  ;;  %vm873_vm15 = vcmp.eq.s32.totalorder %v5370_v32, %v5178_v59  ;;  %vm874_vm0 = vcmp.eq.s32.totalorder %v5373_v7, %v5178_v59  ;;  %v5392_v55 = vadd.s32 112, %v5057_v51 }
 0x236   :  { %v719_v19 = vmul.f32 %v5245_v48, %v699_v31  ;;  %v754_v23 = vmax.f32 %v738_v14, 0.0  ;;  %6682 = vst [vmem:[#allocation23_spill] sm:$0xff] %v5376_v42  ;;  %vm875_vm1 = vcmp.eq.s32.totalorder %v5376_v42, %v5178_v59  ;;  %vm3864_vm3 = vmpackc.low %vm874_vm0, %vm873_vm15  ;;  %v5395_v63 = vadd.s32 120, %v5057_v51 }
 0x237   :  { %v4601_v36 = vpop.eup %4600  ;;  %6683 = vst [vmem:[#allocation24_spill] sm:$0xff] %v5379_v56  ;;  %vm876_vm2 = vcmp.eq.s32.totalorder %v5379_v56, %v5178_v59  ;;  %6684 = vst [vmem:[#allocation25_spill] sm:$0xff] %v5392_v55 }
 0x238   :  { %4318 = vmatpush3.bf16.msra.mxu1 %v837_v29  ;;  %v739_v28 = vadd.f32 %v5249_v49, %v719_v19  ;;  %v696_v11 = vmul.f32 %v4601_v36, %v648_v9  ;;  %vm3866_vm4 = vmpackc.low %vm876_vm2, %vm875_vm1  ;;  %6685 = vst [vmem:[#allocation26_spill] sm:$0xff] %v5395_v63  ;;  %v4497_v29 = vld [vmem:[#allocation11 + $0x88] sm:$0xff]   ;;  %v4500_v9 = vld [vmem:[#allocation7] sm:$0xff]  }
 0x239   :  { %4319 = vmatprep.subr.bf16.mxu1 %v836_v47 }
 0x23a   :  { %v716_v22 = vmul.f32 %v5245_v48, %v696_v11  ;;  %v755_v25 = vmax.f32 %v739_v28, 0.0  ;;  %v4501_v11 = vld [vmem:[#allocation7 + $0x8] sm:$0xff]  }
 0x23b   :  { %v4603_v16 = vpop.eup %4602 }
 0x23c   :  { %4320 = vmatpush3.bf16.msra.mxu1 %v836_v47  ;;  %v697_v15 = vmul.f32 %v4603_v16, %v649_v12  ;;  %v736_v6 = vadd.f32 %v5249_v49, %v716_v22  ;;  %v834_v18 = vpack.c.bf16 %v755_v25, %v754_v23  ;;  %v4502_v22 = vld [vmem:[#allocation7 + $0x10] sm:$0xff]  }
 0x23d   :  { %4321 = vmatprep.subr.bf16.mxu1 %v835_v40 }
 0x23e   :  { %v717_v1 = vmul.f32 %v5245_v48, %v697_v15  ;;  %v752_v27 = vmax.f32 %v736_v6, 0.0  ;;  %v5337_v48 = vadd.s32 40, %v5057_v51  ;;  %v4503_v15 = vld [vmem:[#allocation7 + $0x18] sm:$0xff]  }
 0x240   :  { %4322 = vmatpush3.bf16.msra.mxu1 %v835_v40  ;;  %v737_v20 = vadd.f32 %v5249_v49, %v717_v1  ;;  %v4484_v49 = vld [vmem:[#allocation11 + $0xf8] sm:$0xff]   ;;  %vm868_vm6 = vcmp.eq.s32.totalorder %v5337_v48, %v5178_v59 }
 0x241   :  { %4323 = vmatprep.subr.bf16.mxu1 %v834_v18  ;;  %vm3858_vm8 = vmpackc.low %vm868_vm6, %vm867_vm5  ;;  %vm877_vm5 = vcmp.eq.s32.totalorder %v5392_v55, %v5178_v59  ;;  %vm878_vm6 = vcmp.eq.s32.totalorder %v5395_v63, %v5178_v59 }
 0x242   :  { %v753_v30 = vmax.f32 %v737_v20, 0.0 }
 0x244   :  { %4324 = vmatpush3.bf16.msra.mxu1 %v834_v18  ;;  %v833_v38 = vpack.c.bf16 %v753_v30, %v752_v27  ;;  %v4504_v18 = vld [vmem:[#allocation7 + $0x20] sm:$0xff]  }
 0x246   :  { %4325 = vmatprep.subr.bf16.mxu1 %v833_v38 }
 0x248   :  { %4326 = vmatpush3.bf16.msra.mxu1 %v833_v38  ;;  %v4505_v38 = vld [vmem:[#allocation7 + $0x28] sm:$0xff]  }
 0x249   :  { %4071 = vmatprep.subr.bf16.mxu1 %v4484_v49 }
 0x24b   :  { %4328 = vmatmul.mubr.msk.bf16.vlgmr.msra.gmra.mxu1 %vm3856_vm7, %v6666_v37  ;;  %vm3868_vm7 = vmpackc.low %vm878_vm6, %vm877_vm5 }
 0x24c   :  { %4331 = vmatprep.mubr.msk.bf16.mxu1 %vm3858_vm8, %v6666_v37  ;;  %4072 = vmatpush3.bf16.msra.mxu1 %v4485_v45  ;;  %v4506_v45 = vld [vmem:[#allocation7 + $0x30] sm:$0xff]  }
 0x24d   :  { %4073 = vmatprep.subr.bf16.mxu1 %v4486_v52 }
 0x250   :  { %4074 = vmatpush3.bf16.msra.mxu1 %v4487_v61  ;;  %v4507_v61 = vld [vmem:[#allocation7 + $0x38] sm:$0xff]  }
 0x251   :  { %4075 = vmatprep.subr.bf16.mxu1 %v4488_v44  ;;  %v5404_v44 = vld [vmem:[#allocation13 + $0x8] sm:$0xff] }
 0x253   :  { %4332 = vmatmul.mubr.msk.bf16.gmra.mxu1 %vm3860_vm13, %v6666_v37 }
 0x254   :  { %4335 = vmatprep.mubr.msk.bf16.mxu1 %vm3862_vm14, %v6666_v37  ;;  %4076 = vmatpush3.bf16.msra.mxu1 %v4489_v4 }
 0x255   :  { %4077 = vmatprep.subr.bf16.mxu1 %v4490_v58  ;;  %v5408_v58 = vrot.slane %v5404_v44, %v5060_v54 }
 0x258   :  { %4078 = vmatpush3.bf16.msra.mxu1 %v4491_v60 }
 0x259   :  { %4079 = vmatprep.subr.bf16.mxu1 %v4492_v24 }
 0x25b   :  { %4336 = vmatmul.mubr.msk.bf16.gmra.mxu1 %vm3864_vm3, %v6666_v37 }
 0x25c   :  { %4339 = vmatprep.mubr.msk.bf16.mxu1 %vm3866_vm4, %v6666_v37  ;;  %4080 = vmatpush3.bf16.msra.mxu1 %v4493_v39 }
 0x25d   :  { %4081 = vmatprep.subr.bf16.mxu1 %v4494_v21 }
 0x260   :  { %4082 = vmatpush3.bf16.msra.mxu1 %v4495_v13 }
 0x261   :  { %4083 = vmatprep.subr.bf16.mxu1 %v4496_v26 }
 0x263   :  { %4340 = vmatmul.mubr.msk.bf16.gmra.mxu1 %vm3868_vm7, %v6666_v37 }
 0x264   :  { %4084 = vmatpush3.bf16.msra.mxu1 %v4497_v29 }
 0x265   :  { %4085 = vmatprep.subr.bf16.mxu1 %v4498_v0 }
 0x268   :  { %4086 = vmatpush3.bf16.msra.mxu1 %v4499_v50 }
 0x30b   :  { %v4329_v31 = vpop.f32.mrf.mxu1 }
 0x30d   :  { %v953_v2 = vpop.f32.mrf.mxu1 }
 0x30f   :  { %v4330_v5 = vpop.f32.mrf.mxu1 }
 0x310   :  { %v1017_v36 = vpack.c.bf16 %v4330_v5, %v4329_v31 }
 0x311   :  { %v956_v8 = vpop.f32.mrf.mxu1 }
 0x312   :  { %v1016_v19 = vpack.c.bf16 %v956_v8, %v953_v2 }
 0x313   :  { %v4333_v59 = vpop.f32.mrf.mxu1 }
 0x314   :  { %1204 = vmatprep.mubr.bf16.mxu1 %v1016_v19 }
 0x315   :  { %1205 = vmatmul.mubr.bf16.vlgmr.msra.gmra.mxu1 %v4500_v9  ;;  %v969_v47 = vpop.f32.mrf.mxu1 }
 0x316   :  { %1212 = vmatprep.mubr.bf16.mxu1 %v1017_v36 }
 0x317   :  { %v4334_v62 = vpop.f32.mrf.mxu1 }
 0x318   :  { %v1019_v40 = vpack.c.bf16 %v4334_v62, %v4333_v59 }
 0x319   :  { %v972_v28 = vpop.f32.mrf.mxu1 }
 0x31a   :  { %v1018_v35 = vpack.c.bf16 %v972_v28, %v969_v47 }
 0x31b   :  { %v4337_v14 = vpop.f32.mrf.mxu1 }
 0x31d   :  { %1213 = vmatmul.mubr.bf16.gmra.mxu1 %v4501_v11  ;;  %v985_v12 = vpop.f32.mrf.mxu1 }
 0x31e   :  { %1220 = vmatprep.mubr.bf16.mxu1 %v1018_v35 }
 0x31f   :  { %v4338_v16 = vpop.f32.mrf.mxu1 }
 0x320   :  { %v1021_v27 = vpack.c.bf16 %v4338_v16, %v4337_v14 }
 0x321   :  { %v988_v25 = vpop.f32.mrf.mxu1 }
 0x322   :  { %v1020_v23 = vpack.c.bf16 %v988_v25, %v985_v12 }
 0x323   :  { %v4341_v1 = vpop.f32.mrf.mxu1 }
 0x325   :  { %1221 = vmatmul.mubr.bf16.gmra.mxu1 %v4502_v22  ;;  %v1001_v6 = vpop.f32.mrf.mxu1 }
 0x326   :  { %1228 = vmatprep.mubr.bf16.mxu1 %v1019_v40 }
 0x327   :  { %v4342_v20 = vpop.f32.mrf.mxu1 }
 0x328   :  { %v1023_v52 = vpack.c.bf16 %v4342_v20, %v4341_v1 }
 0x329   :  { %v1004_v30 = vpop.f32.mrf.mxu1 }
 0x32a   :  { %v1022_v49 = vpack.c.bf16 %v1004_v30, %v1001_v6 }
 0x32d   :  { %1229 = vmatmul.mubr.bf16.gmra.mxu1 %v4503_v15 }
 0x32e   :  { %1236 = vmatprep.mubr.bf16.mxu1 %v1020_v23 }
 0x335   :  { %1237 = vmatmul.mubr.bf16.gmra.mxu1 %v4504_v18 }
 0x336   :  { %1244 = vmatprep.mubr.bf16.mxu1 %v1021_v27 }
 0x33d   :  { %1245 = vmatmul.mubr.bf16.gmra.mxu1 %v4505_v38  ;;  %v4508_v38 = vld [vmem:[#allocation11 + $0x138] sm:$0xff]  }
 0x33e   :  { %1252 = vmatprep.mubr.bf16.mxu1 %v1022_v49  ;;  %4343 = vmatprep.subr.bf16.mxu0 %v4508_v38 }
 0x33f   :  { %4344 = vmatpush3.bf16.msra.mxu0 %v4508_v38 }
 0x345   :  { %1253 = vmatmul.mubr.bf16.gmra.mxu1 %v4506_v45 }
 0x346   :  { %1260 = vmatprep.mubr.bf16.mxu1 %v1023_v52 }
 0x34d   :  { %1261 = vmatmul.mubr.bf16.gmra.mxu1 %v4507_v61 }
 0x3d5   :  { %v4087_v4 = vpop.f32.mrf.mxu1 }
 0x3d7   :  { %v4088_v60 = vpop.f32.mrf.mxu1 }
 0x3d8   :  { %v4089_v24 = vadd.f32 %v4088_v60, %v4087_v4  ;;  %v4509_v60 = vld [vmem:[#allocation11 + $0x130] sm:$0xff]  }
 0x3d9   :  { %v4090_v39 = vpop.f32.mrf.mxu1  ;;  %4345 = vmatprep.subr.bf16.mxu0 %v4509_v60 }
 0x3da   :  { %v5411_v21 = vadd.f32 %v4089_v24, %v5408_v58  ;;  %4346 = vmatpush3.bf16.msra.mxu0 %v4509_v60 }
 0x3db   :  { %v4091_v13 = vpop.f32.mrf.mxu1 }
 0x3dc   :  { %v4092_v26 = vadd.f32 %v4091_v13, %v4090_v39  ;;  %1269 = vadd.xlane.f32.xlu0 %v5411_v21  ;;  %v1317_v50 = vmul.f32 %v5411_v21, %v5411_v21 }
 0x3dd   :  { %v4093_v29 = vpop.f32.mrf.mxu1 }
 0x3de   :  { %v5415_v0 = vadd.f32 %v4092_v26, %v5408_v58 }
 0x3df   :  { %v4094_v31 = vpop.f32.mrf.mxu1 }
 0x3e0   :  { %v4095_v2 = vadd.f32 %v4094_v31, %v4093_v29  ;;  %1271 = vadd.xlane.f32.xlu1 %v5415_v0  ;;  %1333 = vadd.xlane.f32.xlu0 %v1317_v50  ;;  %v1318_v9 = vmul.f32 %v5415_v0, %v5415_v0  ;;  %v4510_v50 = vld [vmem:[#allocation11 + $0x128] sm:$0xff]  }
 0x3e1   :  { %v4096_v5 = vpop.f32.mrf.mxu1  ;;  %4347 = vmatprep.subr.bf16.mxu0 %v4510_v50 }
 0x3e2   :  { %v5421_v8 = vadd.f32 %v4095_v2, %v5408_v58  ;;  %4348 = vmatpush3.bf16.msra.mxu0 %v4510_v50 }
 0x3e3   :  { %v4097_v19 = vpop.f32.mrf.mxu1 }
 0x3e4   :  { %v4098_v59 = vadd.f32 %v4097_v19, %v4096_v5  ;;  %1335 = vadd.xlane.f32.xlu1 %v1318_v9  ;;  %1273 = vadd.xlane.f32.xlu0 %v5421_v8  ;;  %v1319_v62 = vmul.f32 %v5421_v8, %v5421_v8 }
 0x3e5   :  { %v4099_v36 = vpop.f32.mrf.mxu1 }
 0x3e6   :  { %v5427_v47 = vadd.f32 %v4098_v59, %v5408_v58  ;;  %v4511_v59 = vld [vmem:[#allocation11 + $0x120] sm:$0xff]  }
 0x3e7   :  { %v4100_v28 = vpop.f32.mrf.mxu1  ;;  %4349 = vmatprep.subr.bf16.mxu0 %v4511_v59 }
 0x3e8   :  { %v4101_v11 = vadd.f32 %v4100_v28, %v4099_v36  ;;  %1275 = vadd.xlane.f32.xlu1 %v5427_v47  ;;  %1337 = vadd.xlane.f32.xlu0 %v1319_v62  ;;  %v1320_v12 = vmul.f32 %v5427_v47, %v5427_v47 }
 0x3e9   :  { %v4102_v35 = vpop.f32.mrf.mxu1  ;;  %4350 = vmatpush3.bf16.msra.mxu0 %v4511_v59 }
 0x3ea   :  { %v5433_v14 = vadd.f32 %v4101_v11, %v5408_v58 }
 0x3eb   :  { %v4103_v22 = vpop.f32.mrf.mxu1 }
 0x3ec   :  { %v4104_v16 = vadd.f32 %v4103_v22, %v4102_v35  ;;  %1339 = vadd.xlane.f32.xlu1 %v1320_v12  ;;  %1277 = vadd.xlane.f32.xlu0 %v5433_v14  ;;  %v1321_v15 = vmul.f32 %v5433_v14, %v5433_v14  ;;  %v4512_v12 = vld [vmem:[#allocation11 + $0x118] sm:$0xff]  }
 0x3ed   :  { %v4105_v40 = vpop.f32.mrf.mxu1  ;;  %4351 = vmatprep.subr.bf16.mxu0 %v4512_v12 }
 0x3ee   :  { %v5439_v25 = vadd.f32 %v4104_v16, %v5408_v58  ;;  %4352 = vmatpush3.bf16.msra.mxu0 %v4512_v12 }
 0x3ef   :  { %v4106_v23 = vpop.f32.mrf.mxu1 }
 0x3f0   :  { %v4107_v1 = vadd.f32 %v4106_v23, %v4105_v40  ;;  %1279 = vadd.xlane.f32.xlu1 %v5439_v25  ;;  %1341 = vadd.xlane.f32.xlu0 %v1321_v15  ;;  %v1322_v20 = vmul.f32 %v5439_v25, %v5439_v25 }
 0x3f1   :  { %v4108_v6 = vpop.f32.mrf.mxu1 }
 0x3f2   :  { %v5445_v18 = vadd.f32 %v4107_v1, %v5408_v58  ;;  %v4513_v1 = vld [vmem:[#allocation11 + $0x110] sm:$0xff]  }
 0x3f3   :  { %v4109_v27 = vpop.f32.mrf.mxu1  ;;  %4353 = vmatprep.subr.bf16.mxu0 %v4513_v1 }
 0x3f4   :  { %v4110_v30 = vadd.f32 %v4109_v27, %v4108_v6  ;;  %1343 = vadd.xlane.f32.xlu1 %v1322_v20  ;;  %1281 = vadd.xlane.f32.xlu0 %v5445_v18  ;;  %v1323_v52 = vmul.f32 %v5445_v18, %v5445_v18 }
 0x3f5   :  { %v4111_v49 = vpop.f32.mrf.mxu1  ;;  %4354 = vmatpush3.bf16.msra.mxu0 %v4513_v1 }
 0x3f6   :  { %v5451_v45 = vadd.f32 %v4110_v30, %v5408_v58 }
 0x3f7   :  { %v4112_v61 = vpop.f32.mrf.mxu1 }
 0x3f8   :  { %v4113_v4 = vadd.f32 %v4112_v61, %v4111_v49  ;;  %1283 = vadd.xlane.f32.xlu1 %v5451_v45  ;;  %1345 = vadd.xlane.f32.xlu0 %v1323_v52  ;;  %v1324_v13 = vmul.f32 %v5451_v45, %v5451_v45  ;;  %v4514_v49 = vld [vmem:[#allocation11 + $0x108] sm:$0xff]  }
 0x3f9   :  { %v4114_v24 = vpop.f32.mrf.mxu1  ;;  %4355 = vmatprep.subr.bf16.mxu0 %v4514_v49 }
 0x3fa   :  { %v5457_v39 = vadd.f32 %v4113_v4, %v5408_v58  ;;  %4356 = vmatpush3.bf16.msra.mxu0 %v4514_v49 }
 0x3fb   :  { %v4115_v26 = vpop.f32.mrf.mxu1 }
 0x3fc   :  { %v4116_v29 = vadd.f32 %v4115_v26, %v4114_v24  ;;  %1347 = vadd.xlane.f32.xlu1 %v1324_v13  ;;  %1285 = vadd.xlane.f32.xlu0 %v5457_v39  ;;  %v1325_v5 = vmul.f32 %v5457_v39, %v5457_v39  ;;  %v4515_v26 = vld [vmem:[#allocation11 + $0x100] sm:$0xff]  }
 0x3fd   :  { %v4117_v31 = vpop.f32.mrf.mxu1  ;;  %4357 = vmatprep.subr.bf16.mxu0 %v4515_v26 }
 0x3fe   :  { %v5463_v2 = vadd.f32 %v4116_v29, %v5408_v58  ;;  %4358 = vmatpush3.bf16.msra.mxu0 %v4515_v26 }
 0x3ff   :  { %v4118_v9 = vpop.f32.mrf.mxu1 }
 0x400   :  { %v4119_v19 = vadd.f32 %v4118_v9, %v4117_v31  ;;  %1287 = vadd.xlane.f32.xlu1 %v5463_v2  ;;  %1349 = vadd.xlane.f32.xlu0 %v1325_v5  ;;  %v1326_v28 = vmul.f32 %v5463_v2, %v5463_v2 }
 0x401   :  { %v4120_v36 = vpop.f32.mrf.mxu1 }
 0x402   :  { %v5469_v62 = vadd.f32 %v4119_v19, %v5408_v58 }
 0x403   :  { %v4121_v11 = vpop.f32.mrf.mxu1 }
 0x404   :  { %v4122_v35 = vadd.f32 %v4121_v11, %v4120_v36  ;;  %1351 = vadd.xlane.f32.xlu1 %v1326_v28  ;;  %1289 = vadd.xlane.f32.xlu0 %v5469_v62  ;;  %v1327_v40 = vmul.f32 %v5469_v62, %v5469_v62 }
 0x405   :  { %v4123_v22 = vpop.f32.mrf.mxu1 }
 0x406   :  { %v5475_v16 = vadd.f32 %v4122_v35, %v5408_v58 }
 0x407   :  { %v4124_v15 = vpop.f32.mrf.mxu1 }
 0x408   :  { %v4125_v23 = vadd.f32 %v4124_v15, %v4123_v22  ;;  %1291 = vadd.xlane.f32.xlu1 %v5475_v16  ;;  %1353 = vadd.xlane.f32.xlu0 %v1327_v40  ;;  %v1328_v27 = vmul.f32 %v5475_v16, %v5475_v16 }
 0x409   :  { %v4126_v6 = vpop.f32.mrf.mxu1 }
 0x40a   :  { %v5481_v20 = vadd.f32 %v4125_v23, %v5408_v58 }
 0x40b   :  { %v4127_v30 = vpop.f32.mrf.mxu1 }
 0x40c   :  { %v4128_v38 = vadd.f32 %v4127_v30, %v4126_v6  ;;  %1355 = vadd.xlane.f32.xlu1 %v1328_v27  ;;  %1293 = vadd.xlane.f32.xlu0 %v5481_v20  ;;  %v1329_v4 = vmul.f32 %v5481_v20, %v5481_v20 }
 0x40d   :  { %v4129_v52 = vpop.f32.mrf.mxu1 }
 0x40e   :  { %v5487_v61 = vadd.f32 %v4128_v38, %v5408_v58 }
 0x40f   :  { %v4130_v60 = vpop.f32.mrf.mxu1 }
 0x410   :  { %v4131_v24 = vadd.f32 %v4130_v60, %v4129_v52  ;;  %1295 = vadd.xlane.f32.xlu1 %v5487_v61  ;;  %1357 = vadd.xlane.f32.xlu0 %v1329_v4  ;;  %v1330_v50 = vmul.f32 %v5487_v61, %v5487_v61 }
 0x411   :  { %v4132_v13 = vpop.f32.mrf.mxu1 }
 0x412   :  { %v5493_v29 = vadd.f32 %v4131_v24, %v5408_v58 }
 0x413   :  { %v4133_v31 = vpop.f32.mrf.mxu1 }
 0x414   :  { %v4134_v5 = vadd.f32 %v4133_v31, %v4132_v13  ;;  %1359 = vadd.xlane.f32.xlu1 %v1330_v50  ;;  %1297 = vadd.xlane.f32.xlu0 %v5493_v29  ;;  %v1331_v19 = vmul.f32 %v5493_v29, %v5493_v29 }
 0x416   :  { %v5499_v9 = vadd.f32 %v4134_v5, %v5408_v58 }
 0x418   :  { %1299 = vadd.xlane.f32.xlu1 %v5499_v9  ;;  %1361 = vadd.xlane.f32.xlu0 %v1331_v19  ;;  %v1332_v59 = vmul.f32 %v5499_v9, %v5499_v9 }
 0x41c   :  { %1363 = vadd.xlane.f32.xlu1 %v1332_v59 }
 0x465   :  { %v1270_v36 = vpop.xlane.xlu0 %1269 }
 0x466   :  { %v1301_v28 = vmul.f32 0.0078125, %v1270_v36 }
 0x468   :  { %v1381_v12 = vmul.f32 %v1301_v28, %v1301_v28 }
 0x469   :  { %v1272_v11 = vpop.xlane.xlu1 %1271  ;;  %v1334_v35 = vpop.xlane.xlu0 %1333 }
 0x46a   :  { %v5506_v22 = vmul.f32 0.0078125, %v1272_v11  ;;  %v1365_v40 = vmul.f32 0.0078125, %v1334_v35 }
 0x46c   :  { %v1397_v58 = vsub.f32 %v1365_v40, %v1381_v12  ;;  %v1382_v1 = vmul.f32 %v5506_v22, %v5506_v22 }
 0x46d   :  { %v1336_v15 = vpop.xlane.xlu1 %1335  ;;  %v1274_v23 = vpop.xlane.xlu0 %1273 }
 0x46e   :  { %v1413_v6 = vmax.f32 %v1397_v58, 0.0  ;;  %v1366_v27 = vmul.f32 0.0078125, %v1336_v15  ;;  %v5510_v30 = vmul.f32 0.0078125, %v1274_v23 }
 0x470   :  { %v1445_v38 = vadd.f32 1e-05, %v1413_v6  ;;  %v1398_v49 = vsub.f32 %v1366_v27, %v1382_v1  ;;  %v1383_v52 = vmul.f32 %v5510_v30, %v5510_v30 }
 0x471   :  { %v1276_v4 = vpop.xlane.xlu1 %1275  ;;  %v1338_v60 = vpop.xlane.xlu0 %1337 }
 0x472   :  { %4604 = vrsqrt.f32 %v1445_v38  ;;  %v1414_v24 = vmax.f32 %v1398_v49, 0.0  ;;  %v5514_v13 = vmul.f32 0.0078125, %v1276_v4  ;;  %v1367_v26 = vmul.f32 0.0078125, %v1338_v60 }
 0x474   :  { %v1446_v50 = vadd.f32 1e-05, %v1414_v24  ;;  %v1399_v31 = vsub.f32 %v1367_v26, %v1383_v52  ;;  %v1384_v5 = vmul.f32 %v5514_v13, %v5514_v13 }
 0x475   :  { %v1340_v19 = vpop.xlane.xlu1 %1339  ;;  %v1278_v59 = vpop.xlane.xlu0 %1277 }
 0x476   :  { %4606 = vrsqrt.f32 %v1446_v50  ;;  %v1415_v36 = vmax.f32 %v1399_v31, 0.0  ;;  %v1368_v11 = vmul.f32 0.0078125, %v1340_v19  ;;  %v5518_v35 = vmul.f32 0.0078125, %v1278_v59 }
 0x477   :  { %v5531_v19 = vrot.slane %v5404_v44, %v5232_v10 }
 0x478   :  { %v1447_v12 = vadd.f32 1e-05, %v1415_v36  ;;  %v1400_v40 = vsub.f32 %v1368_v11, %v1384_v5  ;;  %v1385_v58 = vmul.f32 %v5518_v35, %v5518_v35  ;;  %v1429_v5 = vsub.f32 %v5411_v21, %v1301_v28 }
 0x479   :  { %v1280_v15 = vpop.xlane.xlu1 %1279  ;;  %v1342_v23 = vpop.xlane.xlu0 %1341  ;;  %v1430_v21 = vsub.f32 %v5415_v0, %v5506_v22  ;;  %v1431_v22 = vsub.f32 %v5421_v8, %v5510_v30  ;;  %v1432_v30 = vsub.f32 %v5427_v47, %v5514_v13  ;;  %v1433_v47 = vsub.f32 %v5433_v14, %v5518_v35 }
 0x47a   :  { %4608 = vrsqrt.f32 %v1447_v12  ;;  %v1416_v1 = vmax.f32 %v1400_v40, 0.0  ;;  %v5522_v6 = vmul.f32 0.0078125, %v1280_v15  ;;  %v1369_v27 = vmul.f32 0.0078125, %v1342_v23 }
 0x47c   :  { %v1448_v38 = vadd.f32 1e-05, %v1416_v1  ;;  %v1401_v49 = vsub.f32 %v1369_v27, %v1385_v58  ;;  %v1386_v52 = vmul.f32 %v5522_v6, %v5522_v6 }
 0x47d   :  { %v1344_v4 = vpop.xlane.xlu1 %1343  ;;  %v1282_v60 = vpop.xlane.xlu0 %1281 }
 0x47e   :  { %4610 = vrsqrt.f32 %v1448_v38  ;;  %v1417_v24 = vmax.f32 %v1401_v49, 0.0  ;;  %v1370_v26 = vmul.f32 0.0078125, %v1344_v4  ;;  %v5526_v50 = vmul.f32 0.0078125, %v1282_v60 }
 0x47f   :  { %v4605_v31 = vpop.eup %4604  ;;  %v5542_v38 = vrot.slane %v5404_v44, %v5235_v17 }
 0x480   :  { %v1449_v59 = vadd.f32 1e-05, %v1417_v24  ;;  %v1402_v36 = vsub.f32 %v1370_v26, %v1386_v52  ;;  %v1387_v11 = vmul.f32 %v5526_v50, %v5526_v50  ;;  %v1477_v58 = vmul.f32 %v4605_v31, %v1429_v5 }
 0x481   :  { %v1284_v12 = vpop.xlane.xlu1 %1283  ;;  %v1346_v40 = vpop.xlane.xlu0 %1345 }
 0x482   :  { %4612 = vrsqrt.f32 %v1449_v59  ;;  %v1418_v15 = vmax.f32 %v1402_v36, 0.0  ;;  %v5535_v23 = vmul.f32 0.0078125, %v1284_v12  ;;  %v1371_v1 = vmul.f32 0.0078125, %v1346_v40 }
 0x483   :  { %v4607_v27 = vpop.eup %4606  ;;  %v1497_v28 = vmul.f32 %v5531_v19, %v1477_v58 }
 0x484   :  { %v1450_v49 = vadd.f32 1e-05, %v1418_v15  ;;  %v1403_v52 = vsub.f32 %v1371_v1, %v1387_v11  ;;  %v1388_v4 = vmul.f32 %v5535_v23, %v5535_v23  ;;  %v1478_v26 = vmul.f32 %v4607_v27, %v1430_v21 }
 0x485   :  { %v1348_v60 = vpop.xlane.xlu1 %1347  ;;  %v1286_v24 = vpop.xlane.xlu0 %1285  ;;  %v1517_v12 = vadd.f32 %v5542_v38, %v1497_v28 }
 0x486   :  { %4614 = vrsqrt.f32 %v1450_v49  ;;  %v1419_v31 = vmax.f32 %v1403_v52, 0.0  ;;  %v1372_v5 = vmul.f32 0.0078125, %v1348_v60  ;;  %v5546_v59 = vmul.f32 0.0078125, %v1286_v24 }
 0x487   :  { %v4609_v0 = vpop.eup %4608  ;;  %v1498_v36 = vmul.f32 %v5531_v19, %v1478_v26  ;;  %v1533_v28 = vmax.f32 %v1517_v12, 0.0 }
 0x488   :  { %v1451_v11 = vadd.f32 1e-05, %v1419_v31  ;;  %v1404_v40 = vsub.f32 %v1372_v5, %v1388_v4  ;;  %v1389_v58 = vmul.f32 %v5546_v59, %v5546_v59  ;;  %v1479_v21 = vmul.f32 %v4609_v0, %v1431_v22 }
 0x489   :  { %v1288_v15 = vpop.xlane.xlu1 %1287  ;;  %v1350_v1 = vpop.xlane.xlu0 %1349  ;;  %v1518_v27 = vadd.f32 %v5542_v38, %v1498_v36 }
 0x48a   :  { %4616 = vrsqrt.f32 %v1451_v11  ;;  %v1420_v49 = vmax.f32 %v1404_v40, 0.0  ;;  %v5555_v52 = vmul.f32 0.0078125, %v1288_v15  ;;  %v1373_v60 = vmul.f32 0.0078125, %v1350_v1 }
 0x48b   :  { %v4611_v8 = vpop.eup %4610  ;;  %v1534_v24 = vmax.f32 %v1518_v27, 0.0  ;;  %v1499_v4 = vmul.f32 %v5531_v19, %v1479_v21 }
 0x48c   :  { %v1452_v26 = vadd.f32 1e-05, %v1420_v49  ;;  %v1405_v31 = vsub.f32 %v1373_v60, %v1389_v58  ;;  %v1390_v5 = vmul.f32 %v5555_v52, %v5555_v52  ;;  %v1480_v11 = vmul.f32 %v4611_v8, %v1432_v30 }
 0x48d   :  { %v1352_v36 = vpop.xlane.xlu1 %1351  ;;  %v1290_v0 = vpop.xlane.xlu0 %1289  ;;  %v1549_v22 = vpack.c.bf16 %v1534_v24, %v1533_v28  ;;  %v1519_v12 = vadd.f32 %v5542_v38, %v1499_v4 }
 0x48e   :  { %4618 = vrsqrt.f32 %v1452_v26  ;;  %v1421_v40 = vmax.f32 %v1405_v31, 0.0  ;;  %v1374_v15 = vmul.f32 0.0078125, %v1352_v36  ;;  %v5562_v1 = vmul.f32 0.0078125, %v1290_v0 }
 0x48f   :  { %v4613_v37 = vpop.eup %4612  ;;  %4359 = vmatprep.mubr.bf16.mxu0 %v1549_v22  ;;  %v1500_v13 = vmul.f32 %v5531_v19, %v1480_v11  ;;  %v1434_v26 = vsub.f32 %v5439_v25, %v5522_v6  ;;  %v1535_v4 = vmax.f32 %v1519_v12, 0.0  ;;  %v1435_v25 = vsub.f32 %v5445_v18, %v5526_v50 }
 0x490   :  { %v1453_v58 = vadd.f32 1e-05, %v1421_v40  ;;  %v1406_v27 = vsub.f32 %v1374_v15, %v1390_v5  ;;  %v1391_v21 = vmul.f32 %v5562_v1, %v5562_v1  ;;  %v1481_v30 = vmul.f32 %v4613_v37, %v1433_v47 }
 0x491   :  { %v1292_v49 = vpop.xlane.xlu1 %1291  ;;  %v1354_v60 = vpop.xlane.xlu0 %1353  ;;  %v1520_v8 = vadd.f32 %v5542_v38, %v1500_v13 }
 0x492   :  { %4620 = vrsqrt.f32 %v1453_v58  ;;  %v1422_v28 = vmax.f32 %v1406_v27, 0.0  ;;  %v5571_v24 = vmul.f32 0.0078125, %v1292_v49  ;;  %v1375_v14 = vmul.f32 0.0078125, %v1354_v60 }
 0x493   :  { %v4615_v35 = vpop.eup %4614  ;;  %v1536_v31 = vmax.f32 %v1520_v8, 0.0  ;;  %v1501_v5 = vmul.f32 %v5531_v19, %v1481_v30 }
 0x494   :  { %v1454_v36 = vadd.f32 1e-05, %v1422_v28  ;;  %v1407_v0 = vsub.f32 %v1375_v14, %v1391_v21  ;;  %v1392_v22 = vmul.f32 %v5571_v24, %v5571_v24  ;;  %v1482_v15 = vmul.f32 %v4615_v35, %v1434_v26 }
 0x495   :  { %v1356_v11 = vpop.xlane.xlu1 %1355  ;;  %v1294_v37 = vpop.xlane.xlu0 %1293  ;;  %v1550_v40 = vpack.c.bf16 %v1536_v31, %v1535_v4  ;;  %v1521_v12 = vadd.f32 %v5542_v38, %v1501_v5  ;;  %v1436_v4 = vsub.f32 %v5451_v45, %v5535_v23  ;;  %v1437_v45 = vsub.f32 %v5457_v39, %v5546_v59 }
 0x496   :  { %4622 = vrsqrt.f32 %v1454_v36  ;;  %v1423_v47 = vmax.f32 %v1407_v0, 0.0  ;;  %v1376_v13 = vmul.f32 0.0078125, %v1356_v11  ;;  %v5578_v58 = vmul.f32 0.0078125, %v1294_v37 }
 0x497   :  { %v4617_v27 = vpop.eup %4616  ;;  %4360 = vmatmul.mubr.bf16.vlgmr.msra.gmra.mxu0 %v1550_v40  ;;  %v1502_v6 = vmul.f32 %v5531_v19, %v1482_v15  ;;  %v1537_v31 = vmax.f32 %v1521_v12, 0.0 }
 0x498   :  { %v1455_v21 = vadd.f32 1e-05, %v1423_v47  ;;  %v1408_v49 = vsub.f32 %v1376_v13, %v1392_v22  ;;  %v1393_v60 = vmul.f32 %v5578_v58, %v5578_v58  ;;  %v1483_v14 = vmul.f32 %v4617_v27, %v1435_v25 }
 0x499   :  { %v1296_v8 = vpop.xlane.xlu1 %1295  ;;  %v1358_v30 = vpop.xlane.xlu0 %1357  ;;  %v1522_v28 = vadd.f32 %v5542_v38, %v1502_v6 }
 0x49a   :  { %4624 = vrsqrt.f32 %v1455_v21  ;;  %v1424_v35 = vmax.f32 %v1408_v49, 0.0  ;;  %v5587_v26 = vmul.f32 0.0078125, %v1296_v8  ;;  %v1377_v18 = vmul.f32 0.0078125, %v1358_v30 }
 0x49b   :  { %v4619_v50 = vpop.eup %4618  ;;  %v1538_v5 = vmax.f32 %v1522_v28, 0.0  ;;  %v1503_v36 = vmul.f32 %v5531_v19, %v1483_v14 }
 0x49c   :  { %v1456_v0 = vadd.f32 1e-05, %v1424_v35  ;;  %v1409_v22 = vsub.f32 %v1377_v18, %v1393_v60  ;;  %v1394_v11 = vmul.f32 %v5587_v26, %v5587_v26  ;;  %v1484_v47 = vmul.f32 %v4619_v50, %v1436_v4 }
 0x49d   :  { %v1360_v37 = vpop.xlane.xlu1 %1359  ;;  %v1298_v40 = vpop.xlane.xlu0 %1297  ;;  %v1551_v15 = vpack.c.bf16 %v1538_v5, %v1537_v31  ;;  %v1523_v12 = vadd.f32 %v5542_v38, %v1503_v36  ;;  %v1438_v50 = vsub.f32 %v5463_v2, %v5555_v52 }
 0x49e   :  { %4626 = vrsqrt.f32 %v1456_v0  ;;  %v1425_v13 = vmax.f32 %v1409_v22, 0.0  ;;  %v1378_v27 = vmul.f32 0.0078125, %v1360_v37  ;;  %v5594_v25 = vmul.f32 0.0078125, %v1298_v40 }
 0x49f   :  { %v4621_v6 = vpop.eup %4620  ;;  %4363 = vmatprep.mubr.bf16.mxu0 %v1551_v15  ;;  %v1504_v23 = vmul.f32 %v5531_v19, %v1484_v47  ;;  %v1539_v4 = vmax.f32 %v1523_v12, 0.0  ;;  %v1439_v22 = vsub.f32 %v5469_v62, %v5562_v1  ;;  %v1440_v1 = vsub.f32 %v5475_v16, %v5571_v24 }
 0x4a0   :  { %v1457_v21 = vadd.f32 1e-05, %v1425_v13  ;;  %v1410_v49 = vsub.f32 %v1378_v27, %v1394_v11  ;;  %v1395_v60 = vmul.f32 %v5594_v25, %v5594_v25  ;;  %v1485_v14 = vmul.f32 %v4621_v6, %v1437_v45 }
 0x4a1   :  { %v1300_v8 = vpop.xlane.xlu1 %1299  ;;  %v1362_v30 = vpop.xlane.xlu0 %1361  ;;  %v1524_v28 = vadd.f32 %v5542_v38, %v1504_v23 }
 0x4a2   :  { %4628 = vrsqrt.f32 %v1457_v21  ;;  %v1426_v35 = vmax.f32 %v1410_v49, 0.0  ;;  %v5603_v18 = vmul.f32 0.0078125, %v1300_v8  ;;  %v1379_v39 = vmul.f32 0.0078125, %v1362_v30 }
 0x4a3   :  { %v4623_v59 = vpop.eup %4622  ;;  %v1540_v31 = vmax.f32 %v1524_v28, 0.0  ;;  %v1505_v5 = vmul.f32 %v5531_v19, %v1485_v14 }
 0x4a4   :  { %v1458_v36 = vadd.f32 1e-05, %v1426_v35  ;;  %v1411_v0 = vsub.f32 %v1379_v39, %v1395_v60  ;;  %v1486_v40 = vmul.f32 %v4623_v59, %v1438_v50  ;;  %v1396_v15 = vmul.f32 %v5603_v18, %v5603_v18 }
 0x4a5   :  { %v1364_v11 = vpop.xlane.xlu1 %1363  ;;  %v1552_v37 = vpack.c.bf16 %v1540_v31, %v1539_v4  ;;  %v1525_v52 = vadd.f32 %v5542_v38, %v1505_v5  ;;  %v1441_v35 = vsub.f32 %v5481_v20, %v5578_v58  ;;  %v1442_v4 = vsub.f32 %v5487_v61, %v5587_v26 }
 0x4a6   :  { %4630 = vrsqrt.f32 %v1458_v36  ;;  %v1427_v47 = vmax.f32 %v1411_v0, 0.0  ;;  %v1380_v13 = vmul.f32 0.0078125, %v1364_v11  ;;  %v1506_v2 = vmul.f32 %v5531_v19, %v1486_v40 }
 0x4a7   :  { %v4625_v27 = vpop.eup %4624  ;;  %4364 = vmatmul.mubr.bf16.gmra.mxu0 %v1552_v37  ;;  %v1541_v60 = vmax.f32 %v1525_v52, 0.0  ;;  %v1443_v58 = vsub.f32 %v5493_v29, %v5594_v25  ;;  %v1444_v61 = vsub.f32 %v5499_v9, %v5603_v18  ;;  %v6670_v9 = vsub.s32 3, %v5057_v51 }
 0x4a8   :  { %v1459_v6 = vadd.f32 1e-05, %v1427_v47  ;;  %v1412_v45 = vsub.f32 %v1380_v13, %v1396_v15  ;;  %v1487_v23 = vmul.f32 %v4625_v27, %v1439_v22  ;;  %v1526_v62 = vadd.f32 %v5542_v38, %v1506_v2 }
 0x4aa   :  { %4632 = vrsqrt.f32 %v1459_v6  ;;  %v1428_v12 = vmax.f32 %v1412_v45, 0.0  ;;  %v1507_v21 = vmul.f32 %v5531_v19, %v1487_v23  ;;  %v1542_v8 = vmax.f32 %v1526_v62, 0.0 }
 0x4ab   :  { %v4627_v49 = vpop.eup %4626 }
 0x4ac   :  { %v1460_v30 = vadd.f32 1e-05, %v1428_v12  ;;  %v1488_v28 = vmul.f32 %v4627_v49, %v1440_v1  ;;  %v1553_v14 = vpack.c.bf16 %v1542_v8, %v1541_v60  ;;  %v1527_v59 = vadd.f32 %v5542_v38, %v1507_v21 }
 0x4ad   :  { %v5641_v12 = vrot.slane %v5404_v44, %v6670_v9 }
 0x4ae   :  { %4634 = vrsqrt.f32 %v1460_v30  ;;  %v1508_v39 = vmul.f32 %v5531_v19, %v1488_v28  ;;  %4367 = vmatprep.mubr.bf16.mxu0 %v1553_v14  ;;  %v1543_v31 = vmax.f32 %v1527_v59, 0.0 }
 0x4af   :  { %v4629_v50 = vpop.eup %4628 }
 0x4b0   :  { %v1528_v16 = vadd.f32 %v5542_v38, %v1508_v39  ;;  %v1489_v24 = vmul.f32 %v4629_v50, %v1441_v35 }
 0x4b2   :  { %v1544_v5 = vmax.f32 %v1528_v16, 0.0  ;;  %v1509_v36 = vmul.f32 %v5531_v19, %v1489_v24 }
 0x4b3   :  { %v4631_v0 = vpop.eup %4630 }
 0x4b4   :  { %v1554_v22 = vpack.c.bf16 %v1544_v5, %v1543_v31  ;;  %v1490_v20 = vmul.f32 %v4631_v0, %v1442_v4  ;;  %v1529_v37 = vadd.f32 %v5542_v38, %v1509_v36  ;;  %v4516_v4 = vld [vmem:[#allocation11 + $0x1b8] sm:$0xff]   ;;  %v4518_v0 = vld [vmem:[#allocation11 + $0x1b0] sm:$0xff]  }
 0x4b5   :  { %v4517_v36 = vld [vmem:[#allocation11 + $0x178] sm:$0xff]   ;;  %4151 = vmatprep.subr.bf16.mxu0 %v4516_v4  ;;  %v4531_v4 = vld [vmem:[#allocation11 + $0x140] sm:$0xff]  }
 0x4b6   :  { %4368 = vmatmul.mubr.bf16.gmra.mxu0 %v1554_v22  ;;  %v1510_v11 = vmul.f32 %v5531_v19, %v1490_v20  ;;  %v1545_v26 = vmax.f32 %v1529_v37, 0.0 }
 0x4b7   :  { %v4633_v40 = vpop.eup %4632  ;;  %4152 = vmatpush3.bf16.msra.mxu0 %v4517_v36 }
 0x4b8   :  { %v1530_v15 = vadd.f32 %v5542_v38, %v1510_v11  ;;  %v1491_v47 = vmul.f32 %v4633_v40, %v1443_v58  ;;  %v4519_v58 = vld [vmem:[#allocation11 + $0x170] sm:$0xff]   ;;  %4153 = vmatprep.subr.bf16.mxu0 %v4518_v0  ;;  %v4520_v11 = vld [vmem:[#allocation11 + $0x1a8] sm:$0xff]  }
 0x4ba   :  { %v1546_v13 = vmax.f32 %v1530_v15, 0.0  ;;  %v1511_v27 = vmul.f32 %v5531_v19, %v1491_v47  ;;  %v4521_v47 = vld [vmem:[#allocation11 + $0x168] sm:$0xff]  }
 0x4bb   :  { %v4635_v2 = vpop.eup %4634  ;;  %4154 = vmatpush3.bf16.msra.mxu0 %v4519_v58 }
 0x4bc   :  { %v1555_v52 = vpack.c.bf16 %v1546_v13, %v1545_v26  ;;  %v1492_v6 = vmul.f32 %v4635_v2, %v1444_v61  ;;  %v1531_v25 = vadd.f32 %v5542_v38, %v1511_v27  ;;  %4155 = vmatprep.subr.bf16.mxu0 %v4520_v11  ;;  %v4522_v13 = vld [vmem:[#allocation11 + $0x1a0] sm:$0xff]  }
 0x4be   :  { %4371 = vmatprep.mubr.bf16.mxu0 %v1555_v52  ;;  %v1512_v29 = vmul.f32 %v5531_v19, %v1492_v6  ;;  %v1547_v23 = vmax.f32 %v1531_v25, 0.0  ;;  %v4523_v52 = vld [vmem:[#allocation11 + $0x160] sm:$0xff]   ;;  %v4524_v25 = vld [vmem:[#allocation11 + $0x198] sm:$0xff]  }
 0x4bf   :  { %4156 = vmatpush3.bf16.msra.mxu0 %v4521_v47 }
 0x4c0   :  { %v1532_v45 = vadd.f32 %v5542_v38, %v1512_v29  ;;  %4157 = vmatprep.subr.bf16.mxu0 %v4522_v13 }
 0x4c2   :  { %v1548_v62 = vmax.f32 %v1532_v45, 0.0 }
 0x4c3   :  { %4158 = vmatpush3.bf16.msra.mxu0 %v4523_v52 }
 0x4c4   :  { %v1556_v1 = vpack.c.bf16 %v1548_v62, %v1547_v23  ;;  %v4525_v23 = vld [vmem:[#allocation11 + $0x158] sm:$0xff]   ;;  %4159 = vmatprep.subr.bf16.mxu0 %v4524_v25  ;;  %v4526_v62 = vld [vmem:[#allocation11 + $0x190] sm:$0xff]  }
 0x4c6   :  { %4372 = vmatmul.mubr.bf16.gmra.mxu0 %v1556_v1 }
 0x4c7   :  { %4160 = vmatpush3.bf16.msra.mxu0 %v4525_v23 }
 0x4c8   :  { %4161 = vmatprep.subr.bf16.mxu0 %v4526_v62 }
 0x557   :  { %v4361_v18 = vpop.f32.mrf.mxu0 }
 0x558   :  { %v5654_v44 = vadd.f32 %v4361_v18, %v5641_v12 }
 0x559   :  { %v1643_v21 = vpop.f32.mrf.mxu0 }
 0x55a   :  { %v5644_v49 = vadd.f32 %v1643_v21, %v5641_v12  ;;  %v1756_v14 = vmul.f32 %v5654_v44, %v5654_v44  ;;  %v4527_v21 = vld [vmem:[#allocation11 + $0x150] sm:$0xff]  }
 0x55b   :  { %v4362_v19 = vpop.f32.mrf.mxu0  ;;  %4162 = vmatpush3.bf16.msra.mxu0 %v4527_v21 }
 0x55c   :  { %1706 = vadd.xlane.f32.xlu0 %v5644_v49  ;;  %v1754_v8 = vmul.f32 %v5644_v49, %v5644_v49  ;;  %v5660_v28 = vadd.f32 %v4362_v19, %v5641_v12  ;;  %v4528_v19 = vld [vmem:[#allocation11 + $0x188] sm:$0xff]  }
 0x55d   :  { %v1646_v38 = vpop.f32.mrf.mxu0  ;;  %4163 = vmatprep.subr.bf16.mxu0 %v4528_v19 }
 0x55e   :  { %v5648_v60 = vadd.f32 %v1646_v38, %v5641_v12  ;;  %v1757_v50 = vmul.f32 %v5660_v28, %v5660_v28 }
 0x560   :  { %1708 = vadd.xlane.f32.xlu1 %v5648_v60  ;;  %1770 = vadd.xlane.f32.xlu0 %v1754_v8  ;;  %v1755_v30 = vmul.f32 %v5648_v60, %v5648_v60 }
 0x564   :  { %1772 = vadd.xlane.f32.xlu1 %v1755_v30  ;;  %1710 = vadd.xlane.f32.xlu0 %v5654_v44 }
 0x567   :  { %v4365_v35 = vpop.f32.mrf.mxu0 }
 0x568   :  { %1712 = vadd.xlane.f32.xlu1 %v5660_v28  ;;  %1774 = vadd.xlane.f32.xlu0 %v1756_v14  ;;  %v5678_v22 = vadd.f32 %v4365_v35, %v5641_v12  ;;  %v4529_v14 = vld [vmem:[#allocation11 + $0x148] sm:$0xff]  }
 0x569   :  { %v1659_v39 = vpop.f32.mrf.mxu0  ;;  %4164 = vmatpush3.bf16.msra.mxu0 %v4529_v14 }
 0x56a   :  { %v5666_v59 = vadd.f32 %v1659_v39, %v5641_v12  ;;  %v1760_v15 = vmul.f32 %v5678_v22, %v5678_v22 }
 0x56b   :  { %v4366_v16 = vpop.f32.mrf.mxu0 }
 0x56c   :  { %1776 = vadd.xlane.f32.xlu1 %v1757_v50  ;;  %1714 = vadd.xlane.f32.xlu0 %v5666_v59  ;;  %v1758_v5 = vmul.f32 %v5666_v59, %v5666_v59  ;;  %v5684_v37 = vadd.f32 %v4366_v16, %v5641_v12  ;;  %v4530_v50 = vld [vmem:[#allocation11 + $0x180] sm:$0xff]  }
 0x56d   :  { %v1662_v24 = vpop.f32.mrf.mxu0  ;;  %4165 = vmatprep.subr.bf16.mxu0 %v4530_v50 }
 0x56e   :  { %v5672_v31 = vadd.f32 %v1662_v24, %v5641_v12  ;;  %v1761_v2 = vmul.f32 %v5684_v37, %v5684_v37  ;;  %4166 = vmatpush3.bf16.msra.mxu0 %v4531_v4 }
 0x570   :  { %1716 = vadd.xlane.f32.xlu1 %v5672_v31  ;;  %1778 = vadd.xlane.f32.xlu0 %v1758_v5  ;;  %v1759_v20 = vmul.f32 %v5672_v31, %v5672_v31 }
 0x574   :  { %1780 = vadd.xlane.f32.xlu1 %v1759_v20  ;;  %1718 = vadd.xlane.f32.xlu0 %v5678_v22 }
 0x576   :  { %v4369_v40 = vpop.f32.mrf.mxu0 }
 0x577   :  { %v5702_v1 = vadd.f32 %v4369_v40, %v5641_v12 }
 0x578   :  { %1720 = vadd.xlane.f32.xlu1 %v5684_v37  ;;  %1782 = vadd.xlane.f32.xlu0 %v1760_v15  ;;  %v1675_v61 = vpop.f32.mrf.mxu0 }
 0x579   :  { %v5690_v26 = vadd.f32 %v1675_v61, %v5641_v12  ;;  %v1764_v30 = vmul.f32 %v5702_v1, %v5702_v1 }
 0x57a   :  { %v4370_v27 = vpop.f32.mrf.mxu0 }
 0x57b   :  { %v1762_v45 = vmul.f32 %v5690_v26, %v5690_v26  ;;  %v5708_v38 = vadd.f32 %v4370_v27, %v5641_v12 }
 0x57c   :  { %1784 = vadd.xlane.f32.xlu1 %v1761_v2  ;;  %1722 = vadd.xlane.f32.xlu0 %v5690_v26  ;;  %v1678_v6 = vpop.f32.mrf.mxu0 }
 0x57d   :  { %v5696_v29 = vadd.f32 %v1678_v6, %v5641_v12  ;;  %v1765_v24 = vmul.f32 %v5708_v38, %v5708_v38 }
 0x57f   :  { %v1763_v18 = vmul.f32 %v5696_v29, %v5696_v29 }
 0x580   :  { %1724 = vadd.xlane.f32.xlu1 %v5696_v29  ;;  %1786 = vadd.xlane.f32.xlu0 %v1762_v45 }
 0x584   :  { %1788 = vadd.xlane.f32.xlu1 %v1763_v18  ;;  %1726 = vadd.xlane.f32.xlu0 %v5702_v1 }
 0x586   :  { %v4373_v8 = vpop.f32.mrf.mxu0 }
 0x587   :  { %v5726_v20 = vadd.f32 %v4373_v8, %v5641_v12 }
 0x588   :  { %1728 = vadd.xlane.f32.xlu1 %v5708_v38  ;;  %1790 = vadd.xlane.f32.xlu0 %v1764_v30  ;;  %v1691_v35 = vpop.f32.mrf.mxu0 }
 0x589   :  { %v5714_v39 = vadd.f32 %v1691_v35, %v5641_v12  ;;  %v1768_v40 = vmul.f32 %v5726_v20, %v5726_v20 }
 0x58a   :  { %v4374_v16 = vpop.f32.mrf.mxu0 }
 0x58b   :  { %v1766_v0 = vmul.f32 %v5714_v39, %v5714_v39  ;;  %v5732_v11 = vadd.f32 %v4374_v16, %v5641_v12 }
 0x58c   :  { %1792 = vadd.xlane.f32.xlu1 %v1765_v24  ;;  %1730 = vadd.xlane.f32.xlu0 %v5714_v39  ;;  %v1694_v5 = vpop.f32.mrf.mxu0 }
 0x58d   :  { %v5720_v36 = vadd.f32 %v1694_v5, %v5641_v12  ;;  %v1769_v15 = vmul.f32 %v5732_v11, %v5732_v11 }
 0x58f   :  { %v1767_v58 = vmul.f32 %v5720_v36, %v5720_v36 }
 0x590   :  { %1732 = vadd.xlane.f32.xlu1 %v5720_v36  ;;  %1794 = vadd.xlane.f32.xlu0 %v1766_v0 }
 0x594   :  { %1796 = vadd.xlane.f32.xlu1 %v1767_v58  ;;  %1734 = vadd.xlane.f32.xlu0 %v5726_v20 }
 0x598   :  { %1736 = vadd.xlane.f32.xlu1 %v5732_v11  ;;  %1798 = vadd.xlane.f32.xlu0 %v1768_v40 }
 0x59c   :  { %1800 = vadd.xlane.f32.xlu1 %v1769_v15 }
 0x5e5   :  { %v1707_v47 = vpop.xlane.xlu0 %1706 }
 0x5e6   :  { %v1738_v61 = vmul.f32 0.0078125, %v1707_v47 }
 0x5e8   :  { %v1818_v2 = vmul.f32 %v1738_v61, %v1738_v61 }
 0x5e9   :  { %v1709_v13 = vpop.xlane.xlu1 %1708  ;;  %v1771_v27 = vpop.xlane.xlu0 %1770 }
 0x5ea   :  { %v5739_v52 = vmul.f32 0.0078125, %v1709_v13  ;;  %v1802_v6 = vmul.f32 0.0078125, %v1771_v27 }
 0x5ec   :  { %v1834_v12 = vsub.f32 %v1802_v6, %v1818_v2  ;;  %v1819_v23 = vmul.f32 %v5739_v52, %v5739_v52 }
 0x5ed   :  { %v1773_v25 = vpop.xlane.xlu1 %1772  ;;  %v1711_v45 = vpop.xlane.xlu0 %1710 }
 0x5ee   :  { %v1850_v62 = vmax.f32 %v1834_v12, 0.0  ;;  %v1803_v18 = vmul.f32 0.0078125, %v1773_v25  ;;  %v5743_v21 = vmul.f32 0.0078125, %v1711_v45 }
 0x5f0   :  { %v1882_v19 = vadd.f32 1e-05, %v1850_v62  ;;  %v1835_v8 = vsub.f32 %v1803_v18, %v1819_v23  ;;  %v1820_v30 = vmul.f32 %v5743_v21, %v5743_v21  ;;  %v6669_v18 = vsub.s32 4, %v5057_v51 }
 0x5f1   :  { %v1713_v14 = vpop.xlane.xlu1 %1712  ;;  %v1775_v35 = vpop.xlane.xlu0 %1774 }
 0x5f2   :  { %4636 = vrsqrt.f32 %v1882_v19  ;;  %v1851_v50 = vmax.f32 %v1835_v8, 0.0  ;;  %v5747_v16 = vmul.f32 0.0078125, %v1713_v14  ;;  %v1804_v24 = vmul.f32 0.0078125, %v1775_v35 }
 0x5f4   :  { %v1883_v4 = vadd.f32 1e-05, %v1851_v50  ;;  %v1836_v5 = vsub.f32 %v1804_v24, %v1820_v30  ;;  %v1821_v0 = vmul.f32 %v5747_v16, %v5747_v16 }
 0x5f5   :  { %v1777_v58 = vpop.xlane.xlu1 %1776  ;;  %v1715_v40 = vpop.xlane.xlu0 %1714 }
 0x5f6   :  { %4638 = vrsqrt.f32 %v1883_v4  ;;  %v1852_v15 = vmax.f32 %v1836_v5, 0.0  ;;  %v1805_v47 = vmul.f32 0.0078125, %v1777_v58  ;;  %v5751_v13 = vmul.f32 0.0078125, %v1715_v40  ;;  %v4764_v58 = vld [vmem:[#allocation13 + $0x8] sm:$0xff] }
 0x5f7   :  { %v5765_v40 = vrot.slane %v4764_v58, %v6669_v18 }
 0x5f8   :  { %v1884_v27 = vadd.f32 1e-05, %v1852_v15  ;;  %v1837_v2 = vsub.f32 %v1805_v47, %v1821_v0  ;;  %v1822_v6 = vmul.f32 %v5751_v13, %v5751_v13  ;;  %v1866_v0 = vsub.f32 %v5644_v49, %v1738_v61 }
 0x5f9   :  { %v1717_v12 = vpop.xlane.xlu1 %1716  ;;  %v1779_v25 = vpop.xlane.xlu0 %1778  ;;  %v6668_v15 = vsub.s32 5, %v5057_v51 }
 0x5fa   :  { %4640 = vrsqrt.f32 %v1884_v27  ;;  %v1853_v45 = vmax.f32 %v1837_v2, 0.0  ;;  %v5755_v23 = vmul.f32 0.0078125, %v1717_v12  ;;  %v1806_v62 = vmul.f32 0.0078125, %v1779_v25 }
 0x5fc   :  { %v1885_v19 = vadd.f32 1e-05, %v1853_v45  ;;  %v1838_v8 = vsub.f32 %v1806_v62, %v1822_v6  ;;  %v1823_v30 = vmul.f32 %v5755_v23, %v5755_v23 }
 0x5fd   :  { %v1781_v14 = vpop.xlane.xlu1 %1780  ;;  %v1719_v35 = vpop.xlane.xlu0 %1718 }
 0x5fe   :  { %4642 = vrsqrt.f32 %v1885_v19  ;;  %v1854_v50 = vmax.f32 %v1838_v8, 0.0  ;;  %v1807_v24 = vmul.f32 0.0078125, %v1781_v14  ;;  %v5760_v4 = vmul.f32 0.0078125, %v1719_v35 }
 0x5ff   :  { %v4637_v5 = vpop.eup %4636  ;;  %v1867_v19 = vsub.f32 %v5648_v60, %v5739_v52  ;;  %v1868_v52 = vsub.f32 %v5654_v44, %v5743_v21  ;;  %v1869_v21 = vsub.f32 %v5660_v28, %v5747_v16  ;;  %v1870_v16 = vsub.f32 %v5666_v59, %v5751_v13 }
 0x600   :  { %v1886_v47 = vadd.f32 1e-05, %v1854_v50  ;;  %v1839_v27 = vsub.f32 %v1807_v24, %v1823_v30  ;;  %v1824_v2 = vmul.f32 %v5760_v4, %v5760_v4  ;;  %v1914_v25 = vmul.f32 %v4637_v5, %v1866_v0 }
 0x601   :  { %v1721_v6 = vpop.xlane.xlu1 %1720  ;;  %v1783_v12 = vpop.xlane.xlu0 %1782  ;;  %v5777_v30 = vrot.slane %v4764_v58, %v6668_v15  ;;  %v4532_v15 = vld [vmem:[#allocation8] sm:$0xff]  }
 0x602   :  { %4644 = vrsqrt.f32 %v1886_v47  ;;  %v1855_v45 = vmax.f32 %v1839_v27, 0.0  ;;  %v5770_v62 = vmul.f32 0.0078125, %v1721_v6  ;;  %v1808_v49 = vmul.f32 0.0078125, %v1783_v12 }
 0x603   :  { %v4639_v61 = vpop.eup %4638  ;;  %v1934_v8 = vmul.f32 %v5765_v40, %v1914_v25 }
 0x604   :  { %v1887_v14 = vadd.f32 1e-05, %v1855_v45  ;;  %v1840_v35 = vsub.f32 %v1808_v49, %v1824_v2  ;;  %v1825_v50 = vmul.f32 %v5770_v62, %v5770_v62  ;;  %v1915_v0 = vmul.f32 %v4639_v61, %v1867_v19 }
 0x605   :  { %v1785_v24 = vpop.xlane.xlu1 %1784  ;;  %v1723_v5 = vpop.xlane.xlu0 %1722  ;;  %v1954_v12 = vadd.f32 %v5777_v30, %v1934_v8 }
 0x606   :  { %4646 = vrsqrt.f32 %v1887_v14  ;;  %v1856_v47 = vmax.f32 %v1840_v35, 0.0  ;;  %v1809_v27 = vmul.f32 0.0078125, %v1785_v24  ;;  %v5781_v6 = vmul.f32 0.0078125, %v1723_v5 }
 0x607   :  { %v4641_v60 = vpop.eup %4640  ;;  %v1935_v58 = vmul.f32 %v5765_v40, %v1915_v0  ;;  %v1970_v8 = vmax.f32 %v1954_v12, 0.0 }
 0x608   :  { %v1888_v2 = vadd.f32 1e-05, %v1856_v47  ;;  %v1841_v25 = vsub.f32 %v1809_v27, %v1825_v50  ;;  %v1826_v45 = vmul.f32 %v5781_v6, %v5781_v6  ;;  %v1916_v14 = vmul.f32 %v4641_v60, %v1868_v52 }
 0x609   :  { %v1725_v49 = vpop.xlane.xlu1 %1724  ;;  %v1787_v61 = vpop.xlane.xlu0 %1786  ;;  %v1955_v19 = vadd.f32 %v5777_v30, %v1935_v58 }
 0x60a   :  { %4648 = vrsqrt.f32 %v1888_v2  ;;  %v1857_v35 = vmax.f32 %v1841_v25, 0.0  ;;  %v5790_v24 = vmul.f32 0.0078125, %v1725_v49  ;;  %v1810_v5 = vmul.f32 0.0078125, %v1787_v61 }
 0x60b   :  { %v4643_v44 = vpop.eup %4642  ;;  %v1971_v0 = vmax.f32 %v1955_v19, 0.0  ;;  %v1936_v50 = vmul.f32 %v5765_v40, %v1916_v14 }
 0x60c   :  { %v1889_v47 = vadd.f32 1e-05, %v1857_v35  ;;  %v1842_v27 = vsub.f32 %v1810_v5, %v1826_v45  ;;  %v1827_v58 = vmul.f32 %v5790_v24, %v5790_v24  ;;  %v1917_v25 = vmul.f32 %v4643_v44, %v1869_v21 }
 0x60d   :  { %v1789_v60 = vpop.xlane.xlu1 %1788  ;;  %v1727_v52 = vpop.xlane.xlu0 %1726  ;;  %v2035_v2 = vpack.c.bf16 %v1971_v0, %v1970_v8  ;;  %v1956_v45 = vadd.f32 %v5777_v30, %v1936_v50  ;;  %v1871_v50 = vsub.f32 %v5672_v31, %v5755_v23  ;;  %v1872_v23 = vsub.f32 %v5678_v22, %v5760_v4 }
 0x60e   :  { %4650 = vrsqrt.f32 %v1889_v47  ;;  %v1858_v49 = vmax.f32 %v1842_v27, 0.0  ;;  %v1811_v61 = vmul.f32 0.0078125, %v1789_v60  ;;  %v5797_v18 = vmul.f32 0.0078125, %v1727_v52 }
 0x60f   :  { %v4645_v28 = vpop.eup %4644  ;;  %2223 = vmatprep.mubr.bf16.mxu0 %v2035_v2  ;;  %v1937_v12 = vmul.f32 %v5765_v40, %v1917_v25  ;;  %v1972_v27 = vmax.f32 %v1956_v45, 0.0  ;;  %v4533_v2 = vld [vmem:[#allocation8 + $0x8] sm:$0xff]  }
 0x610   :  { %v1890_v19 = vadd.f32 1e-05, %v1858_v49  ;;  %v1843_v14 = vsub.f32 %v1811_v61, %v1827_v58  ;;  %2224 = vmatmul.mubr.bf16.vlgmr.msra.gmra.mxu0 %v4532_v15  ;;  %v1828_v35 = vmul.f32 %v5797_v18, %v5797_v18  ;;  %v1918_v8 = vmul.f32 %v4645_v28, %v1870_v16 }
 0x611   :  { %v1729_v5 = vpop.xlane.xlu1 %1728  ;;  %v1791_v44 = vpop.xlane.xlu0 %1790  ;;  %v1957_v21 = vadd.f32 %v5777_v30, %v1937_v12 }
 0x612   :  { %4652 = vrsqrt.f32 %v1890_v19  ;;  %v1859_v0 = vmax.f32 %v1843_v14, 0.0  ;;  %v5806_v47 = vmul.f32 0.0078125, %v1729_v5  ;;  %v1812_v59 = vmul.f32 0.0078125, %v1791_v44 }
 0x613   :  { %v4647_v13 = vpop.eup %4646  ;;  %v1973_v58 = vmax.f32 %v1957_v21, 0.0  ;;  %v1938_v15 = vmul.f32 %v5765_v40, %v1918_v8 }
 0x614   :  { %v1891_v60 = vadd.f32 1e-05, %v1859_v0  ;;  %v1844_v52 = vsub.f32 %v1812_v59, %v1828_v35  ;;  %v1829_v25 = vmul.f32 %v5806_v47, %v5806_v47  ;;  %v1919_v16 = vmul.f32 %v4647_v13, %v1871_v50 }
 0x615   :  { %v1793_v49 = vpop.xlane.xlu1 %1792  ;;  %v1731_v61 = vpop.xlane.xlu0 %1730  ;;  %v2036_v28 = vpack.c.bf16 %v1973_v58, %v1972_v27  ;;  %v1958_v35 = vadd.f32 %v5777_v30, %v1938_v15  ;;  %v1873_v58 = vsub.f32 %v5684_v37, %v5770_v62  ;;  %v1874_v62 = vsub.f32 %v5690_v26, %v5781_v6 }
 0x616   :  { %4654 = vrsqrt.f32 %v1891_v60  ;;  %v1860_v12 = vmax.f32 %v1844_v52, 0.0  ;;  %v1813_v19 = vmul.f32 0.0078125, %v1793_v49  ;;  %v5813_v14 = vmul.f32 0.0078125, %v1731_v61  ;;  %v4534_v49 = vld [vmem:[#allocation8 + $0x10] sm:$0xff]  }
 0x617   :  { %v4649_v31 = vpop.eup %4648  ;;  %2231 = vmatprep.mubr.bf16.mxu0 %v2036_v28  ;;  %v1939_v45 = vmul.f32 %v5765_v40, %v1919_v16  ;;  %v1974_v15 = vmax.f32 %v1958_v35, 0.0 }
 0x618   :  { %v1892_v5 = vadd.f32 1e-05, %v1860_v12  ;;  %v1845_v44 = vsub.f32 %v1813_v19, %v1829_v25  ;;  %2232 = vmatmul.mubr.bf16.gmra.mxu0 %v4533_v2  ;;  %v1830_v21 = vmul.f32 %v5813_v14, %v5813_v14  ;;  %v1920_v13 = vmul.f32 %v4649_v31, %v1872_v23 }
 0x619   :  { %v1733_v8 = vpop.xlane.xlu1 %1732  ;;  %v1795_v0 = vpop.xlane.xlu0 %1794  ;;  %v1959_v59 = vadd.f32 %v5777_v30, %v1939_v45 }
 0x61a   :  { %4656 = vrsqrt.f32 %v1892_v5  ;;  %v1861_v50 = vmax.f32 %v1845_v44, 0.0  ;;  %v5822_v27 = vmul.f32 0.0078125, %v1733_v8  ;;  %v1814_v22 = vmul.f32 0.0078125, %v1795_v0 }
 0x61b   :  { %v4651_v4 = vpop.eup %4650  ;;  %v1975_v60 = vmax.f32 %v1959_v59, 0.0  ;;  %v1940_v52 = vmul.f32 %v5765_v40, %v1920_v13 }
 0x61c   :  { %v1893_v2 = vadd.f32 1e-05, %v1861_v50  ;;  %v1846_v25 = vsub.f32 %v1814_v22, %v1830_v21  ;;  %v1831_v61 = vmul.f32 %v5822_v27, %v5822_v27  ;;  %v1921_v19 = vmul.f32 %v4651_v4, %v1873_v58 }
 0x61d   :  { %v1797_v28 = vpop.xlane.xlu1 %1796  ;;  %v1735_v16 = vpop.xlane.xlu0 %1734  ;;  %v2037_v12 = vpack.c.bf16 %v1975_v60, %v1974_v15  ;;  %v1960_v5 = vadd.f32 %v5777_v30, %v1940_v52  ;;  %v1875_v58 = vsub.f32 %v5696_v29, %v5790_v24 }
 0x61e   :  { %4658 = vrsqrt.f32 %v1893_v2  ;;  %v1862_v31 = vmax.f32 %v1846_v25, 0.0  ;;  %v1815_v23 = vmul.f32 0.0078125, %v1797_v28  ;;  %v5829_v45 = vmul.f32 0.0078125, %v1735_v16 }
 0x61f   :  { %v4653_v37 = vpop.eup %4652  ;;  %2239 = vmatprep.mubr.bf16.mxu0 %v2037_v12  ;;  %v1941_v35 = vmul.f32 %v5765_v40, %v1921_v19  ;;  %v1976_v15 = vmax.f32 %v1960_v5, 0.0 }
 0x620   :  { %v1894_v44 = vadd.f32 1e-05, %v1862_v31  ;;  %v1847_v21 = vsub.f32 %v1815_v23, %v1831_v61  ;;  %2240 = vmatmul.mubr.bf16.gmra.mxu0 %v4534_v49  ;;  %v1832_v8 = vmul.f32 %v5829_v45, %v5829_v45  ;;  %v1922_v50 = vmul.f32 %v4653_v37, %v1874_v62  ;;  %v4535_v49 = vld [vmem:[#allocation8 + $0x18] sm:$0xff]  }
 0x621   :  { %v1737_v0 = vpop.xlane.xlu1 %1736  ;;  %v1799_v59 = vpop.xlane.xlu0 %1798  ;;  %v1961_v13 = vadd.f32 %v5777_v30, %v1941_v35  ;;  %v1876_v61 = vsub.f32 %v5702_v1, %v5797_v18  ;;  %v1877_v18 = vsub.f32 %v5708_v38, %v5806_v47 }
 0x622   :  { %4660 = vrsqrt.f32 %v1894_v44  ;;  %v1863_v22 = vmax.f32 %v1847_v21, 0.0  ;;  %v5838_v4 = vmul.f32 0.0078125, %v1737_v0  ;;  %v1816_v26 = vmul.f32 0.0078125, %v1799_v59 }
 0x623   :  { %v4655_v6 = vpop.eup %4654  ;;  %v1977_v60 = vmax.f32 %v1961_v13, 0.0  ;;  %v1942_v52 = vmul.f32 %v5765_v40, %v1922_v50  ;;  %v4536_v50 = vld [vmem:[#allocation8 + $0x20] sm:$0xff]  }
 0x624   :  { %v1895_v2 = vadd.f32 1e-05, %v1863_v22  ;;  %v1848_v25 = vsub.f32 %v1816_v26, %v1832_v8  ;;  %v1923_v12 = vmul.f32 %v4655_v6, %v1875_v58  ;;  %v1833_v19 = vmul.f32 %v5838_v4, %v5838_v4 }
 0x625   :  { %v1801_v28 = vpop.xlane.xlu1 %1800  ;;  %v2038_v16 = vpack.c.bf16 %v1977_v60, %v1976_v15  ;;  %v1962_v37 = vadd.f32 %v5777_v30, %v1942_v52  ;;  %v1878_v6 = vsub.f32 %v5714_v39, %v5813_v14  ;;  %v1879_v52 = vsub.f32 %v5720_v36, %v5822_v27  ;;  %v4537_v14 = vld [vmem:[#allocation8 + $0x28] sm:$0xff]  }
 0x626   :  { %4662 = vrsqrt.f32 %v1895_v2  ;;  %v1864_v31 = vmax.f32 %v1848_v25, 0.0  ;;  %v1817_v23 = vmul.f32 0.0078125, %v1801_v28  ;;  %v1943_v24 = vmul.f32 %v5765_v40, %v1923_v12 }
 0x627   :  { %v4657_v29 = vpop.eup %4656  ;;  %2247 = vmatprep.mubr.bf16.mxu0 %v2038_v16  ;;  %v1978_v0 = vmax.f32 %v1962_v37, 0.0  ;;  %v1880_v16 = vsub.f32 %v5726_v20, %v5829_v45  ;;  %v4538_v20 = vld [vmem:[#allocation8 + $0x30] sm:$0xff]  }
 0x628   :  { %v1896_v62 = vadd.f32 1e-05, %v1864_v31  ;;  %v1849_v35 = vsub.f32 %v1817_v23, %v1833_v19  ;;  %2248 = vmatmul.mubr.bf16.gmra.mxu0 %v4535_v49  ;;  %v1924_v5 = vmul.f32 %v4657_v29, %v1876_v61  ;;  %v1963_v1 = vadd.f32 %v5777_v30, %v1943_v24 }
 0x629   :  { %v1881_v23 = vsub.f32 %v5732_v11, %v5838_v4  ;;  %v4539_v11 = vld [vmem:[#allocation8 + $0x38] sm:$0xff]  }
 0x62a   :  { %4664 = vrsqrt.f32 %v1896_v62  ;;  %v1865_v44 = vmax.f32 %v1849_v35, 0.0  ;;  %v1944_v21 = vmul.f32 %v5765_v40, %v1924_v5  ;;  %v1979_v59 = vmax.f32 %v1963_v1, 0.0 }
 0x62b   :  { %v4659_v8 = vpop.eup %4658 }
 0x62c   :  { %v1897_v13 = vadd.f32 1e-05, %v1865_v44  ;;  %v1925_v22 = vmul.f32 %v4659_v8, %v1877_v18  ;;  %v2039_v26 = vpack.c.bf16 %v1979_v59, %v1978_v0  ;;  %v1964_v15 = vadd.f32 %v5777_v30, %v1944_v21 }
 0x62e   :  { %4666 = vrsqrt.f32 %v1897_v13  ;;  %v1945_v58 = vmul.f32 %v5765_v40, %v1925_v22  ;;  %2255 = vmatprep.mubr.bf16.mxu0 %v2039_v26  ;;  %v1980_v2 = vmax.f32 %v1964_v15, 0.0  ;;  %v5874_v13 = vld [vmem:[#allocation13 + $0x10] sm:$0xff] }
 0x62f   :  { %v4661_v38 = vpop.eup %4660 }
 0x630   :  { %2256 = vmatmul.mubr.bf16.gmra.mxu0 %v4536_v50  ;;  %v1965_v47 = vadd.f32 %v5777_v30, %v1945_v58  ;;  %v1926_v60 = vmul.f32 %v4661_v38, %v1878_v6 }
 0x632   :  { %v1981_v25 = vmax.f32 %v1965_v47, 0.0  ;;  %v1946_v49 = vmul.f32 %v5765_v40, %v1926_v60 }
 0x633   :  { %v4663_v61 = vpop.eup %4662 }
 0x634   :  { %v2040_v39 = vpack.c.bf16 %v1981_v25, %v1980_v2  ;;  %v1927_v28 = vmul.f32 %v4663_v61, %v1879_v52  ;;  %v1966_v19 = vadd.f32 %v5777_v30, %v1946_v49 }
 0x636   :  { %2263 = vmatprep.mubr.bf16.mxu0 %v2040_v39  ;;  %v1947_v12 = vmul.f32 %v5765_v40, %v1927_v28  ;;  %v1982_v29 = vmax.f32 %v1966_v19, 0.0 }
 0x637   :  { %v4665_v31 = vpop.eup %4664 }
 0x638   :  { %2264 = vmatmul.mubr.bf16.gmra.mxu0 %v4537_v14  ;;  %v1967_v36 = vadd.f32 %v5777_v30, %v1947_v12  ;;  %v1928_v27 = vmul.f32 %v4665_v31, %v1880_v16 }
 0x63a   :  { %v1983_v24 = vmax.f32 %v1967_v36, 0.0  ;;  %v1948_v37 = vmul.f32 %v5765_v40, %v1928_v27 }
 0x63b   :  { %v4667_v62 = vpop.eup %4666 }
 0x63c   :  { %v2041_v35 = vpack.c.bf16 %v1983_v24, %v1982_v29  ;;  %v1929_v45 = vmul.f32 %v4667_v62, %v1881_v23  ;;  %v1968_v1 = vadd.f32 %v5777_v30, %v1948_v37 }
 0x63e   :  { %2271 = vmatprep.mubr.bf16.mxu0 %v2041_v35  ;;  %v1949_v5 = vmul.f32 %v5765_v40, %v1929_v45  ;;  %v1984_v44 = vmax.f32 %v1968_v1, 0.0  ;;  %v5878_v40 = vrot.slane %v5874_v13, %v5060_v54 }
 0x640   :  { %2272 = vmatmul.mubr.bf16.gmra.mxu0 %v4538_v20  ;;  %v1969_v18 = vadd.f32 %v5777_v30, %v1949_v5 }
 0x642   :  { %v1985_v21 = vmax.f32 %v1969_v18, 0.0 }
 0x644   :  { %v2042_v8 = vpack.c.bf16 %v1985_v21, %v1984_v44 }
 0x646   :  { %2279 = vmatprep.mubr.bf16.mxu0 %v2042_v8 }
 0x648   :  { %2280 = vmatmul.mubr.bf16.gmra.mxu0 %v4539_v11 }
 0x6d0   :  { %v4167_v4 = vpop.f32.mrf.mxu0 }
 0x6d2   :  { %v4168_v0 = vpop.f32.mrf.mxu0 }
 0x6d3   :  { %v5872_v59 = vadd.f32 %v4168_v0, %v4167_v4 }
 0x6d4   :  { %v4170_v50 = vpop.f32.mrf.mxu0 }
 0x6d6   :  { %v4171_v22 = vpop.f32.mrf.mxu0 }
 0x6d7   :  { %v4172_v26 = vadd.f32 %v4171_v22, %v4170_v50 }
 0x6d8   :  { %v4173_v30 = vpop.f32.mrf.mxu0 }
 0x6d9   :  { %v5881_v6 = vadd.f32 %v4172_v26, %v5878_v40 }
 0x6da   :  { %v4174_v58 = vpop.f32.mrf.mxu0 }
 0x6db   :  { %v5883_v15 = vadd.f32 %v4174_v58, %v4173_v30 }
 0x6dc   :  { %v4176_v38 = vpop.f32.mrf.mxu0 }
 0x6de   :  { %v4177_v47 = vpop.f32.mrf.mxu0 }
 0x6df   :  { %v5885_v60 = vadd.f32 %v4177_v47, %v4176_v38 }
 0x6e0   :  { %v5887_v52 = vpop.f32.mrf.mxu0 }
 0x6e2   :  { %v5889_v2 = vpop.f32.mrf.mxu0 }
 0x6e4   :  { %v5891_v25 = vpop.f32.mrf.mxu0 }
 0x6e6   :  { %v5893_v49 = vpop.f32.mrf.mxu0 }
 0x6e8   :  { %v4185_v61 = vpop.f32.mrf.mxu0 }
 0x6ea   :  { %v4186_v39 = vpop.f32.mrf.mxu0 }
 0x6eb   :  { %v4187_v14 = vadd.f32 %v4186_v39, %v4185_v61 }
 0x6ec   :  { %v4188_v28 = vpop.f32.mrf.mxu0 }
 0x6ed   :  { %v5896_v16 = vadd.f32 %v4187_v14, %v5878_v40 }
 0x6ee   :  { %v4189_v12 = vpop.f32.mrf.mxu0 }
 0x6ef   :  { %v4190_v19 = vadd.f32 %v4189_v12, %v4188_v28  ;;  %2300 = vadd.xlane.f32.xlu0 %v5896_v16 }
 0x6f0   :  { %v4191_v31 = vpop.f32.mrf.mxu0 }
 0x6f1   :  { %v5900_v36 = vadd.f32 %v4190_v19, %v5878_v40 }
 0x6f2   :  { %v4192_v27 = vpop.f32.mrf.mxu0 }
 0x6f3   :  { %v4193_v23 = vadd.f32 %v4192_v27, %v4191_v31  ;;  %2302 = vadd.xlane.f32.xlu1 %v5900_v36 }
 0x6f4   :  { %v4194_v29 = vpop.f32.mrf.mxu0 }
 0x6f5   :  { %v5904_v24 = vadd.f32 %v4193_v23, %v5878_v40 }
 0x6f6   :  { %v4195_v37 = vpop.f32.mrf.mxu0 }
 0x6f7   :  { %v4196_v62 = vadd.f32 %v4195_v37, %v4194_v29  ;;  %2304 = vadd.xlane.f32.xlu0 %v5904_v24  ;;  %v2344_v45 = vmul.f32 %v5904_v24, %v5904_v24 }
 0x6f8   :  { %v4197_v35 = vpop.f32.mrf.mxu0 }
 0x6f9   :  { %v5908_v20 = vadd.f32 %v4196_v62, %v5878_v40 }
 0x6fa   :  { %v4198_v5 = vpop.f32.mrf.mxu0 }
 0x6fb   :  { %v4199_v1 = vadd.f32 %v4198_v5, %v4197_v35  ;;  %2306 = vadd.xlane.f32.xlu1 %v5908_v20  ;;  %2368 = vadd.xlane.f32.xlu0 %v2344_v45  ;;  %v2345_v21 = vmul.f32 %v5908_v20, %v5908_v20  ;;  %v4181_v45 = vadd.f32 %v5889_v2, %v5887_v52 }
 0x6fc   :  { %v4200_v18 = vpop.f32.mrf.mxu0 }
 0x6fd   :  { %v5914_v44 = vadd.f32 %v4199_v1, %v5878_v40  ;;  %v2342_v1 = vmul.f32 %v5896_v16, %v5896_v16 }
 0x6fe   :  { %v4201_v8 = vpop.f32.mrf.mxu0 }
 0x6ff   :  { %v4202_v11 = vadd.f32 %v4201_v8, %v4200_v18  ;;  %2370 = vadd.xlane.f32.xlu1 %v2345_v21  ;;  %2308 = vadd.xlane.f32.xlu0 %v5914_v44  ;;  %v2346_v50 = vmul.f32 %v5914_v44, %v5914_v44  ;;  %v5956_v18 = vadd.f32 %v4181_v45, %v5878_v40 }
 0x700   :  { %v4203_v4 = vpop.f32.mrf.mxu0  ;;  %v4184_v21 = vadd.f32 %v5893_v49, %v5891_v25  ;;  %v2343_v8 = vmul.f32 %v5900_v36, %v5900_v36  ;;  %v5978_v49 = vadd.f32 %v5885_v60, %v5878_v40 }
 0x701   :  { %v5920_v0 = vadd.f32 %v4202_v11, %v5878_v40  ;;  %v2340_v2 = vmul.f32 %v5956_v18, %v5956_v18  ;;  %v5971_v11 = vadd.f32 %v5883_v15, %v5878_v40  ;;  %v5985_v15 = vadd.f32 %v5872_v59, %v5878_v40  ;;  %v5998_v59 = vld [vmem:[%s6661_s5] ss:$0 sm:$0xff]  ;;  %s4948_s5 = smov [#allocation14]  }
 0x702   :  { %v4204_v22 = vpop.f32.mrf.mxu0  ;;  %v5964_v52 = vadd.f32 %v4184_v21, %v5878_v40  ;;  %vm2648_vm8 = vcmp.eq.s32.totalorder %v5328_v43, %v5998_v59  ;;  %vm2649_vm9 = vcmp.eq.s32.totalorder %v5331_v3, %v5998_v59  ;;  %vm2646_vm10 = vcmp.eq.s32.totalorder %v5057_v51, %v5998_v59  ;;  %s3790_s15 = sshll.u32 %s4948_s5, 4  ;;  %s3791_s15 = int_to_ptr.vmem [resolvable:$true] %s3790_s15 }
 0x703   :  { %v4205_v26 = vadd.f32 %v4204_v22, %v4203_v4  ;;  %2310 = vadd.xlane.f32.xlu1 %v5920_v0  ;;  %2372 = vadd.xlane.f32.xlu0 %v2346_v50  ;;  %v2347_v38 = vmul.f32 %v5920_v0, %v5920_v0  ;;  %v2338_v4 = vmul.f32 %v5971_v11, %v5971_v11  ;;  %vm6008_vm12 = vmpackc.low %vm2649_vm9, %vm2648_vm8  ;;  %s4906_s24 = scalar_lea.vmem %s3791_s15, 2048  ;;  %p4911_p8 = scmp.lt.s32.totalorder %s3791_s15, %s3791_s15 }
 0x704   :  { %v4206_v30 = vpop.f32.mrf.mxu0  ;;  %v2341_v25 = vmul.f32 %v5964_v52, %v5964_v52  ;;  %v2339_v50 = vmul.f32 %v5978_v49, %v5978_v49  ;;  %v2336_v60 = vmul.f32 %v5985_v15, %v5985_v15  ;;  %v2337_v22 = vmul.f32 %v5881_v6, %v5881_v6  ;;  %p4907_p7 = scmp.ne.s32.totalorder %s3791_s15, %s4906_s24  ;;  %p4912_p9 = scmp.lt.s32.totalorder %s4906_s24, %s4906_s24 }
 0x705   :  { %v5926_v58 = vadd.f32 %v4205_v26, %v5878_v40  ;;  %vm2647_vm11 = vcmp.eq.s32.totalorder %v5173_v57, %v5998_v59  ;;  %v6688_v26 = vmov 1.0|1.0   ;;  %vm2650_vm14 = vcmp.eq.s32.totalorder %v5334_v33, %v5998_v59  ;;  %v4544_v33 = vld [vmem:[#allocation11 + $0x228] sm:$0xff]  }
 0x706   :  { %v4207_v47 = vpop.f32.mrf.mxu0  ;;  %vm3943_vm13 = vmpackc.low %vm2647_vm11, %vm2646_vm10  ;;  %vm2651_vm15 = vcmp.eq.s32.totalorder %v5337_v48, %v5998_v59  ;;  %vm2652_vm1 = vcmp.eq.s32.totalorder %v5348_v46, %v5998_v59  ;;  %vm2653_vm2 = vcmp.eq.s32.totalorder %v5351_v41, %v5998_v59  ;;  %vm2654_vm3 = vcmp.eq.s32.totalorder %v5354_v53, %v5998_v59  ;;  %v4545_v48 = vld [vmem:[#allocation11 + $0x1e8] sm:$0xff]   ;;  %v4547_v46 = vld [vmem:[#allocation11 + $0x1e0] sm:$0xff]   ;;  %p4913_p10 = por %p4912_p9, %p4911_p8 }
 0x707   :  { %v4208_v61 = vadd.f32 %v4207_v47, %v4206_v30  ;;  %2374 = vadd.xlane.f32.xlu1 %v2347_v38  ;;  %2312 = vadd.xlane.f32.xlu0 %v5926_v58  ;;  %v2348_v28 = vmul.f32 %v5926_v58, %v5926_v58  ;;  %vm3947_vm0 = vmpackc.low %vm2651_vm15, %vm2650_vm14  ;;  %vm2655_vm4 = vcmp.eq.s32.totalorder %v5357_v34, %v5998_v59  ;;  %v6689_v41 = vld [vmem:[#allocation22_spill] sm:$0xff]  ;;  %v4548_v53 = vld [vmem:[#allocation11 + $0x218] sm:$0xff]  }
 0x708   :  { %v4209_v39 = vpop.f32.mrf.mxu0  ;;  %4391 = vmatprep.mubr.msk.bf16.mxu1 %vm3943_vm13, %v6688_v26  ;;  %vm3949_vm5 = vmpackc.low %vm2653_vm2, %vm2652_vm1  ;;  %vm2656_vm7 = vcmp.eq.s32.totalorder %v5370_v32, %v5998_v59  ;;  %vm2657_vm8 = vcmp.eq.s32.totalorder %v6689_v41, %v5998_v59  ;;  %v6690_v34 = vld [vmem:[#allocation23_spill] sm:$0xff]  ;;  %v4551_v32 = vld [vmem:[#allocation11 + $0x1d0] sm:$0xff]   ;;  %p4914_p11 = pnand %p4913_p10, %p4907_p7 }
 0x709   :  { %v5932_v14 = vadd.f32 %v4208_v61, %v5878_v40  ;;  %vm3951_vm6 = vmpackc.low %vm2655_vm4, %vm2654_vm3  ;;  %vm2658_vm9 = vcmp.eq.s32.totalorder %v6690_v34, %v5998_v59 }
 0x70a   :  { %v4210_v12 = vpop.f32.mrf.mxu0  ;;  %vm3953_vm11 = vmpackc.low %vm2657_vm8, %vm2656_vm7 }
 0x70b   :  { %v4211_v19 = vadd.f32 %v4210_v12, %v4209_v39  ;;  %2314 = vadd.xlane.f32.xlu1 %v5932_v14  ;;  %2376 = vadd.xlane.f32.xlu0 %v2348_v28  ;;  %v2349_v23 = vmul.f32 %v5932_v14, %v5932_v14 }
 0x70c   :  { %v4212_v31 = vpop.f32.mrf.mxu0 }
 0x70d   :  { %v5938_v27 = vadd.f32 %v4211_v19, %v5878_v40 }
 0x70e   :  { %v4213_v29 = vpop.f32.mrf.mxu0 }
 0x70f   :  { %v4214_v37 = vadd.f32 %v4213_v29, %v4212_v31  ;;  %2378 = vadd.xlane.f32.xlu1 %v2349_v23  ;;  %2316 = vadd.xlane.f32.xlu0 %v5938_v27  ;;  %v2350_v35 = vmul.f32 %v5938_v27, %v5938_v27 }
 0x711   :  { %v5944_v62 = vadd.f32 %v4214_v37, %v5878_v40  ;;  %v4546_v40 = vld [vmem:[#allocation11 + $0x220] sm:$0xff]  }
 0x713   :  { %2318 = vadd.xlane.f32.xlu1 %v5944_v62  ;;  %2380 = vadd.xlane.f32.xlu0 %v2350_v35  ;;  %v2351_v5 = vmul.f32 %v5944_v62, %v5944_v62 }
 0x717   :  { %2382 = vadd.xlane.f32.xlu1 %v2351_v5  ;;  %2364 = vadd.xlane.f32.xlu0 %v2342_v1 }
 0x71b   :  { %2366 = vadd.xlane.f32.xlu1 %v2343_v8  ;;  %2296 = vadd.xlane.f32.xlu0 %v5956_v18 }
 0x71f   :  { %2298 = vadd.xlane.f32.xlu1 %v5964_v52  ;;  %2360 = vadd.xlane.f32.xlu0 %v2340_v2 }
 0x723   :  { %2362 = vadd.xlane.f32.xlu1 %v2341_v25  ;;  %2292 = vadd.xlane.f32.xlu0 %v5971_v11 }
 0x727   :  { %2294 = vadd.xlane.f32.xlu1 %v5978_v49  ;;  %2356 = vadd.xlane.f32.xlu0 %v2338_v4 }
 0x72b   :  { %2358 = vadd.xlane.f32.xlu1 %v2339_v50  ;;  %2288 = vadd.xlane.f32.xlu0 %v5985_v15 }
 0x72f   :  { %2290 = vadd.xlane.f32.xlu1 %v5881_v6  ;;  %2352 = vadd.xlane.f32.xlu0 %v2336_v60 }
 0x733   :  { %2354 = vadd.xlane.f32.xlu1 %v2337_v22 }
 0x778   :  { %v2301_v30 = vpop.xlane.xlu0 %2300 }
 0x77c   :  { %v2303_v38 = vpop.xlane.xlu1 %2302 }
 0x780   :  { %v2305_v47 = vpop.xlane.xlu0 %2304 }
 0x781   :  { %v6027_v60 = vmul.f32 0.0078125, %v2305_v47 }
 0x783   :  { %v2408_v9 = vmul.f32 %v6027_v60, %v6027_v60 }
 0x784   :  { %v2307_v43 = vpop.xlane.xlu1 %2306  ;;  %v2369_v61 = vpop.xlane.xlu0 %2368 }
 0x785   :  { %v6017_v37 = vmul.f32 0.0078125, %v2307_v43 }
 0x787   :  { %v2409_v22 = vmul.f32 %v6017_v37, %v6017_v37 }
 0x788   :  { %v2371_v39 = vpop.xlane.xlu1 %2370  ;;  %v2309_v3 = vpop.xlane.xlu0 %2308 }
 0x789   :  { %v6019_v5 = vmul.f32 0.0078125, %v2309_v3  ;;  %v2393_v2 = vmul.f32 0.0078125, %v2371_v39 }
 0x78c   :  { %v2311_v28 = vpop.xlane.xlu1 %2310  ;;  %v2373_v12 = vpop.xlane.xlu0 %2372 }
 0x78d   :  { %v6013_v23 = vmul.f32 0.0078125, %v2311_v28  ;;  %v2394_v4 = vmul.f32 0.0078125, %v2373_v12  ;;  %v2425_v12 = vsub.f32 %v2393_v2, %v2409_v22 }
 0x78f   :  { %v2411_v1 = vmul.f32 %v6013_v23, %v6013_v23  ;;  %v2441_v2 = vmax.f32 %v2425_v12, 0.0 }
 0x790   :  { %v2375_v19 = vpop.xlane.xlu1 %2374  ;;  %v2313_v31 = vpop.xlane.xlu0 %2312 }
 0x791   :  { %v6015_v57 = vmul.f32 0.0078125, %v2313_v31  ;;  %v2395_v29 = vmul.f32 0.0078125, %v2375_v19  ;;  %v2410_v19 = vmul.f32 %v6019_v5, %v6019_v5 }
 0x793   :  { %v2412_v25 = vmul.f32 %v6015_v57, %v6015_v57  ;;  %v2427_v50 = vsub.f32 %v2395_v29, %v2411_v1  ;;  %v2426_v29 = vsub.f32 %v2394_v4, %v2410_v19 }
 0x794   :  { %v2315_v35 = vpop.xlane.xlu1 %2314  ;;  %v2377_v45 = vpop.xlane.xlu0 %2376 }
 0x795   :  { %v6023_v21 = vmul.f32 0.0078125, %v2315_v35  ;;  %v2396_v8 = vmul.f32 0.0078125, %v2377_v45  ;;  %v2392_v45 = vmul.f32 0.0078125, %v2369_v61  ;;  %v2443_v47 = vmax.f32 %v2427_v50, 0.0 }
 0x796   :  { %v2442_v4 = vmax.f32 %v2426_v29, 0.0 }
 0x797   :  { %v2428_v43 = vsub.f32 %v2396_v8, %v2412_v25  ;;  %v2413_v31 = vmul.f32 %v6023_v21, %v6023_v21  ;;  %v2424_v61 = vsub.f32 %v2392_v45, %v2408_v9  ;;  %v2475_v50 = vadd.f32 1e-05, %v2443_v47 }
 0x798   :  { %v2379_v3 = vpop.xlane.xlu1 %2378  ;;  %v2317_v28 = vpop.xlane.xlu0 %2316  ;;  %v2474_v45 = vadd.f32 1e-05, %v2442_v4 }
 0x799   :  { %v2397_v39 = vmul.f32 0.0078125, %v2379_v3  ;;  %v6035_v35 = vmul.f32 0.0078125, %v2317_v28  ;;  %v2444_v8 = vmax.f32 %v2428_v43, 0.0  ;;  %v6043_v28 = vmul.f32 0.0078125, %v2301_v30 }
 0x79a   :  { %v2440_v9 = vmax.f32 %v2424_v61, 0.0  ;;  %v2473_v30 = vadd.f32 1e-05, %v2441_v2 }
 0x79b   :  { %v2429_v1 = vsub.f32 %v2397_v39, %v2413_v31  ;;  %v2414_v63 = vmul.f32 %v6035_v35, %v6035_v35  ;;  %v6045_v31 = vmul.f32 0.0078125, %v2303_v38  ;;  %v2476_v43 = vadd.f32 1e-05, %v2444_v8 }
 0x79c   :  { %v2319_v25 = vpop.xlane.xlu1 %2318  ;;  %v2381_v51 = vpop.xlane.xlu0 %2380  ;;  %v2472_v61 = vadd.f32 1e-05, %v2440_v9 }
 0x79d   :  { %v2445_v54 = vmax.f32 %v2429_v1, 0.0  ;;  %v6041_v55 = vmul.f32 0.0078125, %v2319_v25  ;;  %v2398_v3 = vmul.f32 0.0078125, %v2381_v51  ;;  %v2406_v51 = vmul.f32 %v6043_v28, %v6043_v28 }
 0x79e   :  { %v2407_v47 = vmul.f32 %v6045_v31, %v6045_v31 }
 0x79f   :  { %v2477_v22 = vadd.f32 1e-05, %v2445_v54  ;;  %v2430_v19 = vsub.f32 %v2398_v3, %v2414_v63  ;;  %v2415_v1 = vmul.f32 %v6041_v55, %v6041_v55 }
 0x7a0   :  { %v2383_v39 = vpop.xlane.xlu1 %2382  ;;  %v2365_v56 = vpop.xlane.xlu0 %2364 }
 0x7a1   :  { %v2446_v42 = vmax.f32 %v2430_v19, 0.0  ;;  %v2399_v25 = vmul.f32 0.0078125, %v2383_v39  ;;  %v2390_v7 = vmul.f32 0.0078125, %v2365_v56  ;;  %4668 = vrsqrt.f32 %v2477_v22 }
 0x7a2   :  { %4670 = vrsqrt.f32 %v2475_v50 }
 0x7a3   :  { %v2478_v54 = vadd.f32 1e-05, %v2446_v42  ;;  %v2431_v63 = vsub.f32 %v2399_v25, %v2415_v1  ;;  %4672 = vrsqrt.f32 %v2476_v43  ;;  %v2422_v38 = vsub.f32 %v2390_v7, %v2406_v51 }
 0x7a4   :  { %v2367_v12 = vpop.xlane.xlu1 %2366  ;;  %v2297_v29 = vpop.xlane.xlu0 %2296 }
 0x7a5   :  { %4674 = vrsqrt.f32 %v2478_v54  ;;  %v2447_v8 = vmax.f32 %v2431_v63, 0.0  ;;  %v2391_v56 = vmul.f32 0.0078125, %v2367_v12  ;;  %v6053_v3 = vmul.f32 0.0078125, %v2297_v29 }
 0x7a6   :  { %4676 = vrsqrt.f32 %v2473_v30  ;;  %v2438_v50 = vmax.f32 %v2422_v38, 0.0  ;;  %v6065_v29 = vrot.slane %v5874_v13, %v5232_v10 }
 0x7a7   :  { %4678 = vrsqrt.f32 %v2474_v45  ;;  %v2479_v2 = vadd.f32 1e-05, %v2447_v8  ;;  %v2423_v4 = vsub.f32 %v2391_v56, %v2407_v47  ;;  %v2404_v42 = vmul.f32 %v6053_v3, %v6053_v3 }
 0x7a8   :  { %v2299_v7 = vpop.xlane.xlu1 %2298  ;;  %v2361_v22 = vpop.xlane.xlu0 %2360  ;;  %v2470_v51 = vadd.f32 1e-05, %v2438_v50  ;;  %v2454_v47 = vsub.f32 %v5896_v16, %v6043_v28  ;;  %v6071_v56 = vrot.slane %v5874_v13, %v5235_v17 }
 0x7a9   :  { %4680 = vrsqrt.f32 %v2479_v2  ;;  %v2439_v19 = vmax.f32 %v2423_v4, 0.0  ;;  %v6057_v43 = vmul.f32 0.0078125, %v2299_v7  ;;  %v2388_v39 = vmul.f32 0.0078125, %v2361_v22 }
 0x7aa   :  { %4682 = vrsqrt.f32 %v2472_v61  ;;  %v2459_v2 = vsub.f32 %v5920_v0, %v6013_v23  ;;  %v2461_v4 = vsub.f32 %v5932_v14, %v6023_v21  ;;  %v2460_v0 = vsub.f32 %v5926_v58, %v6015_v57 }
 0x7ab   :  { %v2471_v1 = vadd.f32 1e-05, %v2439_v19  ;;  %v2420_v25 = vsub.f32 %v2388_v39, %v2404_v42  ;;  %v2405_v45 = vmul.f32 %v6057_v43, %v6057_v43  ;;  %v2462_v14 = vsub.f32 %v5938_v27, %v6035_v35 }
 0x7ac   :  { %v2363_v30 = vpop.xlane.xlu1 %2362  ;;  %v2293_v9 = vpop.xlane.xlu0 %2292 }
 0x7ad   :  { %v2436_v54 = vmax.f32 %v2420_v25, 0.0  ;;  %v2389_v63 = vmul.f32 0.0078125, %v2363_v30  ;;  %v6061_v38 = vmul.f32 0.0078125, %v2293_v9  ;;  %4684 = vrsqrt.f32 %v2471_v1 }
 0x7ae   :  { %v4669_v12 = vpop.eup %4668  ;;  %4686 = vrsqrt.f32 %v2470_v51  ;;  %v2457_v30 = vsub.f32 %v5908_v20, %v6017_v37  ;;  %v2458_v51 = vsub.f32 %v5914_v44, %v6019_v5  ;;  %v2456_v44 = vsub.f32 %v5904_v24, %v6027_v60 }
 0x7af   :  { %v2421_v8 = vsub.f32 %v2389_v63, %v2405_v45  ;;  %v4671_v61 = vpop.eup %4670  ;;  %v2468_v50 = vadd.f32 1e-05, %v2436_v54  ;;  %v2402_v39 = vmul.f32 %v6061_v38, %v6061_v38  ;;  %v2509_v23 = vmul.f32 %v4669_v12, %v2461_v4 }
 0x7b0   :  { %v2295_v42 = vpop.xlane.xlu1 %2294  ;;  %v2357_v7 = vpop.xlane.xlu0 %2356  ;;  %v2507_v54 = vmul.f32 %v4671_v61, %v2459_v2  ;;  %v2463_v5 = vsub.f32 %v5944_v62, %v6041_v55 }
 0x7b1   :  { %v4673_v22 = vpop.eup %4672  ;;  %v2437_v19 = vmax.f32 %v2421_v8, 0.0  ;;  %v6079_v1 = vmul.f32 0.0078125, %v2295_v42  ;;  %v2386_v13 = vmul.f32 0.0078125, %v2357_v7  ;;  %4688 = vrsqrt.f32 %v2468_v50 }
 0x7b2   :  { %v4675_v25 = vpop.eup %4674  ;;  %v2508_v58 = vmul.f32 %v4673_v22, %v2460_v0  ;;  %v2529_v2 = vmul.f32 %v6065_v29, %v2509_v23  ;;  %v2527_v60 = vmul.f32 %v6065_v29, %v2507_v54  ;;  %v2455_v23 = vsub.f32 %v5900_v36, %v6045_v31 }
 0x7b3   :  { %v4677_v21 = vpop.eup %4676  ;;  %v2469_v9 = vadd.f32 1e-05, %v2437_v19  ;;  %v2418_v45 = vsub.f32 %v2386_v13, %v2402_v39  ;;  %v2403_v8 = vmul.f32 %v6079_v1, %v6079_v1  ;;  %v2510_v42 = vmul.f32 %v4675_v25, %v2462_v14 }
 0x7b4   :  { %v4679_v63 = vpop.eup %4678  ;;  %v2359_v20 = vpop.xlane.xlu1 %2358  ;;  %v2505_v22 = vmul.f32 %v4677_v21, %v2457_v30  ;;  %v2528_v24 = vmul.f32 %v6065_v29, %v2508_v58  ;;  %v2547_v36 = vadd.f32 %v6071_v56, %v2527_v60 }
 0x7b5   :  { %v2289_v37 = vpop.xlane.xlu0 %2288  ;;  %4690 = vrsqrt.f32 %v2469_v9  ;;  %v2434_v57 = vmax.f32 %v2418_v45, 0.0  ;;  %v2387_v27 = vmul.f32 0.0078125, %v2359_v20  ;;  %v2530_v61 = vmul.f32 %v6065_v29, %v2510_v42 }
 0x7b6   :  { %v6091_v35 = vmul.f32 0.0078125, %v2289_v37  ;;  %v4681_v12 = vpop.eup %4680  ;;  %v2506_v7 = vmul.f32 %v4679_v63, %v2458_v51  ;;  %v2549_v51 = vadd.f32 %v6071_v56, %v2529_v2  ;;  %v2525_v54 = vmul.f32 %v6065_v29, %v2505_v22 }
 0x7b7   :  { %v2466_v4 = vadd.f32 1e-05, %v2434_v57  ;;  %v2419_v50 = vsub.f32 %v2387_v27, %v2403_v8  ;;  %v4683_v19 = vpop.eup %4682  ;;  %v2511_v0 = vmul.f32 %v4681_v12, %v2463_v5  ;;  %v2550_v21 = vadd.f32 %v6071_v56, %v2530_v61 }
 0x7b8   :  { %v2400_v39 = vmul.f32 %v6091_v35, %v6091_v35  ;;  %v2291_v13 = vpop.xlane.xlu1 %2290  ;;  %v2504_v8 = vmul.f32 %v4683_v19, %v2456_v44  ;;  %v2548_v42 = vadd.f32 %v6071_v56, %v2528_v24  ;;  %v2526_v58 = vmul.f32 %v6065_v29, %v2506_v7 }
 0x7b9   :  { %v2353_v25 = vpop.xlane.xlu0 %2352  ;;  %4692 = vrsqrt.f32 %v2466_v4  ;;  %v2435_v55 = vmax.f32 %v2419_v50, 0.0  ;;  %v6103_v62 = vmul.f32 0.0078125, %v2291_v13  ;;  %v2531_v30 = vmul.f32 %v6065_v29, %v2511_v0 }
 0x7ba   :  { %v2384_v14 = vmul.f32 0.0078125, %v2353_v25  ;;  %v4685_v9 = vpop.eup %4684  ;;  %v2566_v5 = vmax.f32 %v2550_v21, 0.0  ;;  %v2565_v61 = vmax.f32 %v2549_v51, 0.0  ;;  %v2524_v22 = vmul.f32 %v6065_v29, %v2504_v8 }
 0x7bb   :  { %v2467_v45 = vadd.f32 1e-05, %v2435_v55  ;;  %v2551_v37 = vadd.f32 %v6071_v56, %v2531_v30  ;;  %v4687_v31 = vpop.eup %4686  ;;  %v2401_v57 = vmul.f32 %v6103_v62, %v6103_v62  ;;  %v2503_v2 = vmul.f32 %v4685_v9, %v2455_v23 }
 0x7bc   :  { %v2416_v63 = vsub.f32 %v2384_v14, %v2400_v39  ;;  %v2355_v20 = vpop.xlane.xlu1 %2354  ;;  %v2564_v39 = vmax.f32 %v2548_v42, 0.0  ;;  %v2546_v7 = vadd.f32 %v6071_v56, %v2526_v58  ;;  %v2502_v13 = vmul.f32 %v4687_v31, %v2454_v47 }
 0x7bd   :  { %4694 = vrsqrt.f32 %v2467_v45  ;;  %v2385_v12 = vmul.f32 0.0078125, %v2355_v20  ;;  %v2567_v44 = vmax.f32 %v2551_v37, 0.0  ;;  %v2453_v0 = vsub.f32 %v5964_v52, %v6057_v43 }
 0x7be   :  { %v2432_v27 = vmax.f32 %v2416_v63, 0.0  ;;  %v4689_v25 = vpop.eup %4688  ;;  %v2545_v60 = vadd.f32 %v6071_v56, %v2525_v54  ;;  %v2452_v14 = vsub.f32 %v5956_v18, %v6053_v3  ;;  %v2639_v23 = vpack.c.bf16 %v2565_v61, %v2564_v39 }
 0x7bf   :  { %v2417_v50 = vsub.f32 %v2385_v12, %v2401_v57  ;;  %v2640_v19 = vpack.c.bf16 %v2567_v44, %v2566_v5  ;;  %v2563_v30 = vmax.f32 %v2547_v36, 0.0  ;;  %v2523_v21 = vmul.f32 %v6065_v29, %v2503_v2 }
 0x7c0   :  { %v2464_v4 = vadd.f32 1e-05, %v2432_v27  ;;  %v2562_v28 = vmax.f32 %v2546_v7, 0.0  ;;  %v2544_v52 = vadd.f32 %v6071_v56, %v2524_v22  ;;  %v2522_v43 = vmul.f32 %v6065_v29, %v2502_v13 }
 0x7c1   :  { %v2433_v24 = vmax.f32 %v2417_v50, 0.0  ;;  %4375 = vmatprep.subr.bf16.mxu1 %v2640_v19  ;;  %v2500_v47 = vmul.f32 %v4689_v25, %v2452_v14  ;;  %v2561_v9 = vmax.f32 %v2545_v60, 0.0  ;;  %v2450_v18 = vsub.f32 %v5971_v11, %v6061_v38 }
 0x7c2   :  { %4696 = vrsqrt.f32 %v2464_v4  ;;  %v4691_v55 = vpop.eup %4690  ;;  %4376 = vmatpush3.bf16.msra.mxu1 %v2640_v19  ;;  %v2638_v3 = vpack.c.bf16 %v2563_v30, %v2562_v28  ;;  %v2543_v63 = vadd.f32 %v6071_v56, %v2523_v21  ;;  %v2560_v54 = vmax.f32 %v2544_v52, 0.0  ;;  %v4540_v30 = vld [vmem:[#allocation11 + $0x238] sm:$0xff]   ;;  %v4542_v21 = vld [vmem:[#allocation11 + $0x230] sm:$0xff]   ;;  %v6692_v52 = vld [vmem:[#allocation25_spill] sm:$0xff] }
 0x7c3   :  { %v2465_v51 = vadd.f32 1e-05, %v2433_v24  ;;  %v2501_v16 = vmul.f32 %v4691_v55, %v2453_v0  ;;  %4377 = vmatprep.subr.bf16.mxu1 %v2639_v23  ;;  %v2542_v20 = vadd.f32 %v6071_v56, %v2522_v43  ;;  %v2520_v37 = vmul.f32 %v6065_v29, %v2500_v47  ;;  %v4550_v28 = vld [vmem:[#allocation11 + $0x210] sm:$0xff]   ;;  %v4552_v47 = vld [vmem:[#allocation11 + $0x208] sm:$0xff]  }
 0x7c4   :  { %v2451_v58 = vsub.f32 %v5978_v49, %v6079_v1  ;;  %v2637_v31 = vpack.c.bf16 %v2561_v9, %v2560_v54  ;;  %v2559_v57 = vmax.f32 %v2543_v63, 0.0  ;;  %v2448_v44 = vsub.f32 %v5985_v15, %v6091_v35  ;;  %v6693_v43 = vld [vmem:[#allocation26_spill] sm:$0xff]  ;;  %v4553_v9 = vld [vmem:[#allocation11 + $0x1c8] sm:$0xff]  }
 0x7c5   :  { %4698 = vrsqrt.f32 %v2465_v51  ;;  %v2521_v8 = vmul.f32 %v6065_v29, %v2501_v16  ;;  %v2558_v27 = vmax.f32 %v2542_v20, 0.0  ;;  %v2540_v12 = vadd.f32 %v6071_v56, %v2520_v37  ;;  %v6691_v51 = vld [vmem:[#allocation24_spill] sm:$0xff]  ;;  %v4549_v16 = vld [vmem:[#allocation11 + $0x1d8] sm:$0xff]  }
 0x7c6   :  { %v4693_v45 = vpop.eup %4692  ;;  %4378 = vmatpush3.bf16.msra.mxu1 %v2639_v23  ;;  %v2449_v39 = vsub.f32 %v5881_v6, %v6103_v62  ;;  %vm2659_vm10 = vcmp.eq.s32.totalorder %v6691_v51, %v5998_v59  ;;  %vm2660_vm13 = vcmp.eq.s32.totalorder %v6692_v52, %v5998_v59  ;;  %vm2661_vm14 = vcmp.eq.s32.totalorder %v6693_v43, %v5998_v59  ;;  %v4556_v20 = vld [vmem:[#allocation10] sm:$0xff]  }
 0x7c7   :  { %4379 = vmatprep.subr.bf16.mxu1 %v2638_v3  ;;  %v2498_v42 = vmul.f32 %v4693_v45, %v2450_v18  ;;  %v2541_v11 = vadd.f32 %v6071_v56, %v2521_v8  ;;  %v2636_v49 = vpack.c.bf16 %v2559_v57, %v2558_v27  ;;  %v2556_v22 = vmax.f32 %v2540_v12, 0.0  ;;  %vm3957_vm15 = vmpackc.low %vm2661_vm14, %vm2660_vm13  ;;  %v4554_v45 = vld [vmem:[#allocation11 + $0x200] sm:$0xff]   ;;  %v4558_v27 = vld [vmem:[#allocation10 + $0x10] sm:$0xff]  }
 0x7c8   :  { %v4555_v18 = vld [vmem:[#allocation11 + $0x1c0] sm:$0xff]  }
 0x7c9   :  { %v2518_v5 = vmul.f32 %v6065_v29, %v2498_v42  ;;  %v2557_v1 = vmax.f32 %v2541_v11, 0.0 }
 0x7ca   :  { %v4695_v36 = vpop.eup %4694  ;;  %4380 = vmatpush3.bf16.msra.mxu1 %v2638_v3 }
 0x7cb   :  { %v2499_v38 = vmul.f32 %v4695_v36, %v2451_v58  ;;  %4381 = vmatprep.subr.bf16.mxu1 %v2637_v31  ;;  %v2538_v19 = vadd.f32 %v6071_v56, %v2518_v5  ;;  %v2635_v15 = vpack.c.bf16 %v2557_v1, %v2556_v22  ;;  %v4557_v36 = vld [vmem:[#allocation10 + $0x8] sm:$0xff]  }
 0x7cd   :  { %v2519_v61 = vmul.f32 %v6065_v29, %v2499_v38  ;;  %v2554_v0 = vmax.f32 %v2538_v19, 0.0 }
 0x7ce   :  { %4382 = vmatpush3.bf16.msra.mxu1 %v2637_v31 }
 0x7cf   :  { %v4697_v2 = vpop.eup %4696  ;;  %v2539_v4 = vadd.f32 %v6071_v56, %v2519_v61  ;;  %4383 = vmatprep.subr.bf16.mxu1 %v2636_v49  ;;  %v4559_v61 = vld [vmem:[#allocation10 + $0x18] sm:$0xff]  }
 0x7d0   :  { %v2496_v50 = vmul.f32 %v4697_v2, %v2448_v44 }
 0x7d1   :  { %v2555_v35 = vmax.f32 %v2539_v4, 0.0  ;;  %v4560_v4 = vld [vmem:[#allocation10 + $0x20] sm:$0xff]  }
 0x7d2   :  { %v2516_v7 = vmul.f32 %v6065_v29, %v2496_v50  ;;  %v4699_v13 = vpop.eup %4698  ;;  %4384 = vmatpush3.bf16.msra.mxu1 %v2636_v49 }
 0x7d3   :  { %v2497_v25 = vmul.f32 %v4699_v13, %v2449_v39  ;;  %4385 = vmatprep.subr.bf16.mxu1 %v2635_v15  ;;  %v2634_v55 = vpack.c.bf16 %v2555_v35, %v2554_v0  ;;  %v4561_v39 = vld [vmem:[#allocation10 + $0x28] sm:$0xff]   ;;  %v4562_v13 = vld [vmem:[#allocation10 + $0x30] sm:$0xff]   ;;  %v4563_v35 = vld [vmem:[#allocation10 + $0x38] sm:$0xff]  }
 0x7d4   :  { %v2536_v60 = vadd.f32 %v6071_v56, %v2516_v7 }
 0x7d5   :  { %v2517_v24 = vmul.f32 %v6065_v29, %v2497_v25  ;;  %v4541_v29 = vld [vmem:[#allocation11 + $0x1f8] sm:$0xff]  }
 0x7d6   :  { %4386 = vmatpush3.bf16.msra.mxu1 %v2635_v15  ;;  %v2552_v23 = vmax.f32 %v2536_v60, 0.0  ;;  %v6185_v25 = vld [vmem:[#allocation13 + $0x18] sm:$0xff] }
 0x7d7   :  { %v2537_v14 = vadd.f32 %v6071_v56, %v2517_v24  ;;  %4387 = vmatprep.subr.bf16.mxu1 %v2634_v55  ;;  %v4543_v56 = vld [vmem:[#allocation11 + $0x1f0] sm:$0xff]   ;;  %v6694_v24 = vld [vmem:[#allocation21_spill] sm:$0xff] }
 0x7d8   :  { %v6189_v60 = vrot.slane %v6185_v25, %v6694_v24 }
 0x7d9   :  { %v2553_v6 = vmax.f32 %v2537_v14, 0.0 }
 0x7da   :  { %4388 = vmatpush3.bf16.msra.mxu1 %v2634_v55 }
 0x7db   :  { %v2633_v62 = vpack.c.bf16 %v2553_v6, %v2552_v23 }
 0x7dd   :  { %4389 = vmatprep.subr.bf16.mxu1 %v2633_v62 }
 0x7de   :  { %4390 = vmatpush3.bf16.msra.mxu1 %v2633_v62 }
 0x7df   :  { %4231 = vmatprep.subr.bf16.mxu1 %v4540_v30 }
 0x7e1   :  { %4392 = vmatmul.mubr.msk.bf16.vlgmr.msra.gmra.mxu1 %vm6008_vm12, %v6688_v26  ;;  %vm3955_vm12 = vmpackc.low %vm2659_vm10, %vm2658_vm9 }
 0x7e2   :  { %4395 = vmatprep.mubr.msk.bf16.mxu1 %vm3947_vm0, %v6688_v26  ;;  %4232 = vmatpush3.bf16.msra.mxu1 %v4541_v29 }
 0x7e3   :  { %4233 = vmatprep.subr.bf16.mxu1 %v4542_v21 }
 0x7e6   :  { %4234 = vmatpush3.bf16.msra.mxu1 %v4543_v56 }
 0x7e7   :  { %4235 = vmatprep.subr.bf16.mxu1 %v4544_v33 }
 0x7e9   :  { %4396 = vmatmul.mubr.msk.bf16.gmra.mxu1 %vm3949_vm5, %v6688_v26 }
 0x7ea   :  { %4399 = vmatprep.mubr.msk.bf16.mxu1 %vm3951_vm6, %v6688_v26  ;;  %4236 = vmatpush3.bf16.msra.mxu1 %v4545_v48 }
 0x7eb   :  { %4237 = vmatprep.subr.bf16.mxu1 %v4546_v40 }
 0x7ee   :  { %4238 = vmatpush3.bf16.msra.mxu1 %v4547_v46 }
 0x7ef   :  { %4239 = vmatprep.subr.bf16.mxu1 %v4548_v53 }
 0x7f1   :  { %4400 = vmatmul.mubr.msk.bf16.gmra.mxu1 %vm3953_vm11, %v6688_v26 }
 0x7f2   :  { %4403 = vmatprep.mubr.msk.bf16.mxu1 %vm3955_vm12, %v6688_v26  ;;  %4240 = vmatpush3.bf16.msra.mxu1 %v4549_v16 }
 0x7f3   :  { %4241 = vmatprep.subr.bf16.mxu1 %v4550_v28 }
 0x7f6   :  { %4242 = vmatpush3.bf16.msra.mxu1 %v4551_v32 }
 0x7f7   :  { %4243 = vmatprep.subr.bf16.mxu1 %v4552_v47 }
 0x7f9   :  { %4404 = vmatmul.mubr.msk.bf16.gmra.mxu1 %vm3957_vm15, %v6688_v26 }
 0x7fa   :  { %4244 = vmatpush3.bf16.msra.mxu1 %v4553_v9 }
 0x7fb   :  { %4245 = vmatprep.subr.bf16.mxu1 %v4554_v45 }
 0x7fe   :  { %4246 = vmatpush3.bf16.msra.mxu1 %v4555_v18 }
 0x8a1   :  { %v4393_v3 = vpop.f32.mrf.mxu1 }
 0x8a3   :  { %v2736_v63 = vpop.f32.mrf.mxu1 }
 0x8a5   :  { %v4394_v8 = vpop.f32.mrf.mxu1 }
 0x8a6   :  { %v2800_v42 = vpack.c.bf16 %v4394_v8, %v4393_v3 }
 0x8a7   :  { %v2739_v54 = vpop.f32.mrf.mxu1 }
 0x8a8   :  { %v2799_v37 = vpack.c.bf16 %v2739_v54, %v2736_v63 }
 0x8a9   :  { %v4397_v59 = vpop.f32.mrf.mxu1 }
 0x8aa   :  { %2987 = vmatprep.mubr.bf16.mxu1 %v2799_v37 }
 0x8ab   :  { %2988 = vmatmul.mubr.bf16.vlgmr.msra.gmra.mxu1 %v4556_v20  ;;  %v2752_v58 = vpop.f32.mrf.mxu1 }
 0x8ac   :  { %2995 = vmatprep.mubr.bf16.mxu1 %v2800_v42 }
 0x8ad   :  { %v4398_v26 = vpop.f32.mrf.mxu1 }
 0x8ae   :  { %v2802_v5 = vpack.c.bf16 %v4398_v26, %v4397_v59 }
 0x8af   :  { %v2755_v31 = vpop.f32.mrf.mxu1 }
 0x8b0   :  { %v2801_v57 = vpack.c.bf16 %v2755_v31, %v2752_v58 }
 0x8b1   :  { %v4401_v11 = vpop.f32.mrf.mxu1 }
 0x8b3   :  { %2996 = vmatmul.mubr.bf16.gmra.mxu1 %v4557_v36  ;;  %v2768_v38 = vpop.f32.mrf.mxu1  ;;  %v4564_v36 = vld [vmem:[#allocation11 + $0x278] sm:$0xff]  }
 0x8b4   :  { %3003 = vmatprep.mubr.bf16.mxu1 %v2801_v57  ;;  %4407 = vmatprep.subr.bf16.mxu0 %v4564_v36 }
 0x8b5   :  { %v4402_v12 = vpop.f32.mrf.mxu1  ;;  %4408 = vmatpush3.bf16.msra.mxu0 %v4564_v36 }
 0x8b6   :  { %v2804_v22 = vpack.c.bf16 %v4402_v12, %v4401_v11  ;;  %v4565_v12 = vld [vmem:[#allocation11 + $0x270] sm:$0xff]  }
 0x8b7   :  { %v2771_v44 = vpop.f32.mrf.mxu1  ;;  %4409 = vmatprep.subr.bf16.mxu0 %v4565_v12 }
 0x8b8   :  { %v2803_v2 = vpack.c.bf16 %v2771_v44, %v2768_v38 }
 0x8b9   :  { %v4405_v49 = vpop.f32.mrf.mxu1  ;;  %4410 = vmatpush3.bf16.msra.mxu0 %v4565_v12 }
 0x8bb   :  { %3004 = vmatmul.mubr.bf16.gmra.mxu1 %v4558_v27  ;;  %v2784_v1 = vpop.f32.mrf.mxu1 }
 0x8bc   :  { %3011 = vmatprep.mubr.bf16.mxu1 %v2802_v5 }
 0x8bd   :  { %v4406_v50 = vpop.f32.mrf.mxu1 }
 0x8be   :  { %v2806_v15 = vpack.c.bf16 %v4406_v50, %v4405_v49 }
 0x8bf   :  { %v2787_v19 = vpop.f32.mrf.mxu1 }
 0x8c0   :  { %v2805_v7 = vpack.c.bf16 %v2787_v19, %v2784_v1  ;;  %v4566_v1 = vld [vmem:[#allocation11 + $0x268] sm:$0xff]  }
 0x8c1   :  { %4411 = vmatprep.subr.bf16.mxu0 %v4566_v1 }
 0x8c2   :  { %4412 = vmatpush3.bf16.msra.mxu0 %v4566_v1 }
 0x8c3   :  { %3012 = vmatmul.mubr.bf16.gmra.mxu1 %v4559_v61 }
 0x8c4   :  { %3019 = vmatprep.mubr.bf16.mxu1 %v2803_v2 }
 0x8cb   :  { %3020 = vmatmul.mubr.bf16.gmra.mxu1 %v4560_v4 }
 0x8cc   :  { %3027 = vmatprep.mubr.bf16.mxu1 %v2804_v22 }
 0x8d3   :  { %3028 = vmatmul.mubr.bf16.gmra.mxu1 %v4561_v39 }
 0x8d4   :  { %3035 = vmatprep.mubr.bf16.mxu1 %v2805_v7  ;;  %v4567_v7 = vld [vmem:[#allocation11 + $0x260] sm:$0xff]  }
 0x8d5   :  { %4413 = vmatprep.subr.bf16.mxu0 %v4567_v7 }
 0x8d6   :  { %4414 = vmatpush3.bf16.msra.mxu0 %v4567_v7 }
 0x8db   :  { %3036 = vmatmul.mubr.bf16.gmra.mxu1 %v4562_v13 }
 0x8dc   :  { %3043 = vmatprep.mubr.bf16.mxu1 %v2806_v15 }
 0x8e3   :  { %3044 = vmatmul.mubr.bf16.gmra.mxu1 %v4563_v35 }
 0x96b   :  { %v4247_v0 = vpop.f32.mrf.mxu1 }
 0x96d   :  { %v4248_v55 = vpop.f32.mrf.mxu1 }
 0x96e   :  { %v4249_v14 = vadd.f32 %v4248_v55, %v4247_v0 }
 0x96f   :  { %v4250_v23 = vpop.f32.mrf.mxu1 }
 0x970   :  { %v6192_v6 = vadd.f32 %v4249_v14, %v6189_v60  ;;  %v4568_v14 = vld [vmem:[#allocation11 + $0x258] sm:$0xff]  }
 0x971   :  { %v4251_v62 = vpop.f32.mrf.mxu1  ;;  %4415 = vmatprep.subr.bf16.mxu0 %v4568_v14 }
 0x972   :  { %v4252_v30 = vadd.f32 %v4251_v62, %v4250_v23  ;;  %3052 = vadd.xlane.f32.xlu0 %v6192_v6  ;;  %v3100_v56 = vmul.f32 %v6192_v6, %v6192_v6  ;;  %4416 = vmatpush3.bf16.msra.mxu0 %v4568_v14 }
 0x973   :  { %v4253_v29 = vpop.f32.mrf.mxu1 }
 0x974   :  { %v6196_v21 = vadd.f32 %v4252_v30, %v6189_v60 }
 0x975   :  { %v4254_v33 = vpop.f32.mrf.mxu1 }
 0x976   :  { %v4255_v48 = vadd.f32 %v4254_v33, %v4253_v29  ;;  %3054 = vadd.xlane.f32.xlu1 %v6196_v21  ;;  %3116 = vadd.xlane.f32.xlu0 %v3100_v56  ;;  %v3101_v41 = vmul.f32 %v6196_v21, %v6196_v21  ;;  %v4569_v33 = vld [vmem:[#allocation11 + $0x250] sm:$0xff]  }
 0x977   :  { %v4256_v40 = vpop.f32.mrf.mxu1  ;;  %4417 = vmatprep.subr.bf16.mxu0 %v4569_v33 }
 0x978   :  { %v6202_v46 = vadd.f32 %v4255_v48, %v6189_v60  ;;  %4418 = vmatpush3.bf16.msra.mxu0 %v4569_v33 }
 0x979   :  { %v4257_v53 = vpop.f32.mrf.mxu1 }
 0x97a   :  { %v4258_v34 = vadd.f32 %v4257_v53, %v4256_v40  ;;  %3118 = vadd.xlane.f32.xlu1 %v3101_v41  ;;  %3056 = vadd.xlane.f32.xlu0 %v6202_v46  ;;  %v3102_v28 = vmul.f32 %v6202_v46, %v6202_v46 }
 0x97b   :  { %v4259_v51 = vpop.f32.mrf.mxu1 }
 0x97c   :  { %v6208_v16 = vadd.f32 %v4258_v34, %v6189_v60 }
 0x97d   :  { %v4260_v32 = vpop.f32.mrf.mxu1 }
 0x97e   :  { %v4261_v52 = vadd.f32 %v4260_v32, %v4259_v51  ;;  %3058 = vadd.xlane.f32.xlu1 %v6208_v16  ;;  %3120 = vadd.xlane.f32.xlu0 %v3102_v28  ;;  %v3103_v9 = vmul.f32 %v6208_v16, %v6208_v16  ;;  %v4570_v51 = vld [vmem:[#allocation11 + $0x248] sm:$0xff]  }
 0x97f   :  { %v4262_v43 = vpop.f32.mrf.mxu1  ;;  %4419 = vmatprep.subr.bf16.mxu0 %v4570_v51 }
 0x980   :  { %v6214_v47 = vadd.f32 %v4261_v52, %v6189_v60  ;;  %4420 = vmatpush3.bf16.msra.mxu0 %v4570_v51 }
 0x981   :  { %v4263_v45 = vpop.f32.mrf.mxu1 }
 0x982   :  { %v4264_v18 = vadd.f32 %v4263_v45, %v4262_v43  ;;  %3122 = vadd.xlane.f32.xlu1 %v3103_v9  ;;  %3060 = vadd.xlane.f32.xlu0 %v6214_v47  ;;  %v3104_v8 = vmul.f32 %v6214_v47, %v6214_v47  ;;  %v4571_v45 = vld [vmem:[#allocation11 + $0x240] sm:$0xff]  }
 0x983   :  { %v4265_v3 = vpop.f32.mrf.mxu1  ;;  %4421 = vmatprep.subr.bf16.mxu0 %v4571_v45 }
 0x984   :  { %v6220_v63 = vadd.f32 %v4264_v18, %v6189_v60  ;;  %4422 = vmatpush3.bf16.msra.mxu0 %v4571_v45 }
 0x985   :  { %v4266_v54 = vpop.f32.mrf.mxu1 }
 0x986   :  { %v4267_v20 = vadd.f32 %v4266_v54, %v4265_v3  ;;  %3062 = vadd.xlane.f32.xlu1 %v6220_v63  ;;  %3124 = vadd.xlane.f32.xlu0 %v3104_v8  ;;  %v3105_v42 = vmul.f32 %v6220_v63, %v6220_v63 }
 0x987   :  { %v4268_v37 = vpop.f32.mrf.mxu1 }
 0x988   :  { %v6226_v59 = vadd.f32 %v4267_v20, %v6189_v60 }
 0x989   :  { %v4269_v58 = vpop.f32.mrf.mxu1 }
 0x98a   :  { %v4270_v26 = vadd.f32 %v4269_v58, %v4268_v37  ;;  %3126 = vadd.xlane.f32.xlu1 %v3105_v42  ;;  %3064 = vadd.xlane.f32.xlu0 %v6226_v59  ;;  %v3106_v11 = vmul.f32 %v6226_v59, %v6226_v59 }
 0x98b   :  { %v4271_v31 = vpop.f32.mrf.mxu1 }
 0x98c   :  { %v6232_v57 = vadd.f32 %v4270_v26, %v6189_v60 }
 0x98d   :  { %v4272_v38 = vpop.f32.mrf.mxu1 }
 0x98e   :  { %v4273_v27 = vadd.f32 %v4272_v38, %v4271_v31  ;;  %3066 = vadd.xlane.f32.xlu1 %v6232_v57  ;;  %3128 = vadd.xlane.f32.xlu0 %v3106_v11  ;;  %v3107_v61 = vmul.f32 %v6232_v57, %v6232_v57 }
 0x98f   :  { %v4274_v5 = vpop.f32.mrf.mxu1 }
 0x990   :  { %v6238_v44 = vadd.f32 %v4273_v27, %v6189_v60 }
 0x991   :  { %v4275_v2 = vpop.f32.mrf.mxu1 }
 0x992   :  { %v4276_v49 = vadd.f32 %v4275_v2, %v4274_v5  ;;  %3130 = vadd.xlane.f32.xlu1 %v3107_v61  ;;  %3068 = vadd.xlane.f32.xlu0 %v6238_v44  ;;  %v3108_v22 = vmul.f32 %v6238_v44, %v6238_v44 }
 0x993   :  { %v4277_v4 = vpop.f32.mrf.mxu1 }
 0x994   :  { %v6244_v50 = vadd.f32 %v4276_v49, %v6189_v60 }
 0x995   :  { %v4278_v19 = vpop.f32.mrf.mxu1 }
 0x996   :  { %v4279_v39 = vadd.f32 %v4278_v19, %v4277_v4  ;;  %3070 = vadd.xlane.f32.xlu1 %v6244_v50  ;;  %3132 = vadd.xlane.f32.xlu0 %v3108_v22  ;;  %v3109_v35 = vmul.f32 %v6244_v50, %v6244_v50 }
 0x997   :  { %v4280_v13 = vpop.f32.mrf.mxu1 }
 0x998   :  { %v6250_v15 = vadd.f32 %v4279_v39, %v6189_v60 }
 0x999   :  { %v4281_v0 = vpop.f32.mrf.mxu1 }
 0x99a   :  { %v4282_v24 = vadd.f32 %v4281_v0, %v4280_v13  ;;  %3134 = vadd.xlane.f32.xlu1 %v3109_v35  ;;  %3072 = vadd.xlane.f32.xlu0 %v6250_v15  ;;  %v3110_v62 = vmul.f32 %v6250_v15, %v6250_v15 }
 0x99b   :  { %v4283_v55 = vpop.f32.mrf.mxu1 }
 0x99c   :  { %v6256_v23 = vadd.f32 %v4282_v24, %v6189_v60 }
 0x99d   :  { %v4284_v30 = vpop.f32.mrf.mxu1 }
 0x99e   :  { %v4285_v29 = vadd.f32 %v4284_v30, %v4283_v55  ;;  %3074 = vadd.xlane.f32.xlu1 %v6256_v23  ;;  %3136 = vadd.xlane.f32.xlu0 %v3110_v62  ;;  %v3111_v40 = vmul.f32 %v6256_v23, %v6256_v23 }
 0x99f   :  { %v4286_v56 = vpop.f32.mrf.mxu1 }
 0x9a0   :  { %v6262_v48 = vadd.f32 %v4285_v29, %v6189_v60 }
 0x9a1   :  { %v4287_v41 = vpop.f32.mrf.mxu1 }
 0x9a2   :  { %v4288_v53 = vadd.f32 %v4287_v41, %v4286_v56  ;;  %3138 = vadd.xlane.f32.xlu1 %v3111_v40  ;;  %3076 = vadd.xlane.f32.xlu0 %v6262_v48  ;;  %v3112_v32 = vmul.f32 %v6262_v48, %v6262_v48 }
 0x9a3   :  { %v4289_v34 = vpop.f32.mrf.mxu1 }
 0x9a4   :  { %v6268_v28 = vadd.f32 %v4288_v53, %v6189_v60 }
 0x9a5   :  { %v4290_v52 = vpop.f32.mrf.mxu1 }
 0x9a6   :  { %v4291_v43 = vadd.f32 %v4290_v52, %v4289_v34  ;;  %3078 = vadd.xlane.f32.xlu1 %v6268_v28  ;;  %3140 = vadd.xlane.f32.xlu0 %v3112_v32  ;;  %v3113_v3 = vmul.f32 %v6268_v28, %v6268_v28 }
 0x9a7   :  { %v4292_v9 = vpop.f32.mrf.mxu1 }
 0x9a8   :  { %v6274_v18 = vadd.f32 %v4291_v43, %v6189_v60 }
 0x9a9   :  { %v4293_v8 = vpop.f32.mrf.mxu1 }
 0x9aa   :  { %v4294_v54 = vadd.f32 %v4293_v8, %v4292_v9  ;;  %3142 = vadd.xlane.f32.xlu1 %v3113_v3  ;;  %3080 = vadd.xlane.f32.xlu0 %v6274_v18  ;;  %v3114_v37 = vmul.f32 %v6274_v18, %v6274_v18 }
 0x9ac   :  { %v6280_v20 = vadd.f32 %v4294_v54, %v6189_v60 }
 0x9ae   :  { %3082 = vadd.xlane.f32.xlu1 %v6280_v20  ;;  %3144 = vadd.xlane.f32.xlu0 %v3114_v37  ;;  %v3115_v42 = vmul.f32 %v6280_v20, %v6280_v20 }
 0x9b2   :  { %3146 = vadd.xlane.f32.xlu1 %v3115_v42 }
 0x9fb   :  { %v3053_v58 = vpop.xlane.xlu0 %3052 }
 0x9fc   :  { %v3084_v26 = vmul.f32 0.0078125, %v3053_v58 }
 0x9fe   :  { %v3164_v11 = vmul.f32 %v3084_v26, %v3084_v26 }
 0x9ff   :  { %v3055_v36 = vpop.xlane.xlu1 %3054  ;;  %v3117_v31 = vpop.xlane.xlu0 %3116 }
 0xa00   :  { %v6287_v38 = vmul.f32 0.0078125, %v3055_v36  ;;  %v3148_v27 = vmul.f32 0.0078125, %v3117_v31  ;;  %v3212_v31 = vsub.f32 %v6192_v6, %v3084_v26  ;;  %v6323_v26 = vrot.slane %v6185_v25, %v5235_v17 }
 0xa02   :  { %v3180_v60 = vsub.f32 %v3148_v27, %v3164_v11  ;;  %v3165_v61 = vmul.f32 %v6287_v38, %v6287_v38  ;;  %v6312_v11 = vrot.slane %v6185_v25, %v5232_v10  ;;  %v3213_v6 = vsub.f32 %v6196_v21, %v6287_v38 }
 0xa03   :  { %v3119_v12 = vpop.xlane.xlu1 %3118  ;;  %v3057_v5 = vpop.xlane.xlu0 %3056 }
 0xa04   :  { %v3196_v2 = vmax.f32 %v3180_v60, 0.0  ;;  %v3149_v49 = vmul.f32 0.0078125, %v3119_v12  ;;  %v6291_v1 = vmul.f32 0.0078125, %v3057_v5 }
 0xa06   :  { %v3228_v4 = vadd.f32 1e-05, %v3196_v2  ;;  %v3181_v22 = vsub.f32 %v3149_v49, %v3165_v61  ;;  %v3166_v19 = vmul.f32 %v6291_v1, %v6291_v1 }
 0xa07   :  { %v3059_v39 = vpop.xlane.xlu1 %3058  ;;  %v3121_v7 = vpop.xlane.xlu0 %3120 }
 0xa08   :  { %4700 = vrsqrt.f32 %v3228_v4  ;;  %v3197_v13 = vmax.f32 %v3181_v22, 0.0  ;;  %v6295_v35 = vmul.f32 0.0078125, %v3059_v39  ;;  %v3150_v0 = vmul.f32 0.0078125, %v3121_v7 }
 0xa0a   :  { %v3229_v24 = vadd.f32 1e-05, %v3197_v13  ;;  %v3182_v55 = vsub.f32 %v3150_v0, %v3166_v19  ;;  %v3167_v14 = vmul.f32 %v6295_v35, %v6295_v35  ;;  %v3214_v13 = vsub.f32 %v6202_v46, %v6291_v1 }
 0xa0b   :  { %v3123_v62 = vpop.xlane.xlu1 %3122  ;;  %v3061_v30 = vpop.xlane.xlu0 %3060  ;;  %v3215_v46 = vsub.f32 %v6208_v16, %v6295_v35 }
 0xa0c   :  { %4702 = vrsqrt.f32 %v3229_v24  ;;  %v3198_v29 = vmax.f32 %v3182_v55, 0.0  ;;  %v3151_v56 = vmul.f32 0.0078125, %v3123_v62  ;;  %v6299_v33 = vmul.f32 0.0078125, %v3061_v30 }
 0xa0e   :  { %v3230_v40 = vadd.f32 1e-05, %v3198_v29  ;;  %v3183_v41 = vsub.f32 %v3151_v56, %v3167_v14  ;;  %v3168_v53 = vmul.f32 %v6299_v33, %v6299_v33 }
 0xa0f   :  { %v3063_v34 = vpop.xlane.xlu1 %3062  ;;  %v3125_v51 = vpop.xlane.xlu0 %3124 }
 0xa10   :  { %4704 = vrsqrt.f32 %v3230_v40  ;;  %v3199_v32 = vmax.f32 %v3183_v41, 0.0  ;;  %v6303_v52 = vmul.f32 0.0078125, %v3063_v34  ;;  %v3152_v43 = vmul.f32 0.0078125, %v3125_v51 }
 0xa12   :  { %v3231_v9 = vadd.f32 1e-05, %v3199_v32  ;;  %v3184_v45 = vsub.f32 %v3152_v43, %v3168_v53  ;;  %v3169_v3 = vmul.f32 %v6303_v52, %v6303_v52 }
 0xa13   :  { %v3127_v8 = vpop.xlane.xlu1 %3126  ;;  %v3065_v54 = vpop.xlane.xlu0 %3064 }
 0xa14   :  { %4706 = vrsqrt.f32 %v3231_v9  ;;  %v3200_v37 = vmax.f32 %v3184_v45, 0.0  ;;  %v3153_v42 = vmul.f32 0.0078125, %v3127_v8  ;;  %v6307_v58 = vmul.f32 0.0078125, %v3065_v54 }
 0xa15   :  { %v4701_v36 = vpop.eup %4700 }
 0xa16   :  { %v3232_v27 = vadd.f32 1e-05, %v3200_v37  ;;  %v3185_v60 = vsub.f32 %v3153_v42, %v3169_v3  ;;  %v3170_v12 = vmul.f32 %v6307_v58, %v6307_v58  ;;  %v3260_v2 = vmul.f32 %v4701_v36, %v3212_v31 }
 0xa17   :  { %v3067_v5 = vpop.xlane.xlu1 %3066  ;;  %v3129_v61 = vpop.xlane.xlu0 %3128 }
 0xa18   :  { %4708 = vrsqrt.f32 %v3232_v27  ;;  %v3201_v49 = vmax.f32 %v3185_v60, 0.0  ;;  %v6316_v4 = vmul.f32 0.0078125, %v3067_v5  ;;  %v3154_v22 = vmul.f32 0.0078125, %v3129_v61 }
 0xa19   :  { %v4703_v19 = vpop.eup %4702  ;;  %v3280_v10 = vmul.f32 %v6312_v11, %v3260_v2  ;;  %v3216_v2 = vsub.f32 %v6214_v47, %v6299_v33  ;;  %v3217_v33 = vsub.f32 %v6220_v63, %v6303_v52  ;;  %v3218_v63 = vsub.f32 %v6226_v59, %v6307_v58 }
 0xa1a   :  { %v3233_v39 = vadd.f32 1e-05, %v3201_v49  ;;  %v3186_v7 = vsub.f32 %v3154_v22, %v3170_v12  ;;  %v3261_v55 = vmul.f32 %v4703_v19, %v3213_v6  ;;  %v3171_v14 = vmul.f32 %v6316_v4, %v6316_v4 }
 0xa1b   :  { %v3131_v0 = vpop.xlane.xlu1 %3130  ;;  %v3069_v24 = vpop.xlane.xlu0 %3068  ;;  %v3300_v29 = vadd.f32 %v6323_v26, %v3280_v10 }
 0xa1c   :  { %4710 = vrsqrt.f32 %v3233_v39  ;;  %v3202_v62 = vmax.f32 %v3186_v7, 0.0  ;;  %v3155_v21 = vmul.f32 0.0078125, %v3131_v0  ;;  %v6329_v30 = vmul.f32 0.0078125, %v3069_v24 }
 0xa1d   :  { %v4705_v38 = vpop.eup %4704  ;;  %v3281_v17 = vmul.f32 %v6312_v11, %v3261_v55  ;;  %v3316_v3 = vmax.f32 %v3300_v29, 0.0 }
 0xa1e   :  { %v3262_v56 = vmul.f32 %v4705_v38, %v3214_v13  ;;  %v3234_v40 = vadd.f32 1e-05, %v3202_v62  ;;  %v3187_v41 = vsub.f32 %v3155_v21, %v3171_v14  ;;  %v3172_v45 = vmul.f32 %v6329_v30, %v6329_v30 }
 0xa1f   :  { %v3071_v1 = vpop.xlane.xlu1 %3070  ;;  %v3133_v53 = vpop.xlane.xlu0 %3132  ;;  %v3301_v34 = vadd.f32 %v6323_v26, %v3281_v17 }
 0xa20   :  { %4712 = vrsqrt.f32 %v3234_v40  ;;  %v3203_v51 = vmax.f32 %v3187_v41, 0.0  ;;  %v6336_v32 = vmul.f32 0.0078125, %v3071_v1  ;;  %v3156_v43 = vmul.f32 0.0078125, %v3133_v53 }
 0xa21   :  { %v4707_v9 = vpop.eup %4706  ;;  %v3317_v8 = vmax.f32 %v3301_v34, 0.0  ;;  %v3282_v54 = vmul.f32 %v6312_v11, %v3262_v56 }
 0xa22   :  { %v3263_v37 = vmul.f32 %v4707_v9, %v3215_v46  ;;  %v3235_v42 = vadd.f32 1e-05, %v3203_v51  ;;  %v3173_v16 = vmul.f32 %v6336_v32, %v6336_v32  ;;  %v3188_v35 = vsub.f32 %v3156_v43, %v3172_v45 }
 0xa23   :  { %v3135_v36 = vpop.xlane.xlu1 %3134  ;;  %v3073_v31 = vpop.xlane.xlu0 %3072  ;;  %v3332_v27 = vpack.c.bf16 %v3317_v8, %v3316_v3  ;;  %v3302_v22 = vadd.f32 %v6323_v26, %v3282_v54 }
 0xa24   :  { %4714 = vrsqrt.f32 %v3235_v42  ;;  %v3157_v60 = vmul.f32 0.0078125, %v3135_v36  ;;  %v6343_v12 = vmul.f32 0.0078125, %v3073_v31  ;;  %v3283_v5 = vmul.f32 %v6312_v11, %v3263_v37 }
 0xa25   :  { %v4709_v61 = vpop.eup %4708  ;;  %v3204_v49 = vmax.f32 %v3188_v35, 0.0  ;;  %4423 = vmatprep.mubr.bf16.mxu0 %v3332_v27  ;;  %v3318_v21 = vmax.f32 %v3302_v22, 0.0  ;;  %v3219_v31 = vsub.f32 %v6232_v57, %v6316_v4  ;;  %v3220_v57 = vsub.f32 %v6238_v44, %v6329_v30 }
 0xa26   :  { %v3189_v19 = vsub.f32 %v3157_v60, %v3173_v16  ;;  %v3303_v6 = vadd.f32 %v6323_v26, %v3283_v5  ;;  %v3174_v39 = vmul.f32 %v6343_v12, %v6343_v12  ;;  %v3264_v0 = vmul.f32 %v4709_v61, %v3216_v2 }
 0xa27   :  { %v3236_v10 = vadd.f32 1e-05, %v3204_v49  ;;  %v3075_v7 = vpop.xlane.xlu1 %3074  ;;  %v3137_v13 = vpop.xlane.xlu0 %3136 }
 0xa28   :  { %v3205_v24 = vmax.f32 %v3189_v19, 0.0  ;;  %v6352_v55 = vmul.f32 0.0078125, %v3075_v7  ;;  %v3158_v14 = vmul.f32 0.0078125, %v3137_v13  ;;  %v3319_v62 = vmax.f32 %v3303_v6, 0.0 }
 0xa29   :  { %v4711_v47 = vpop.eup %4710  ;;  %4716 = vrsqrt.f32 %v3236_v10  ;;  %v3284_v38 = vmul.f32 %v6312_v11, %v3264_v0 }
 0xa2a   :  { %v3237_v17 = vadd.f32 1e-05, %v3205_v24  ;;  %v3190_v29 = vsub.f32 %v3158_v14, %v3174_v39  ;;  %v3175_v56 = vmul.f32 %v6352_v55, %v6352_v55  ;;  %v3333_v46 = vpack.c.bf16 %v3319_v62, %v3318_v21 }
 0xa2b   :  { %v3139_v40 = vpop.xlane.xlu1 %3138  ;;  %v3077_v41 = vpop.xlane.xlu0 %3076  ;;  %v3265_v1 = vmul.f32 %v4711_v47, %v3217_v33  ;;  %v3304_v9 = vadd.f32 %v6323_v26, %v3284_v38 }
 0xa2c   :  { %4718 = vrsqrt.f32 %v3237_v17  ;;  %v3206_v53 = vmax.f32 %v3190_v29, 0.0  ;;  %v3159_v34 = vmul.f32 0.0078125, %v3139_v40  ;;  %v6359_v51 = vmul.f32 0.0078125, %v3077_v41  ;;  %4424 = vmatmul.mubr.bf16.vlgmr.msra.gmra.mxu0 %v3333_v46 }
 0xa2d   :  { %v4713_v43 = vpop.eup %4712  ;;  %v3285_v52 = vmul.f32 %v6312_v11, %v3265_v1  ;;  %v3320_v27 = vmax.f32 %v3304_v9, 0.0  ;;  %v3221_v40 = vsub.f32 %v6244_v50, %v6336_v32 }
 0xa2e   :  { %v3238_v45 = vadd.f32 1e-05, %v3206_v53  ;;  %v3191_v3 = vsub.f32 %v3159_v34, %v3175_v56  ;;  %v3176_v8 = vmul.f32 %v6359_v51, %v6359_v51  ;;  %v3266_v16 = vmul.f32 %v4713_v43, %v3218_v63 }
 0xa2f   :  { %v3079_v54 = vpop.xlane.xlu1 %3078  ;;  %v3141_v37 = vpop.xlane.xlu0 %3140  ;;  %v3305_v42 = vadd.f32 %v6323_v26, %v3285_v52  ;;  %v3222_v43 = vsub.f32 %v6250_v15, %v6343_v12  ;;  %v3223_v12 = vsub.f32 %v6256_v23, %v6352_v55 }
 0xa30   :  { %4720 = vrsqrt.f32 %v3238_v45  ;;  %v3207_v35 = vmax.f32 %v3191_v3, 0.0  ;;  %v6368_v36 = vmul.f32 0.0078125, %v3079_v54  ;;  %v3160_v59 = vmul.f32 0.0078125, %v3141_v37 }
 0xa31   :  { %v4715_v58 = vpop.eup %4714  ;;  %v3321_v60 = vmax.f32 %v3305_v42, 0.0  ;;  %v3286_v5 = vmul.f32 %v6312_v11, %v3266_v16 }
 0xa32   :  { %v3239_v61 = vadd.f32 1e-05, %v3207_v35  ;;  %v3192_v2 = vsub.f32 %v3160_v59, %v3176_v8  ;;  %v3177_v49 = vmul.f32 %v6368_v36, %v6368_v36  ;;  %v3267_v10 = vmul.f32 %v4715_v58, %v3219_v31 }
 0xa33   :  { %v3143_v22 = vpop.xlane.xlu1 %3142  ;;  %v3081_v19 = vpop.xlane.xlu0 %3080  ;;  %v3334_v6 = vpack.c.bf16 %v3321_v60, %v3320_v27  ;;  %v3306_v0 = vadd.f32 %v6323_v26, %v3286_v5 }
 0xa34   :  { %4722 = vrsqrt.f32 %v3239_v61  ;;  %v3208_v39 = vmax.f32 %v3192_v2, 0.0  ;;  %v3161_v7 = vmul.f32 0.0078125, %v3143_v22  ;;  %v6375_v13 = vmul.f32 0.0078125, %v3081_v19 }
 0xa35   :  { %4427 = vmatprep.mubr.bf16.mxu0 %v3334_v6  ;;  %v3287_v4 = vmul.f32 %v6312_v11, %v3267_v10  ;;  %v3322_v41 = vmax.f32 %v3306_v0, 0.0  ;;  %v3224_v2 = vsub.f32 %v6262_v48, %v6359_v51  ;;  %v3225_v6 = vsub.f32 %v6268_v28, %v6368_v36 }
 0xa36   :  { %v4717_v24 = vpop.eup %4716  ;;  %v3240_v14 = vadd.f32 1e-05, %v3208_v39  ;;  %v3193_v62 = vsub.f32 %v3161_v7, %v3177_v49  ;;  %v3178_v47 = vmul.f32 %v6375_v13, %v6375_v13  ;;  %v3226_v51 = vsub.f32 %v6274_v18, %v6375_v13 }
 0xa37   :  { %v3083_v33 = vpop.xlane.xlu1 %3082  ;;  %v3145_v21 = vpop.xlane.xlu0 %3144  ;;  %v3307_v38 = vadd.f32 %v6323_v26, %v3287_v4  ;;  %v3268_v17 = vmul.f32 %v4717_v24, %v3220_v57 }
 0xa38   :  { %4724 = vrsqrt.f32 %v3240_v14  ;;  %v3209_v29 = vmax.f32 %v3193_v62, 0.0  ;;  %v6384_v56 = vmul.f32 0.0078125, %v3083_v33  ;;  %v3162_v44 = vmul.f32 0.0078125, %v3145_v21 }
 0xa39   :  { %v4719_v30 = vpop.eup %4718  ;;  %v3323_v46 = vmax.f32 %v3307_v38, 0.0  ;;  %v3288_v1 = vmul.f32 %v6312_v11, %v3268_v17 }
 0xa3a   :  { %v3241_v53 = vadd.f32 1e-05, %v3209_v29  ;;  %v3194_v34 = vsub.f32 %v3162_v44, %v3178_v47  ;;  %v3269_v9 = vmul.f32 %v4719_v30, %v3221_v40  ;;  %v3179_v45 = vmul.f32 %v6384_v56, %v6384_v56 }
 0xa3b   :  { %v3147_v63 = vpop.xlane.xlu1 %3146  ;;  %v3335_v52 = vpack.c.bf16 %v3323_v46, %v3322_v41  ;;  %v3308_v32 = vadd.f32 %v6323_v26, %v3288_v1  ;;  %v3227_v28 = vsub.f32 %v6280_v20, %v6384_v56  ;;  %v6695_v46 = vld [vmem:[#allocation20_spill] sm:$0xff] }
 0xa3c   :  { %4726 = vrsqrt.f32 %v3241_v53  ;;  %v3210_v3 = vmax.f32 %v3194_v34, 0.0  ;;  %v3163_v8 = vmul.f32 0.0078125, %v3147_v63  ;;  %v3289_v50 = vmul.f32 %v6312_v11, %v3269_v9 }
 0xa3d   :  { %v4721_v54 = vpop.eup %4720  ;;  %4428 = vmatmul.mubr.bf16.gmra.mxu0 %v3335_v52  ;;  %v3324_v31 = vmax.f32 %v3308_v32, 0.0  ;;  %v6696_v20 = vsub.s32 3, %v6695_v46 }
 0xa3e   :  { %v3242_v37 = vadd.f32 1e-05, %v3210_v3  ;;  %v3195_v42 = vsub.f32 %v3163_v8, %v3179_v45  ;;  %v3270_v16 = vmul.f32 %v4721_v54, %v3222_v43  ;;  %v3309_v15 = vadd.f32 %v6323_v26, %v3289_v50 }
 0xa3f   :  { %v6421_v56 = vrot.slane %v6185_v25, %v6696_v20 }
 0xa40   :  { %4728 = vrsqrt.f32 %v3242_v37  ;;  %v3211_v35 = vmax.f32 %v3195_v42, 0.0  ;;  %v3290_v59 = vmul.f32 %v6312_v11, %v3270_v16  ;;  %v3325_v27 = vmax.f32 %v3309_v15, 0.0 }
 0xa41   :  { %v4723_v58 = vpop.eup %4722 }
 0xa42   :  { %v3243_v60 = vadd.f32 1e-05, %v3211_v35  ;;  %v3271_v5 = vmul.f32 %v4723_v58, %v3223_v12  ;;  %v3336_v61 = vpack.c.bf16 %v3325_v27, %v3324_v31  ;;  %v3310_v22 = vadd.f32 %v6323_v26, %v3290_v59 }
 0xa44   :  { %4730 = vrsqrt.f32 %v3243_v60  ;;  %v3291_v49 = vmul.f32 %v6312_v11, %v3271_v5  ;;  %4431 = vmatprep.mubr.bf16.mxu0 %v3336_v61  ;;  %v3326_v10 = vmax.f32 %v3310_v22, 0.0 }
 0xa45   :  { %v4725_v19 = vpop.eup %4724 }
 0xa46   :  { %v3311_v23 = vadd.f32 %v6323_v26, %v3291_v49  ;;  %v3272_v55 = vmul.f32 %v4725_v19, %v3224_v2 }
 0xa48   :  { %v3327_v39 = vmax.f32 %v3311_v23, 0.0  ;;  %v3292_v7 = vmul.f32 %v6312_v11, %v3272_v55 }
 0xa49   :  { %v4727_v57 = vpop.eup %4726 }
 0xa4a   :  { %v3337_v4 = vpack.c.bf16 %v3327_v39, %v3326_v10  ;;  %v3273_v48 = vmul.f32 %v4727_v57, %v3225_v6  ;;  %v3312_v24 = vadd.f32 %v6323_v26, %v3292_v7 }
 0xa4c   :  { %4432 = vmatmul.mubr.bf16.gmra.mxu0 %v3337_v4  ;;  %v3293_v0 = vmul.f32 %v6312_v11, %v3273_v48  ;;  %v3328_v36 = vmax.f32 %v3312_v24, 0.0 }
 0xa4d   :  { %v4729_v14 = vpop.eup %4728 }
 0xa4e   :  { %v3313_v62 = vadd.f32 %v6323_v26, %v3293_v0  ;;  %v3274_v47 = vmul.f32 %v4729_v14, %v3226_v51 }
 0xa50   :  { %v3329_v33 = vmax.f32 %v3313_v62, 0.0  ;;  %v3294_v21 = vmul.f32 %v6312_v11, %v3274_v47 }
 0xa51   :  { %v4731_v38 = vpop.eup %4730 }
 0xa52   :  { %v3338_v17 = vpack.c.bf16 %v3329_v33, %v3328_v36  ;;  %v3275_v29 = vmul.f32 %v4731_v38, %v3227_v28  ;;  %v3314_v13 = vadd.f32 %v6323_v26, %v3294_v21 }
 0xa54   :  { %4435 = vmatprep.mubr.bf16.mxu0 %v3338_v17  ;;  %v3295_v18 = vmul.f32 %v6312_v11, %v3275_v29  ;;  %v3330_v30 = vmax.f32 %v3314_v13, 0.0 }
 0xa56   :  { %v3315_v44 = vadd.f32 %v6323_v26, %v3295_v18 }
 0xa58   :  { %v3331_v40 = vmax.f32 %v3315_v44, 0.0 }
 0xa5a   :  { %v3339_v41 = vpack.c.bf16 %v3331_v40, %v3330_v30 }
 0xa5c   :  { %4436 = vmatmul.mubr.bf16.gmra.mxu0 %v3339_v41 }
 0xaec   :  { %v4425_v1 = vpop.f32.mrf.mxu0 }
 0xaed   :  { %v6424_v53 = vadd.f32 %v4425_v1, %v6421_v56 }
 0xaee   :  { %v3426_v34 = vpop.f32.mrf.mxu0 }
 0xaef   :  { %3493 = vadd.xlane.f32.xlu0 %v6424_v53  ;;  %v6428_v43 = vadd.f32 %v3426_v34, %v6421_v56  ;;  %v3539_v52 = vmul.f32 %v6424_v53, %v6424_v53 }
 0xaf0   :  { %v4426_v11 = vpop.f32.mrf.mxu0 }
 0xaf1   :  { %v6431_v26 = vadd.f32 %v4426_v11, %v6421_v56  ;;  %v3537_v45 = vmul.f32 %v6428_v43, %v6428_v43 }
 0xaf2   :  { %v3429_v63 = vpop.f32.mrf.mxu0 }
 0xaf3   :  { %3495 = vadd.xlane.f32.xlu1 %v6431_v26  ;;  %3489 = vadd.xlane.f32.xlu0 %v6428_v43  ;;  %v6436_v25 = vadd.f32 %v3429_v63, %v6421_v56  ;;  %v3540_v9 = vmul.f32 %v6431_v26, %v6431_v26 }
 0xaf5   :  { %v3538_v54 = vmul.f32 %v6436_v25, %v6436_v25 }
 0xaf7   :  { %3491 = vadd.xlane.f32.xlu1 %v6436_v25  ;;  %3557 = vadd.xlane.f32.xlu0 %v3539_v52 }
 0xafb   :  { %3559 = vadd.xlane.f32.xlu1 %v3540_v9  ;;  %3553 = vadd.xlane.f32.xlu0 %v3537_v45 }
 0xafd   :  { %v4429_v3 = vpop.f32.mrf.mxu0 }
 0xafe   :  { %v6446_v8 = vadd.f32 %v4429_v3, %v6421_v56 }
 0xaff   :  { %v3442_v50 = vpop.f32.mrf.mxu0  ;;  %3555 = vadd.xlane.f32.xlu1 %v3538_v54 }
 0xb00   :  { %3501 = vadd.xlane.f32.xlu0 %v6446_v8  ;;  %v6452_v37 = vadd.f32 %v3442_v50, %v6421_v56  ;;  %v3543_v12 = vmul.f32 %v6446_v8, %v6446_v8 }
 0xb01   :  { %v4430_v32 = vpop.f32.mrf.mxu0 }
 0xb02   :  { %v6455_v42 = vadd.f32 %v4430_v32, %v6421_v56  ;;  %v3541_v59 = vmul.f32 %v6452_v37, %v6452_v37 }
 0xb03   :  { %v3445_v16 = vpop.f32.mrf.mxu0 }
 0xb04   :  { %3503 = vadd.xlane.f32.xlu1 %v6455_v42  ;;  %3497 = vadd.xlane.f32.xlu0 %v6452_v37  ;;  %v6460_v15 = vadd.f32 %v3445_v16, %v6421_v56  ;;  %v3544_v35 = vmul.f32 %v6455_v42, %v6455_v42 }
 0xb06   :  { %v3542_v60 = vmul.f32 %v6460_v15, %v6460_v15 }
 0xb08   :  { %3499 = vadd.xlane.f32.xlu1 %v6460_v15  ;;  %3565 = vadd.xlane.f32.xlu0 %v3543_v12 }
 0xb0c   :  { %3567 = vadd.xlane.f32.xlu1 %v3544_v35  ;;  %3561 = vadd.xlane.f32.xlu0 %v3541_v59  ;;  %v4433_v58 = vpop.f32.mrf.mxu0 }
 0xb0d   :  { %v6470_v31 = vadd.f32 %v4433_v58, %v6421_v56 }
 0xb0e   :  { %v3458_v27 = vpop.f32.mrf.mxu0 }
 0xb0f   :  { %v6479_v2 = vadd.f32 %v3458_v27, %v6421_v56  ;;  %v3547_v19 = vmul.f32 %v6470_v31, %v6470_v31 }
 0xb10   :  { %3563 = vadd.xlane.f32.xlu1 %v3542_v60  ;;  %3509 = vadd.xlane.f32.xlu0 %v6470_v31  ;;  %v4434_v5 = vpop.f32.mrf.mxu0 }
 0xb11   :  { %v6476_v61 = vadd.f32 %v4434_v5, %v6421_v56  ;;  %v3545_v55 = vmul.f32 %v6479_v2, %v6479_v2 }
 0xb12   :  { %v3461_v49 = vpop.f32.mrf.mxu0 }
 0xb13   :  { %v6484_v22 = vadd.f32 %v3461_v49, %v6421_v56  ;;  %v3548_v23 = vmul.f32 %v6476_v61, %v6476_v61 }
 0xb14   :  { %3511 = vadd.xlane.f32.xlu1 %v6476_v61  ;;  %3505 = vadd.xlane.f32.xlu0 %v6479_v2 }
 0xb15   :  { %v3546_v7 = vmul.f32 %v6484_v22, %v6484_v22 }
 0xb18   :  { %3507 = vadd.xlane.f32.xlu1 %v6484_v22  ;;  %3573 = vadd.xlane.f32.xlu0 %v3547_v19 }
 0xb1c   :  { %3575 = vadd.xlane.f32.xlu1 %v3548_v23  ;;  %3569 = vadd.xlane.f32.xlu0 %v3545_v55  ;;  %v4437_v6 = vpop.f32.mrf.mxu0 }
 0xb1d   :  { %v6494_v10 = vadd.f32 %v4437_v6, %v6421_v56 }
 0xb1e   :  { %v3474_v39 = vpop.f32.mrf.mxu0 }
 0xb1f   :  { %v6503_v48 = vadd.f32 %v3474_v39, %v6421_v56  ;;  %v3551_v62 = vmul.f32 %v6494_v10, %v6494_v10 }
 0xb20   :  { %3571 = vadd.xlane.f32.xlu1 %v3546_v7  ;;  %3517 = vadd.xlane.f32.xlu0 %v6494_v10  ;;  %v4438_v57 = vpop.f32.mrf.mxu0 }
 0xb21   :  { %v6500_v4 = vadd.f32 %v4438_v57, %v6421_v56  ;;  %v3549_v24 = vmul.f32 %v6503_v48, %v6503_v48 }
 0xb22   :  { %v3477_v51 = vpop.f32.mrf.mxu0 }
 0xb23   :  { %v6508_v0 = vadd.f32 %v3477_v51, %v6421_v56  ;;  %v3552_v47 = vmul.f32 %v6500_v4, %v6500_v4 }
 0xb24   :  { %3519 = vadd.xlane.f32.xlu1 %v6500_v4  ;;  %3513 = vadd.xlane.f32.xlu0 %v6503_v48 }
 0xb25   :  { %v3550_v14 = vmul.f32 %v6508_v0, %v6508_v0 }
 0xb28   :  { %3515 = vadd.xlane.f32.xlu1 %v6508_v0  ;;  %3577 = vadd.xlane.f32.xlu0 %v3549_v24 }
 0xb2c   :  { %3579 = vadd.xlane.f32.xlu1 %v3550_v14  ;;  %3581 = vadd.xlane.f32.xlu0 %v3551_v62  ;;  %v4765_v14 = vld [vmem:[#allocation13 + $0x18] sm:$0xff]  ;;  %v6697_v62 = vsub.s32 4, %v6695_v46 }
 0xb30   :  { %3583 = vadd.xlane.f32.xlu1 %v3552_v47  ;;  %v6542_v47 = vrot.slane %v4765_v14, %v6697_v62 }
 0xb78   :  { %v3494_v28 = vpop.xlane.xlu0 %3493 }
 0xb79   :  { %v3523_v21 = vmul.f32 0.0078125, %v3494_v28 }
 0xb7b   :  { %v3603_v18 = vmul.f32 %v3523_v21, %v3523_v21  ;;  %v3651_v24 = vsub.f32 %v6424_v53, %v3523_v21 }
 0xb7c   :  { %v3496_v36 = vpop.xlane.xlu1 %3495  ;;  %v3490_v33 = vpop.xlane.xlu0 %3489 }
 0xb7d   :  { %v6519_v38 = vmul.f32 0.0078125, %v3496_v36  ;;  %v6521_v13 = vmul.f32 0.0078125, %v3490_v33 }
 0xb7f   :  { %v3604_v40 = vmul.f32 %v6519_v38, %v6519_v38  ;;  %v3601_v1 = vmul.f32 %v6521_v13, %v6521_v13 }
 0xb80   :  { %v3492_v17 = vpop.xlane.xlu1 %3491  ;;  %v3558_v29 = vpop.xlane.xlu0 %3557 }
 0xb81   :  { %v3587_v44 = vmul.f32 0.0078125, %v3558_v29  ;;  %v6525_v41 = vmul.f32 0.0078125, %v3492_v17 }
 0xb83   :  { %v3619_v30 = vsub.f32 %v3587_v44, %v3603_v18  ;;  %v3602_v3 = vmul.f32 %v6525_v41, %v6525_v41 }
 0xb84   :  { %v3560_v20 = vpop.xlane.xlu1 %3559  ;;  %v3554_v56 = vpop.xlane.xlu0 %3553 }
 0xb85   :  { %v3635_v34 = vmax.f32 %v3619_v30, 0.0  ;;  %v3588_v11 = vmul.f32 0.0078125, %v3560_v20  ;;  %v3585_v63 = vmul.f32 0.0078125, %v3554_v56 }
 0xb87   :  { %v3667_v52 = vadd.f32 1e-05, %v3635_v34  ;;  %v3620_v9 = vsub.f32 %v3588_v11, %v3604_v40  ;;  %v3617_v45 = vsub.f32 %v3585_v63, %v3601_v1  ;;  %v6698_v40 = vsub.s32 5, %v6695_v46 }
 0xb88   :  { %v3556_v54 = vpop.xlane.xlu1 %3555  ;;  %v3652_v11 = vsub.f32 %v6431_v26, %v6519_v38  ;;  %v3649_v46 = vsub.f32 %v6428_v43, %v6521_v13 }
 0xb89   :  { %v3502_v50 = vpop.xlane.xlu0 %3501  ;;  %4732 = vrsqrt.f32 %v3667_v52  ;;  %v3636_v32 = vmax.f32 %v3620_v9, 0.0  ;;  %v3633_v16 = vmax.f32 %v3617_v45, 0.0  ;;  %v3586_v12 = vmul.f32 0.0078125, %v3556_v54 }
 0xb8a   :  { %v6531_v49 = vmul.f32 0.0078125, %v3502_v50  ;;  %v6550_v53 = vrot.slane %v4765_v14, %v6698_v40 }
 0xb8b   :  { %v3668_v35 = vadd.f32 1e-05, %v3636_v32  ;;  %v3665_v59 = vadd.f32 1e-05, %v3633_v16  ;;  %v3618_v58 = vsub.f32 %v3586_v12, %v3602_v3 }
 0xb8c   :  { %v3607_v39 = vmul.f32 %v6531_v49, %v6531_v49  ;;  %v3655_v40 = vsub.f32 %v6446_v8, %v6531_v49 }
 0xb8d   :  { %v3504_v27 = vpop.xlane.xlu1 %3503  ;;  %v3498_v60 = vpop.xlane.xlu0 %3497  ;;  %4734 = vrsqrt.f32 %v3668_v35  ;;  %v3634_v5 = vmax.f32 %v3618_v58, 0.0 }
 0xb8e   :  { %4736 = vrsqrt.f32 %v3665_v59  ;;  %v6533_v23 = vmul.f32 0.0078125, %v3504_v27  ;;  %v6537_v7 = vmul.f32 0.0078125, %v3498_v60  ;;  %v3650_v59 = vsub.f32 %v6436_v25, %v6525_v41 }
 0xb8f   :  { %v3666_v19 = vadd.f32 1e-05, %v3634_v5 }
 0xb90   :  { %v3608_v28 = vmul.f32 %v6533_v23, %v6533_v23  ;;  %v3605_v17 = vmul.f32 %v6537_v7, %v6537_v7  ;;  %v3656_v49 = vsub.f32 %v6455_v42, %v6533_v23 }
 0xb91   :  { %v3500_v55 = vpop.xlane.xlu1 %3499  ;;  %v3566_v6 = vpop.xlane.xlu0 %3565  ;;  %4738 = vrsqrt.f32 %v3666_v19 }
 0xb92   :  { %v3591_v57 = vmul.f32 0.0078125, %v3566_v6  ;;  %v6552_v21 = vmul.f32 0.0078125, %v3500_v55 }
 0xb94   :  { %v3623_v51 = vsub.f32 %v3591_v57, %v3607_v39  ;;  %v3606_v50 = vmul.f32 %v6552_v21, %v6552_v21 }
 0xb95   :  { %v3568_v36 = vpop.xlane.xlu1 %3567  ;;  %v3562_v33 = vpop.xlane.xlu0 %3561 }
 0xb96   :  { %v3639_v29 = vmax.f32 %v3623_v51, 0.0  ;;  %v3592_v18 = vmul.f32 0.0078125, %v3568_v36  ;;  %v3589_v44 = vmul.f32 0.0078125, %v3562_v33  ;;  %v4733_v30 = vpop.eup %4732 }
 0xb97   :  { %v3699_v20 = vmul.f32 %v4733_v30, %v3651_v24 }
 0xb98   :  { %v3671_v56 = vadd.f32 1e-05, %v3639_v29  ;;  %v3624_v1 = vsub.f32 %v3592_v18, %v3608_v28  ;;  %v3621_v34 = vsub.f32 %v3589_v44, %v3605_v17 }
 0xb99   :  { %v3564_v63 = vpop.xlane.xlu1 %3563  ;;  %v3510_v52 = vpop.xlane.xlu0 %3509  ;;  %v3719_v9 = vmul.f32 %v6542_v47, %v3699_v20 }
 0xb9a   :  { %4740 = vrsqrt.f32 %v3671_v56  ;;  %v3640_v45 = vmax.f32 %v3624_v1, 0.0  ;;  %v3637_v3 = vmax.f32 %v3621_v34, 0.0  ;;  %v4735_v54 = vpop.eup %4734  ;;  %v3590_v32 = vmul.f32 0.0078125, %v3564_v63 }
 0xb9b   :  { %v4737_v16 = vpop.eup %4736  ;;  %v3739_v12 = vadd.f32 %v6550_v53, %v3719_v9  ;;  %v3700_v35 = vmul.f32 %v4735_v54, %v3652_v11  ;;  %v6565_v13 = vmul.f32 0.0078125, %v3510_v52 }
 0xb9c   :  { %v3672_v26 = vadd.f32 1e-05, %v3640_v45  ;;  %v3669_v38 = vadd.f32 1e-05, %v3637_v3  ;;  %v3697_v58 = vmul.f32 %v4737_v16, %v3649_v46  ;;  %v3622_v27 = vsub.f32 %v3590_v32, %v3606_v50 }
 0xb9d   :  { %v3512_v60 = vpop.xlane.xlu1 %3511  ;;  %v3506_v5 = vpop.xlane.xlu0 %3505  ;;  %v3755_v19 = vmax.f32 %v3739_v12, 0.0  ;;  %v3720_v43 = vmul.f32 %v6542_v47, %v3700_v35  ;;  %v3611_v17 = vmul.f32 %v6565_v13, %v6565_v13 }
 0xb9e   :  { %4742 = vrsqrt.f32 %v3672_v26  ;;  %v4739_v55 = vpop.eup %4738  ;;  %v3717_v6 = vmul.f32 %v6542_v47, %v3697_v58  ;;  %v3638_v39 = vmax.f32 %v3622_v27, 0.0  ;;  %v6570_v24 = vmul.f32 0.0078125, %v3512_v60 }
 0xb9f   :  { %4744 = vrsqrt.f32 %v3669_v38  ;;  %3771 = vst [vmem:[#allocation14 + $0x10] sm:$0xff] %v3755_v19  ;;  %v3740_v57 = vadd.f32 %v6550_v53, %v3720_v43  ;;  %v3698_v51 = vmul.f32 %v4739_v55, %v3650_v59  ;;  %v6572_v14 = vmul.f32 0.0078125, %v3506_v5 }
 0xba0   :  { %v3737_v25 = vadd.f32 %v6550_v53, %v3717_v6  ;;  %v3670_v41 = vadd.f32 1e-05, %v3638_v39  ;;  %v3612_v20 = vmul.f32 %v6570_v24, %v6570_v24  ;;  %v3653_v59 = vsub.f32 %v6452_v37, %v6537_v7 }
 0xba1   :  { %v3508_v62 = vpop.xlane.xlu1 %3507  ;;  %v3574_v28 = vpop.xlane.xlu0 %3573  ;;  %v3756_v36 = vmax.f32 %v3740_v57, 0.0  ;;  %v3718_v33 = vmul.f32 %v6542_v47, %v3698_v51  ;;  %v3609_v56 = vmul.f32 %v6572_v14, %v6572_v14  ;;  %v3654_v57 = vsub.f32 %v6460_v15, %v6552_v21 }
 0xba2   :  { %v3595_v29 = vmul.f32 0.0078125, %v3574_v28  ;;  %v3753_v18 = vmax.f32 %v3737_v25, 0.0  ;;  %4746 = vrsqrt.f32 %v3670_v41  ;;  %v6584_v3 = vmul.f32 0.0078125, %v3508_v62 }
 0xba3   :  { %3772 = vst [vmem:[#allocation14 + $0x18] sm:$0xff] %v3756_v36  ;;  %v3738_v44 = vadd.f32 %v6550_v53, %v3718_v33 }
 0xba4   :  { %v3627_v30 = vsub.f32 %v3595_v29, %v3611_v17  ;;  %3769 = vst [vmem:[#allocation14] sm:$0xff] %v3753_v18  ;;  %v3610_v58 = vmul.f32 %v6584_v3, %v6584_v3 }
 0xba5   :  { %v3576_v1 = vpop.xlane.xlu1 %3575  ;;  %v3570_v34 = vpop.xlane.xlu0 %3569  ;;  %v3754_v11 = vmax.f32 %v3738_v44, 0.0 }
 0xba6   :  { %v3643_v63 = vmax.f32 %v3627_v30, 0.0  ;;  %v3596_v52 = vmul.f32 0.0078125, %v3576_v1  ;;  %v3593_v9 = vmul.f32 0.0078125, %v3570_v34 }
 0xba7   :  { %v4741_v45 = vpop.eup %4740  ;;  %3770 = vst [vmem:[#allocation14 + $0x8] sm:$0xff] %v3754_v11  ;;  %v3659_v11 = vsub.f32 %v6470_v31, %v6565_v13  ;;  %v3660_v31 = vsub.f32 %v6476_v61, %v6570_v24 }
 0xba8   :  { %v3703_v54 = vmul.f32 %v4741_v45, %v3655_v40  ;;  %v3675_v46 = vadd.f32 1e-05, %v3643_v63  ;;  %v3628_v50 = vsub.f32 %v3596_v52, %v3612_v20  ;;  %v3625_v8 = vsub.f32 %v3593_v9, %v3609_v56 }
 0xba9   :  { %v3572_v32 = vpop.xlane.xlu1 %3571  ;;  %v3518_v16 = vpop.xlane.xlu0 %3517 }
 0xbaa   :  { %v3723_v12 = vmul.f32 %v6542_v47, %v3703_v54  ;;  %4748 = vrsqrt.f32 %v3675_v46  ;;  %v3644_v35 = vmax.f32 %v3628_v50, 0.0  ;;  %v3641_v26 = vmax.f32 %v3625_v8, 0.0 }
 0xbab   :  { %v4743_v38 = vpop.eup %4742  ;;  %v3594_v27 = vmul.f32 0.0078125, %v3572_v32  ;;  %v6602_v29 = vmul.f32 0.0078125, %v3518_v16 }
 0xbac   :  { %v4745_v60 = vpop.eup %4744  ;;  %v3743_v5 = vadd.f32 %v6550_v53, %v3723_v12  ;;  %v3704_v19 = vmul.f32 %v4743_v38, %v3656_v49  ;;  %v3676_v42 = vadd.f32 1e-05, %v3644_v35  ;;  %v3673_v23 = vadd.f32 1e-05, %v3641_v26 }
 0xbad   :  { %v3701_v43 = vmul.f32 %v4745_v60, %v3653_v59  ;;  %v3626_v55 = vsub.f32 %v3594_v27, %v3610_v58  ;;  %v3520_v6 = vpop.xlane.xlu1 %3519  ;;  %v3514_v39 = vpop.xlane.xlu0 %3513  ;;  %v3615_v63 = vmul.f32 %v6602_v29, %v6602_v29  ;;  %v3657_v60 = vsub.f32 %v6479_v2, %v6572_v14 }
 0xbae   :  { %v3759_v51 = vmax.f32 %v3743_v5, 0.0  ;;  %v3724_v37 = vmul.f32 %v6542_v47, %v3704_v19  ;;  %4750 = vrsqrt.f32 %v3676_v42  ;;  %v6598_v41 = vmul.f32 0.0078125, %v3514_v39 }
 0xbaf   :  { %v3721_v7 = vmul.f32 %v6542_v47, %v3701_v43  ;;  %4752 = vrsqrt.f32 %v3673_v23  ;;  %v3642_v25 = vmax.f32 %v3626_v55, 0.0  ;;  %v4747_v62 = vpop.eup %4746  ;;  %v6616_v32 = vmul.f32 0.0078125, %v3520_v6 }
 0xbb0   :  { %3775 = vst [vmem:[#allocation14 + $0x30] sm:$0xff] %v3759_v51  ;;  %v3744_v28 = vadd.f32 %v6550_v53, %v3724_v37  ;;  %v3702_v33 = vmul.f32 %v4747_v62, %v3654_v57  ;;  %v3613_v44 = vmul.f32 %v6598_v41, %v6598_v41  ;;  %v3658_v51 = vsub.f32 %v6484_v22, %v6584_v3 }
 0xbb1   :  { %v3741_v36 = vadd.f32 %v6550_v53, %v3721_v7  ;;  %v3674_v17 = vadd.f32 1e-05, %v3642_v25  ;;  %v3516_v15 = vpop.xlane.xlu1 %3515  ;;  %v3578_v21 = vpop.xlane.xlu0 %3577  ;;  %v3616_v5 = vmul.f32 %v6616_v32, %v6616_v32  ;;  %v3661_v3 = vsub.f32 %v6503_v48, %v6598_v41 }
 0xbb2   :  { %v3760_v18 = vmax.f32 %v3744_v28, 0.0  ;;  %v6606_v30 = vmul.f32 0.0078125, %v3516_v15  ;;  %v3597_v40 = vmul.f32 0.0078125, %v3578_v21  ;;  %v3722_v56 = vmul.f32 %v6542_v47, %v3702_v33 }
 0xbb3   :  { %v3757_v20 = vmax.f32 %v3741_v36, 0.0  ;;  %4754 = vrsqrt.f32 %v3674_v17  ;;  %v3664_v41 = vsub.f32 %v6500_v4, %v6616_v32 }
 0xbb4   :  { %3776 = vst [vmem:[#allocation14 + $0x38] sm:$0xff] %v3760_v18  ;;  %v3629_v1 = vsub.f32 %v3597_v40, %v3613_v44  ;;  %v3742_v34 = vadd.f32 %v6550_v53, %v3722_v56  ;;  %v3614_v45 = vmul.f32 %v6606_v30, %v6606_v30  ;;  %v3662_v44 = vsub.f32 %v6508_v0, %v6606_v30 }
 0xbb5   :  { %3773 = vst [vmem:[#allocation14 + $0x20] sm:$0xff] %v3757_v20  ;;  %v3580_v52 = vpop.xlane.xlu1 %3579  ;;  %v3582_v9 = vpop.xlane.xlu0 %3581  ;;  %v3663_v56 = vsub.f32 %v6494_v10, %v6602_v29 }
 0xbb6   :  { %v3645_v54 = vmax.f32 %v3629_v1, 0.0  ;;  %v3598_v46 = vmul.f32 0.0078125, %v3580_v52  ;;  %v3599_v50 = vmul.f32 0.0078125, %v3582_v9  ;;  %v3758_v49 = vmax.f32 %v3742_v34, 0.0 }
 0xbb7   :  { %v4749_v8 = vpop.eup %4748 }
 0xbb8   :  { %v3707_v16 = vmul.f32 %v4749_v8, %v3659_v11  ;;  %v3677_v12 = vadd.f32 1e-05, %v3645_v54  ;;  %v3630_v35 = vsub.f32 %v3598_v46, %v3614_v45  ;;  %v3631_v26 = vsub.f32 %v3599_v50, %v3615_v63  ;;  %3774 = vst [vmem:[#allocation14 + $0x28] sm:$0xff] %v3758_v49 }
 0xbb9   :  { %v3584_v13 = vpop.xlane.xlu1 %3583 }
 0xbba   :  { %v3727_v38 = vmul.f32 %v6542_v47, %v3707_v16  ;;  %4756 = vrsqrt.f32 %v3677_v12  ;;  %v3646_v59 = vmax.f32 %v3630_v35, 0.0  ;;  %v3647_v58 = vmax.f32 %v3631_v26, 0.0 }
 0xbbb   :  { %v4751_v27 = vpop.eup %4750  ;;  %v3600_v19 = vmul.f32 0.0078125, %v3584_v13 }
 0xbbc   :  { %v4753_v42 = vpop.eup %4752  ;;  %v3747_v23 = vadd.f32 %v6550_v53, %v3727_v38  ;;  %v3708_v43 = vmul.f32 %v4751_v27, %v3660_v31  ;;  %v3678_v55 = vadd.f32 1e-05, %v3646_v59  ;;  %v3679_v61 = vadd.f32 1e-05, %v3647_v58 }
 0xbbd   :  { %v3705_v24 = vmul.f32 %v4753_v42, %v3657_v60  ;;  %v3632_v6 = vsub.f32 %v3600_v19, %v3616_v5 }
 0xbbe   :  { %v3763_v39 = vmax.f32 %v3747_v23, 0.0  ;;  %v3728_v57 = vmul.f32 %v6542_v47, %v3708_v43  ;;  %4758 = vrsqrt.f32 %v3678_v55 }
 0xbbf   :  { %v3725_v2 = vmul.f32 %v6542_v47, %v3705_v24  ;;  %4760 = vrsqrt.f32 %v3679_v61  ;;  %v3648_v14 = vmax.f32 %v3632_v6, 0.0 }
 0xbc0   :  { %v4755_v37 = vpop.eup %4754  ;;  %3779 = vst [vmem:[#allocation14 + $0x50] sm:$0xff] %v3763_v39  ;;  %v3748_v7 = vadd.f32 %v6550_v53, %v3728_v57 }
 0xbc1   :  { %v3745_v25 = vadd.f32 %v6550_v53, %v3725_v2  ;;  %v3706_v62 = vmul.f32 %v4755_v37, %v3658_v51  ;;  %v3680_v28 = vadd.f32 1e-05, %v3648_v14 }
 0xbc2   :  { %v3764_v36 = vmax.f32 %v3748_v7, 0.0 }
 0xbc3   :  { %v3761_v33 = vmax.f32 %v3745_v25, 0.0  ;;  %v3726_v17 = vmul.f32 %v6542_v47, %v3706_v62  ;;  %4762 = vrsqrt.f32 %v3680_v28 }
 0xbc4   :  { %3780 = vst [vmem:[#allocation14 + $0x58] sm:$0xff] %v3764_v36 }
 0xbc5   :  { %3777 = vst [vmem:[#allocation14 + $0x40] sm:$0xff] %v3761_v33  ;;  %v3746_v22 = vadd.f32 %v6550_v53, %v3726_v17 }
 0xbc7   :  { %v4757_v15 = vpop.eup %4756  ;;  %v3762_v21 = vmax.f32 %v3746_v22, 0.0 }
 0xbc8   :  { %v3709_v18 = vmul.f32 %v4757_v15, %v3661_v3 }
 0xbc9   :  { %3778 = vst [vmem:[#allocation14 + $0x48] sm:$0xff] %v3762_v21 }
 0xbca   :  { %v3729_v40 = vmul.f32 %v6542_v47, %v3709_v18 }
 0xbcb   :  { %v4759_v20 = vpop.eup %4758 }
 0xbcc   :  { %v4761_v1 = vpop.eup %4760  ;;  %v3749_v34 = vadd.f32 %v6550_v53, %v3729_v40  ;;  %v3710_v11 = vmul.f32 %v4759_v20, %v3662_v44 }
 0xbcd   :  { %v3711_v63 = vmul.f32 %v4761_v1, %v3663_v56 }
 0xbce   :  { %v3765_v52 = vmax.f32 %v3749_v34, 0.0  ;;  %v3730_v48 = vmul.f32 %v6542_v47, %v3710_v11 }
 0xbcf   :  { %v3731_v9 = vmul.f32 %v6542_v47, %v3711_v63 }
 0xbd0   :  { %v4763_v0 = vpop.eup %4762  ;;  %3781 = vst [vmem:[#allocation14 + $0x60] sm:$0xff] %v3765_v52  ;;  %v3750_v30 = vadd.f32 %v6550_v53, %v3730_v48 }
 0xbd1   :  { %v3751_v45 = vadd.f32 %v6550_v53, %v3731_v9  ;;  %v3712_v10 = vmul.f32 %v4763_v0, %v3664_v41 }
 0xbd2   :  { %v3766_v29 = vmax.f32 %v3750_v30, 0.0 }
 0xbd3   :  { %v3767_v54 = vmax.f32 %v3751_v45, 0.0  ;;  %v3732_v46 = vmul.f32 %v6542_v47, %v3712_v10 }
 0xbd4   :  { %3782 = vst [vmem:[#allocation14 + $0x68] sm:$0xff] %v3766_v29 }
 0xbd5   :  { %3783 = vst [vmem:[#allocation14 + $0x70] sm:$0xff] %v3767_v54  ;;  %v3752_v50 = vadd.f32 %v6550_v53, %v3732_v46 }
 0xbd7   :  { %v3768_v4 = vmax.f32 %v3752_v50, 0.0 }
 0xbd9   :  { %3784 = vst [vmem:[#allocation14 + $0x78] sm:$0xff] %v3768_v4 }
 0xbda   :  { %4917 = shalt.err (!%p4914_p11)
}
 0xbdb   :  { %3796 = dma.vmem_to_hbm [thread:$0]  %s3791_s15, 2048, %s6665_s9, [#allocation4], %s4945_s3, %s4945_s3, %s4946_s21  }
 0xbdc   :  { %4934 = dma.done.wait [#allocation4], 2048  }
 0xbdd   :  { %4935 = vsyncadd [#allocation4], 4294965248 }
 0xbde   :  { %3800 = vsyncpa [#allocation3], 1 }
 0xbdf   :  { %3801 = vsyncpa [#allocation6], 1 }
 0xbe0   :  { %3802 = vsyncpa [#allocation9], 1 }
 0xbe1   :  { %3803 = vsyncpa [#allocation12], 1 }
 0xbe2   :  { %3804 = vsyncpa [#allocation4], 1 }

</bundles_post_ra>
